<compile_context>
chip_gen: v5e
topology: v5e:2x2
jax: 0.10.0
libtpu: 0.0.40
codegen_flags: <defaults>
</compile_context>

<pallas_src>
import math
from functools import partial

import jax
import jax.numpy as jnp
from jax import lax
from jax.experimental import pallas as pl
from jax.experimental.pallas import tpu as pltpu

# ----------------------------- config ("opt") --------------------------------
XYZ = 3
DIM_E = 1
OUT_SIZE = 4 * XYZ + DIM_E        # 13  ('3dprnn' head, no cls / box2d losses)
HID_SIZE = 32                     # opt.hid_size
CON_SIZE = 32                     # opt.con_size (encoder is not None)
LAYER_ID = 1                      # > 0 -> below_h path active

X_DIM = 3 * XYZ + DIM_E           # 10  (x part of torch.cat((x, r), dim=1))
R_DIM = XYZ                       # 3   (r part)
assert X_DIM + R_DIM == OUT_SIZE

H4 = 4 * HID_SIZE                 # 128 = fused gate width
F_PAD = 128                       # padded contraction dim (lane width)
# z-row lane layout: [h_slot | x|r | below_h | d | zero-pad | 1.0(bias lane)]
F_USED = HID_SIZE + OUT_SIZE + HID_SIZE + CON_SIZE        # 32+13+32+32 = 109
assert F_USED + 1 <= F_PAD


# ------------------------------- kernel --------------------------------------
def lstm_seq_kernel(z_ref, w_ref, h0_ref, c0_ref, hc_out_ref,
                    h_scr, c_scr, zrow_scr):
    """One chunk of T_CHUNK timesteps per grid iteration (grid axis 0 = chunk).

    z_ref      : (T_CHUNK, B, 128)  per-step exogenous rows
                 [h-slot(zeros) | x|r | below_h | d | 0-pad | 1.0]
    w_ref      : (128, 4H)          fused weights; rows 0:H = h2h, row 127 = bias
                 (gate-3 columns pre-scaled by 2 for the sigmoid/tanh trick)
    h0/c0_ref  : (B, H)             initial state (read only on chunk 0)
    hc_out_ref : (T_CHUNK, B, 2H)   [next_h | next_c] per step
    h_scr/c_scr: (B, H) f32         VMEM-resident recurrent state across chunks
    zrow_scr   : (B, 128)           staging row for the fused matmul operand
    """
    H = h_scr.shape[-1]
    t_chunk = hc_out_ref.shape[0]

    @pl.when(pl.program_id(0) == 0)
    def _():
        h_scr[...] = h0_ref[...].astype(jnp.float32)
        c_scr[...] = c0_ref[...].astype(jnp.float32)

    def step(tt, carry):
        # Stage this step's z row and inject the recurrent state into lanes
        # 0:H (lane offset 0 -> plain masked store, no lane shift), then a
        # single (B,128)@(128,4H) MXU dot produces all 4 gate pre-activations
        # with the bias folded in via the constant-1.0 lane / bias row.
        zrow_scr[...] = z_ref[tt]
        zrow_scr[:, :H] = h_scr[...].astype(zrow_scr.dtype)
        gates = jnp.dot(zrow_scr[...], w_ref[...],
                        preferred_element_type=jnp.float32)        # (B, 4H)

        # One whole-vreg sigmoid; gate-3 pre-activations were pre-scaled by 2
        # so the candidate gate is recovered via tanh(x) = 2*sigmoid(2x) - 1.
        s = jax.nn.sigmoid(gates)
        g_in = s[:, 0 * H:1 * H]          # input gate
        g_fgt = s[:, 1 * H:2 * H]         # forget gate
        g_out = s[:, 2 * H:3 * H]         # output gate
        cand = 2.0 * s[:, 3 * H:4 * H] - 1.0   # candidate (== tanh of raw preact)

        next_c = g_fgt * c_scr[...] + g_in * cand
        next_h = g_out * jnp.tanh(next_c)

        h_scr[...] = next_h
        c_scr[...] = next_c
        # Two direct slice stores (no lane concatenate / extra vreg materialize).
        hc_out_ref[tt, :, 0 * H:1 * H] = next_h.astype(hc_out_ref.dtype)
        hc_out_ref[tt, :, 1 * H:2 * H] = next_c.astype(hc_out_ref.dtype)
        return carry

    lax.fori_loop(0, t_chunk, step, 0, unroll=True)


# ------------------------------ wrapper ---------------------------------------
def build_exo_slab(x_seq, r_seq, d_seq, below_h_seq, dtype):
    """Once-per-sequence layout glue: lane-aligned (T, B, 128) exogenous slab."""
    T, B, _ = x_seq.shape
    h_slot = jnp.zeros((T, B, HID_SIZE), dtype)                 # filled in-kernel
    zpad = jnp.zeros((T, B, F_PAD - 1 - F_USED), dtype)
    ones = jnp.ones((T, B, 1), dtype)                           # bias lane
    return jnp.concatenate(
        [h_slot,
         x_seq.astype(dtype), r_seq.astype(dtype),
         below_h_seq.astype(dtype), d_seq.astype(dtype),
         zpad, ones], axis=-1)                                   # (T, B, 128)


@partial(jax.jit, static_argnames=("t_chunk",))
def lstm_unit_forward_seq(x_seq, r_seq, d_seq, below_h_seq, h0, c0, w_fused,
                          *, t_chunk=16):
    """Runs the LSTMUnit over a whole sequence in one pallas_call.

    Returns (h_seq, c_seq) of shape (T, B, H); final state is h_seq[-1], c_seq[-1].
    """
    T, B, _ = x_seq.shape
    H = h0.shape[-1]
    t_chunk = min(t_chunk, T)
    assert T % t_chunk == 0, "T must be a multiple of t_chunk"

    z = build_exo_slab(x_seq, r_seq, d_seq, below_h_seq, w_fused.dtype)

    hc = pl.pallas_call(
        lstm_seq_kernel,
        out_shape=jax.ShapeDtypeStruct((T, B, 2 * H), jnp.float32),
        grid_spec=pltpu.PrefetchScalarGridSpec(
            num_scalar_prefetch=0,
            grid=(T // t_chunk,),
            in_specs=[
                pl.BlockSpec((t_chunk, B, F_PAD), lambda t: (t, 0, 0)),  # streamed
                pl.BlockSpec((F_PAD, H4), lambda t: (0, 0)),             # resident
                pl.BlockSpec((B, H), lambda t: (0, 0)),                  # h0
                pl.BlockSpec((B, H), lambda t: (0, 0)),                  # c0
            ],
            out_specs=pl.BlockSpec((t_chunk, B, 2 * H), lambda t: (t, 0, 0)),
            scratch_shapes=[pltpu.VMEM((B, H), jnp.float32),       # h state
                            pltpu.VMEM((B, H), jnp.float32),       # c state
                            pltpu.VMEM((B, F_PAD), w_fused.dtype)],  # z-row stage
        ),
        compiler_params=pltpu.CompilerParams(
            dimension_semantics=("arbitrary",)),   # recurrence: sequential grid
    )(z, w_fused, h0, c0)

    return hc[:, :, :H], hc[:, :, H:]


# --------------------------- parameter construction ---------------------------
def init_params(key):
    """Per-gate Linear params, U(-stdv, stdv), stdv = 1/sqrt(H) (reset_parameters).

    Weights are created directly as (in_features, H) (transpose of torch's
    Linear.weight) — equivalent for a fresh random init.
    """
    stdv = 1.0 / math.sqrt(HID_SIZE)
    names_dims = [("i2h", OUT_SIZE), ("h2h", HID_SIZE),
                  ("bh2h", HID_SIZE), ("w2h", CON_SIZE)]
    keys = iter(jax.random.split(key, 4 * 4 * 2))

    def uni(shape):
        return jax.random.uniform(next(keys), shape, jnp.float32, -stdv, stdv)

    params = {}
    for name, in_dim in names_dims:
        params["w_" + name] = [uni((in_dim, HID_SIZE)) for _ in range(4)]
        params["b_" + name] = [uni((HID_SIZE,)) for _ in range(4)]
    return params


def prepare_kernel_params(params, weight_dtype=jnp.float32):
    """Fuse the 16 Linears + biases into one (128, 4H) kernel weight (host-side).

    Row layout matches the z-row lanes: [h2h | i2h | bh2h | w2h | 0-pad | bias];
    columns are gate-major (gate0..gate3).  Gate-3 columns/bias are pre-scaled
    by 2 to enable tanh(x) = 2*sigmoid(2x) - 1 with a single whole-vreg sigmoid.
    weight_dtype=jnp.bfloat16 halves weight VMEM and the z streaming DMA on
    v6e/v7x (f32 MXU accumulation is kept via preferred_element_type).
    """
    cols = []
    for g in range(4):
        rows = jnp.concatenate([
            params["w_h2h"][g],       # lanes/rows   0:32   recurrent h slot
            params["w_i2h"][g],       # lanes/rows  32:45   x|r
            params["w_bh2h"][g],      # lanes/rows  45:77   below_h
            params["w_w2h"][g],       # lanes/rows  77:109  d
        ], axis=0)                                                   # (109, H)
        b_g = (params["b_i2h"][g] + params["b_h2h"][g] +
               params["b_bh2h"][g] + params["b_w2h"][g])             # (H,)
        if g == 3:  # tanh gate
            rows, b_g = 2.0 * rows, 2.0 * b_g
        zero_rows = jnp.zeros((F_PAD - 1 - rows.shape[0], HID_SIZE), jnp.float32)
        cols.append(jnp.concatenate([rows, zero_rows, b_g[None, :]], axis=0))
    return jnp.concatenate(cols, axis=1).astype(weight_dtype)        # (128, 4H)


# ------------------------------- reference ------------------------------------
def reference_forward_seq(params, x_seq, r_seq, d_seq, below_h_seq, h0, c0):
    """Pure-JAX reference mirroring the PyTorch forward exactly (per-gate sums)."""
    T = x_seq.shape[0]
    h, c = h0, c0
    h_list, c_list = [], []
    for t in range(T):
        inputs = jnp.concatenate([x_seq[t], r_seq[t]], axis=1)
        gates = []
        for i in range(4):
            g = inputs @ params["w_i2h"][i] + params["b_i2h"][i]
            g = g + h @ params["w_h2h"][i] + params["b_h2h"][i]
            g = g + below_h_seq[t] @ params["w_bh2h"][i] + params["b_bh2h"][i]
            g = g + d_seq[t] @ params["w_w2h"][i] + params["b_w2h"][i]
            gates.append(jax.nn.sigmoid(g) if i <= 2 else jnp.tanh(g))
        c = gates[1] * c + gates[0] * gates[3]
        h = gates[2] * jnp.tanh(c)
        h_list.append(h)
        c_list.append(c)
    return jnp.stack(h_list), jnp.stack(c_list)


# --------------------------------- main ----------------------------------------
if __name__ == "__main__":
    key = jax.random.PRNGKey(0)
    k_param, k_x, k_r, k_d, k_h, k_c, k_bh = jax.random.split(key, 7)

    T, B = 32, 8          # small sequence/batch for the self-check (2 time chunks)

    params = init_params(k_param)
    # weight_dtype=jnp.bfloat16 recommended on v6e/v7x (inference); f32 for exact check.
    w_fused = prepare_kernel_params(params, weight_dtype=jnp.float32)

    x_seq = jax.random.normal(k_x, (T, B, X_DIM), jnp.float32)
    r_seq = jax.random.normal(k_r, (T, B, R_DIM), jnp.float32)
    d_seq = jax.random.normal(k_d, (T, B, CON_SIZE), jnp.float32)
    below_h_seq = jax.random.normal(k_bh, (T, B, HID_SIZE), jnp.float32)
    h0 = jax.random.normal(k_h, (B, HID_SIZE), jnp.float32)
    c0 = jax.random.normal(k_c, (B, HID_SIZE), jnp.float32)

    h_seq, c_seq = lstm_unit_forward_seq(x_seq, r_seq, d_seq, below_h_seq,
                                         h0, c0, w_fused, t_chunk=16)
    jax.block_until_ready((h_seq, c_seq))

    ref_h, ref_c = reference_forward_seq(params, x_seq, r_seq, d_seq,
                                         below_h_seq, h0, c0)
    assert jnp.allclose(h_seq, ref_h, atol=1e-3, rtol=1e-3), \
        float(jnp.max(jnp.abs(h_seq - ref_h)))
    assert jnp.allclose(c_seq, ref_c, atol=1e-3, rtol=1e-3), \
        float(jnp.max(jnp.abs(c_seq - ref_c)))

    # TODO(synk): if the surrounding model runs multiple independent sequences
    # (or both stacked RNN layers concurrently), shard them across v7x's two
    # TensorCores via a leading "parallel" grid axis / core_map, and batch
    # independent sequences so B approaches the MXU row count (128/256) —
    # a single recurrent sequence at B=8 is inherently serial and MXU-underfilled.

    print("KERNEL_OK")
</pallas_src>

<mosaic_0001>
module attributes {stable_mosaic.version = 11 : i64} {
  func.func @lstm_seq_kernel(%arg0: i32, %arg1: memref<16x8x128xf32, #tpu.memory_space<vmem>>, %arg2: memref<128x128xf32, #tpu.memory_space<vmem>>, %arg3: memref<8x32xf32, #tpu.memory_space<vmem>>, %arg4: memref<8x32xf32, #tpu.memory_space<vmem>>, %arg5: memref<16x8x64xf32, #tpu.memory_space<vmem>>, %arg6: memref<8x32xf32, #tpu.memory_space<vmem>>, %arg7: memref<8x32xf32, #tpu.memory_space<vmem>>, %arg8: memref<8x128xf32, #tpu.memory_space<vmem>>) attributes {dimension_semantics = [#tpu.dimension_semantics<arbitrary>], iteration_bounds = array<i64: 2>, scalar_prefetch = 0 : i64, scratch_operands = 3 : i64, tpu.core_type = #tpu.core_type<tc>, window_params = [{transform_indices = @transform_0, window_bounds = array<i64: 16, 8, 128>}, {pipeline_mode = #tpu.pipeline_mode<synchronous>, transform_indices = @transform_1, window_bounds = array<i64: 128, 128>}, {pipeline_mode = #tpu.pipeline_mode<synchronous>, transform_indices = @transform_2, window_bounds = array<i64: 8, 32>}, {pipeline_mode = #tpu.pipeline_mode<synchronous>, transform_indices = @transform_3, window_bounds = array<i64: 8, 32>}, {transform_indices = @transform_4, window_bounds = array<i64: 16, 8, 64>}]} {
    %c0_i32 = arith.constant 0 : i32
    %0 = arith.cmpi eq, %arg0, %c0_i32 : i32
    %1 = arith.extui %0 : i1 to i32
    %c0_i32_0 = arith.constant 0 : i32
    %2 = arith.cmpi ne, %1, %c0_i32_0 : i32
    scf.if %2 {
      %c0_415 = arith.constant 0 : index
      %c0_416 = arith.constant 0 : index
      %611 = vector.load %arg3[%c0_415, %c0_416] : memref<8x32xf32, #tpu.memory_space<vmem>>, vector<8x32xf32>
      %c0_417 = arith.constant 0 : index
      %c0_418 = arith.constant 0 : index
      %612 = vector.load %arg6[%c0_417, %c0_418] : memref<8x32xf32, #tpu.memory_space<vmem>>, vector<8x32xf32>
      tpu.vector_store %arg6[%c0_417, %c0_418], %611 {strides = array<i32>} : memref<8x32xf32, #tpu.memory_space<vmem>>, vector<8x32xf32>,
      %c0_419 = arith.constant 0 : index
      %c0_420 = arith.constant 0 : index
      %613 = vector.load %arg4[%c0_419, %c0_420] : memref<8x32xf32, #tpu.memory_space<vmem>>, vector<8x32xf32>
      %c0_421 = arith.constant 0 : index
      %c0_422 = arith.constant 0 : index
      %614 = vector.load %arg7[%c0_421, %c0_422] : memref<8x32xf32, #tpu.memory_space<vmem>>, vector<8x32xf32>
      tpu.vector_store %arg7[%c0_421, %c0_422], %613 {strides = array<i32>} : memref<8x32xf32, #tpu.memory_space<vmem>>, vector<8x32xf32>,
    } else {
    }
    %c0_i32_1 = arith.constant 0 : i32
    %3 = arith.index_cast %c0_i32_1 : i32 to index
    %c0 = arith.constant 0 : index
    %c0_2 = arith.constant 0 : index
    %4 = vector.load %arg1[%3, %c0, %c0_2] : memref<16x8x128xf32, #tpu.memory_space<vmem>>, vector<1x8x128xf32>
    %5 = vector.shape_cast %4 : vector<1x8x128xf32> to vector<8x128xf32>
    %c0_3 = arith.constant 0 : index
    %c0_4 = arith.constant 0 : index
    %6 = vector.load %arg8[%c0_3, %c0_4] : memref<8x128xf32, #tpu.memory_space<vmem>>, vector<8x128xf32>
    tpu.vector_store %arg8[%c0_3, %c0_4], %5 {strides = array<i32>} : memref<8x128xf32, #tpu.memory_space<vmem>>, vector<8x128xf32>,
    %c0_5 = arith.constant 0 : index
    %c0_6 = arith.constant 0 : index
    %7 = vector.load %arg6[%c0_5, %c0_6] : memref<8x32xf32, #tpu.memory_space<vmem>>, vector<8x32xf32>
    %c0_7 = arith.constant 0 : index
    %c0_8 = arith.constant 0 : index
    %8 = vector.load %arg8[%c0_7, %c0_8] : memref<8x128xf32, #tpu.memory_space<vmem>>, vector<8x32xf32>
    tpu.vector_store %arg8[%c0_7, %c0_8], %7 {strides = array<i32>} : memref<8x128xf32, #tpu.memory_space<vmem>>, vector<8x32xf32>,
    %c0_9 = arith.constant 0 : index
    %c0_10 = arith.constant 0 : index
    %9 = vector.load %arg8[%c0_9, %c0_10] : memref<8x128xf32, #tpu.memory_space<vmem>>, vector<8x128xf32>
    %c0_11 = arith.constant 0 : index
    %c0_12 = arith.constant 0 : index
    %10 = vector.load %arg2[%c0_11, %c0_12] : memref<128x128xf32, #tpu.memory_space<vmem>>, vector<128x128xf32>
    %cst = arith.constant dense<0.000000e+00> : vector<8x128xf32>
    %11 = tpu.matmul %9, %10, %cst {dimension_numbers = #tpu.dot_dimension_numbers<[1], [0], [0], [1], [0, 0, 1, 1], [], []>} : vector<8x128xf32>, vector<128x128xf32>, vector<8x128xf32> -> vector<8x128xf32>
    %12 = arith.negf %11 : vector<8x128xf32>
    %13 = math.exp %12 : vector<8x128xf32>
    %cst_13 = arith.constant 1.000000e+00 : f32
    %14 = vector.broadcast %cst_13 : f32 to vector<8x128xf32>
    %15 = arith.addf %14, %13 : vector<8x128xf32>
    %16 = arith.divf %14, %15 : vector<8x128xf32>
    %17 = vector.extract_strided_slice %16 {offsets = [0, 0], sizes = [8, 32], strides = [1, 1]} : vector<8x128xf32> to vector<8x32xf32>
    %18 = vector.extract_strided_slice %16 {offsets = [0, 32], sizes = [8, 32], strides = [1, 1]} : vector<8x128xf32> to vector<8x32xf32>
    %19 = vector.extract_strided_slice %16 {offsets = [0, 64], sizes = [8, 32], strides = [1, 1]} : vector<8x128xf32> to vector<8x32xf32>
    %20 = vector.extract_strided_slice %16 {offsets = [0, 96], sizes = [8, 32], strides = [1, 1]} : vector<8x128xf32> to vector<8x32xf32>
    %cst_14 = arith.constant 2.000000e+00 : f32
    %21 = vector.broadcast %cst_14 : f32 to vector<8x32xf32>
    %22 = arith.mulf %21, %20 : vector<8x32xf32>
    %cst_15 = arith.constant 1.000000e+00 : f32
    %23 = vector.broadcast %cst_15 : f32 to vector<8x32xf32>
    %24 = arith.subf %22, %23 : vector<8x32xf32>
    %c0_16 = arith.constant 0 : index
    %c0_17 = arith.constant 0 : index
    %25 = vector.load %arg7[%c0_16, %c0_17] : memref<8x32xf32, #tpu.memory_space<vmem>>, vector<8x32xf32>
    %26 = arith.mulf %18, %25 : vector<8x32xf32>
    %27 = arith.mulf %17, %24 : vector<8x32xf32>
    %28 = arith.addf %26, %27 : vector<8x32xf32>
    %29 = math.tanh %28 : vector<8x32xf32>
    %30 = arith.mulf %19, %29 : vector<8x32xf32>
    %c0_18 = arith.constant 0 : index
    %c0_19 = arith.constant 0 : index
    %31 = vector.load %arg6[%c0_18, %c0_19] : memref<8x32xf32, #tpu.memory_space<vmem>>, vector<8x32xf32>
    tpu.vector_store %arg6[%c0_18, %c0_19], %30 {strides = array<i32>} : memref<8x32xf32, #tpu.memory_space<vmem>>, vector<8x32xf32>,
    %c0_20 = arith.constant 0 : index
    %c0_21 = arith.constant 0 : index
    %32 = vector.load %arg7[%c0_20, %c0_21] : memref<8x32xf32, #tpu.memory_space<vmem>>, vector<8x32xf32>
    tpu.vector_store %arg7[%c0_20, %c0_21], %28 {strides = array<i32>} : memref<8x32xf32, #tpu.memory_space<vmem>>, vector<8x32xf32>,
    %33 = arith.index_cast %c0_i32_1 : i32 to index
    %c0_22 = arith.constant 0 : index
    %c0_23 = arith.constant 0 : index
    %34 = vector.load %arg5[%33, %c0_22, %c0_23] : memref<16x8x64xf32, #tpu.memory_space<vmem>>, vector<1x8x32xf32>
    %35 = vector.shape_cast %34 : vector<1x8x32xf32> to vector<8x32xf32>
    %36 = vector.shape_cast %30 : vector<8x32xf32> to vector<1x8x32xf32>
    tpu.vector_store %arg5[%33, %c0_22, %c0_23], %36 {strides = array<i32>} : memref<16x8x64xf32, #tpu.memory_space<vmem>>, vector<1x8x32xf32>,
    %37 = arith.index_cast %c0_i32_1 : i32 to index
    %c0_24 = arith.constant 0 : index
    %c32 = arith.constant 32 : index
    %38 = vector.load %arg5[%37, %c0_24, %c32] : memref<16x8x64xf32, #tpu.memory_space<vmem>>, vector<1x8x32xf32>
    %39 = vector.shape_cast %38 : vector<1x8x32xf32> to vector<8x32xf32>
    %40 = vector.shape_cast %28 : vector<8x32xf32> to vector<1x8x32xf32>
    tpu.vector_store %arg5[%37, %c0_24, %c32], %40 {strides = array<i32>} : memref<16x8x64xf32, #tpu.memory_space<vmem>>, vector<1x8x32xf32>,
    %c1_i32 = arith.constant 1 : i32
    %41 = arith.index_cast %c1_i32 : i32 to index
    %c0_25 = arith.constant 0 : index
    %c0_26 = arith.constant 0 : index
    %42 = vector.load %arg1[%41, %c0_25, %c0_26] : memref<16x8x128xf32, #tpu.memory_space<vmem>>, vector<1x8x128xf32>
    %43 = vector.shape_cast %42 : vector<1x8x128xf32> to vector<8x128xf32>
    %c0_27 = arith.constant 0 : index
    %c0_28 = arith.constant 0 : index
    %44 = vector.load %arg8[%c0_27, %c0_28] : memref<8x128xf32, #tpu.memory_space<vmem>>, vector<8x128xf32>
    tpu.vector_store %arg8[%c0_27, %c0_28], %43 {strides = array<i32>} : memref<8x128xf32, #tpu.memory_space<vmem>>, vector<8x128xf32>,
    %c0_29 = arith.constant 0 : index
    %c0_30 = arith.constant 0 : index
    %45 = vector.load %arg6[%c0_29, %c0_30] : memref<8x32xf32, #tpu.memory_space<vmem>>, vector<8x32xf32>
    %c0_31 = arith.constant 0 : index
    %c0_32 = arith.constant 0 : index
    %46 = vector.load %arg8[%c0_31, %c0_32] : memref<8x128xf32, #tpu.memory_space<vmem>>, vector<8x32xf32>
    tpu.vector_store %arg8[%c0_31, %c0_32], %45 {strides = array<i32>} : memref<8x128xf32, #tpu.memory_space<vmem>>, vector<8x32xf32>,
    %c0_33 = arith.constant 0 : index
    %c0_34 = arith.constant 0 : index
    %47 = vector.load %arg8[%c0_33, %c0_34] : memref<8x128xf32, #tpu.memory_space<vmem>>, vector<8x128xf32>
    %c0_35 = arith.constant 0 : index
    %c0_36 = arith.constant 0 : index
    %48 = vector.load %arg2[%c0_35, %c0_36] : memref<128x128xf32, #tpu.memory_space<vmem>>, vector<128x128xf32>
    %cst_37 = arith.constant dense<0.000000e+00> : vector<8x128xf32>
    %49 = tpu.matmul %47, %48, %cst_37 {dimension_numbers = #tpu.dot_dimension_numbers<[1], [0], [0], [1], [0, 0, 1, 1], [], []>} : vector<8x128xf32>, vector<128x128xf32>, vector<8x128xf32> -> vector<8x128xf32>
    %50 = arith.negf %49 : vector<8x128xf32>
    %51 = math.exp %50 : vector<8x128xf32>
    %cst_38 = arith.constant 1.000000e+00 : f32
    %52 = vector.broadcast %cst_38 : f32 to vector<8x128xf32>
    %53 = arith.addf %52, %51 : vector<8x128xf32>
    %54 = arith.divf %52, %53 : vector<8x128xf32>
    %55 = vector.extract_strided_slice %54 {offsets = [0, 0], sizes = [8, 32], strides = [1, 1]} : vector<8x128xf32> to vector<8x32xf32>
    %56 = vector.extract_strided_slice %54 {offsets = [0, 32], sizes = [8, 32], strides = [1, 1]} : vector<8x128xf32> to vector<8x32xf32>
    %57 = vector.extract_strided_slice %54 {offsets = [0, 64], sizes = [8, 32], strides = [1, 1]} : vector<8x128xf32> to vector<8x32xf32>
    %58 = vector.extract_strided_slice %54 {offsets = [0, 96], sizes = [8, 32], strides = [1, 1]} : vector<8x128xf32> to vector<8x32xf32>
    %cst_39 = arith.constant 2.000000e+00 : f32
    %59 = vector.broadcast %cst_39 : f32 to vector<8x32xf32>
    %60 = arith.mulf %59, %58 : vector<8x32xf32>
    %cst_40 = arith.constant 1.000000e+00 : f32
    %61 = vector.broadcast %cst_40 : f32 to vector<8x32xf32>
    %62 = arith.subf %60, %61 : vector<8x32xf32>
    %c0_41 = arith.constant 0 : index
    %c0_42 = arith.constant 0 : index
    %63 = vector.load %arg7[%c0_41, %c0_42] : memref<8x32xf32, #tpu.memory_space<vmem>>, vector<8x32xf32>
    %64 = arith.mulf %56, %63 : vector<8x32xf32>
    %65 = arith.mulf %55, %62 : vector<8x32xf32>
    %66 = arith.addf %64, %65 : vector<8x32xf32>
    %67 = math.tanh %66 : vector<8x32xf32>
    %68 = arith.mulf %57, %67 : vector<8x32xf32>
    %c0_43 = arith.constant 0 : index
    %c0_44 = arith.constant 0 : index
    %69 = vector.load %arg6[%c0_43, %c0_44] : memref<8x32xf32, #tpu.memory_space<vmem>>, vector<8x32xf32>
    tpu.vector_store %arg6[%c0_43, %c0_44], %68 {strides = array<i32>} : memref<8x32xf32, #tpu.memory_space<vmem>>, vector<8x32xf32>,
    %c0_45 = arith.constant 0 : index
    %c0_46 = arith.constant 0 : index
    %70 = vector.load %arg7[%c0_45, %c0_46] : memref<8x32xf32, #tpu.memory_space<vmem>>, vector<8x32xf32>
    tpu.vector_store %arg7[%c0_45, %c0_46], %66 {strides = array<i32>} : memref<8x32xf32, #tpu.memory_space<vmem>>, vector<8x32xf32>,
    %71 = arith.index_cast %c1_i32 : i32 to index
    %c0_47 = arith.constant 0 : index
    %c0_48 = arith.constant 0 : index
    %72 = vector.load %arg5[%71, %c0_47, %c0_48] : memref<16x8x64xf32, #tpu.memory_space<vmem>>, vector<1x8x32xf32>
    %73 = vector.shape_cast %72 : vector<1x8x32xf32> to vector<8x32xf32>
    %74 = vector.shape_cast %68 : vector<8x32xf32> to vector<1x8x32xf32>
    tpu.vector_store %arg5[%71, %c0_47, %c0_48], %74 {strides = array<i32>} : memref<16x8x64xf32, #tpu.memory_space<vmem>>, vector<1x8x32xf32>,
    %75 = arith.index_cast %c1_i32 : i32 to index
    %c0_49 = arith.constant 0 : index
    %c32_50 = arith.constant 32 : index
    %76 = vector.load %arg5[%75, %c0_49, %c32_50] : memref<16x8x64xf32, #tpu.memory_space<vmem>>, vector<1x8x32xf32>
    %77 = vector.shape_cast %76 : vector<1x8x32xf32> to vector<8x32xf32>
    %78 = vector.shape_cast %66 : vector<8x32xf32> to vector<1x8x32xf32>
    tpu.vector_store %arg5[%75, %c0_49, %c32_50], %78 {strides = array<i32>} : memref<16x8x64xf32, #tpu.memory_space<vmem>>, vector<1x8x32xf32>,
    %c2_i32 = arith.constant 2 : i32
    %79 = arith.index_cast %c2_i32 : i32 to index
    %c0_51 = arith.constant 0 : index
    %c0_52 = arith.constant 0 : index
    %80 = vector.load %arg1[%79, %c0_51, %c0_52] : memref<16x8x128xf32, #tpu.memory_space<vmem>>, vector<1x8x128xf32>
    %81 = vector.shape_cast %80 : vector<1x8x128xf32> to vector<8x128xf32>
    %c0_53 = arith.constant 0 : index
    %c0_54 = arith.constant 0 : index
    %82 = vector.load %arg8[%c0_53, %c0_54] : memref<8x128xf32, #tpu.memory_space<vmem>>, vector<8x128xf32>
    tpu.vector_store %arg8[%c0_53, %c0_54], %81 {strides = array<i32>} : memref<8x128xf32, #tpu.memory_space<vmem>>, vector<8x128xf32>,
    %c0_55 = arith.constant 0 : index
    %c0_56 = arith.constant 0 : index
    %83 = vector.load %arg6[%c0_55, %c0_56] : memref<8x32xf32, #tpu.memory_space<vmem>>, vector<8x32xf32>
    %c0_57 = arith.constant 0 : index
    %c0_58 = arith.constant 0 : index
    %84 = vector.load %arg8[%c0_57, %c0_58] : memref<8x128xf32, #tpu.memory_space<vmem>>, vector<8x32xf32>
    tpu.vector_store %arg8[%c0_57, %c0_58], %83 {strides = array<i32>} : memref<8x128xf32, #tpu.memory_space<vmem>>, vector<8x32xf32>,
    %c0_59 = arith.constant 0 : index
    %c0_60 = arith.constant 0 : index
    %85 = vector.load %arg8[%c0_59, %c0_60] : memref<8x128xf32, #tpu.memory_space<vmem>>, vector<8x128xf32>
    %c0_61 = arith.constant 0 : index
    %c0_62 = arith.constant 0 : index
    %86 = vector.load %arg2[%c0_61, %c0_62] : memref<128x128xf32, #tpu.memory_space<vmem>>, vector<128x128xf32>
    %cst_63 = arith.constant dense<0.000000e+00> : vector<8x128xf32>
    %87 = tpu.matmul %85, %86, %cst_63 {dimension_numbers = #tpu.dot_dimension_numbers<[1], [0], [0], [1], [0, 0, 1, 1], [], []>} : vector<8x128xf32>, vector<128x128xf32>, vector<8x128xf32> -> vector<8x128xf32>
    %88 = arith.negf %87 : vector<8x128xf32>
    %89 = math.exp %88 : vector<8x128xf32>
    %cst_64 = arith.constant 1.000000e+00 : f32
    %90 = vector.broadcast %cst_64 : f32 to vector<8x128xf32>
    %91 = arith.addf %90, %89 : vector<8x128xf32>
    %92 = arith.divf %90, %91 : vector<8x128xf32>
    %93 = vector.extract_strided_slice %92 {offsets = [0, 0], sizes = [8, 32], strides = [1, 1]} : vector<8x128xf32> to vector<8x32xf32>
    %94 = vector.extract_strided_slice %92 {offsets = [0, 32], sizes = [8, 32], strides = [1, 1]} : vector<8x128xf32> to vector<8x32xf32>
    %95 = vector.extract_strided_slice %92 {offsets = [0, 64], sizes = [8, 32], strides = [1, 1]} : vector<8x128xf32> to vector<8x32xf32>
    %96 = vector.extract_strided_slice %92 {offsets = [0, 96], sizes = [8, 32], strides = [1, 1]} : vector<8x128xf32> to vector<8x32xf32>
    %cst_65 = arith.constant 2.000000e+00 : f32
    %97 = vector.broadcast %cst_65 : f32 to vector<8x32xf32>
    %98 = arith.mulf %97, %96 : vector<8x32xf32>
    %cst_66 = arith.constant 1.000000e+00 : f32
    %99 = vector.broadcast %cst_66 : f32 to vector<8x32xf32>
    %100 = arith.subf %98, %99 : vector<8x32xf32>
    %c0_67 = arith.constant 0 : index
    %c0_68 = arith.constant 0 : index
    %101 = vector.load %arg7[%c0_67, %c0_68] : memref<8x32xf32, #tpu.memory_space<vmem>>, vector<8x32xf32>
    %102 = arith.mulf %94, %101 : vector<8x32xf32>
    %103 = arith.mulf %93, %100 : vector<8x32xf32>
    %104 = arith.addf %102, %103 : vector<8x32xf32>
    %105 = math.tanh %104 : vector<8x32xf32>
    %106 = arith.mulf %95, %105 : vector<8x32xf32>
    %c0_69 = arith.constant 0 : index
    %c0_70 = arith.constant 0 : index
    %107 = vector.load %arg6[%c0_69, %c0_70] : memref<8x32xf32, #tpu.memory_space<vmem>>, vector<8x32xf32>
    tpu.vector_store %arg6[%c0_69, %c0_70], %106 {strides = array<i32>} : memref<8x32xf32, #tpu.memory_space<vmem>>, vector<8x32xf32>,
    %c0_71 = arith.constant 0 : index
    %c0_72 = arith.constant 0 : index
    %108 = vector.load %arg7[%c0_71, %c0_72] : memref<8x32xf32, #tpu.memory_space<vmem>>, vector<8x32xf32>
    tpu.vector_store %arg7[%c0_71, %c0_72], %104 {strides = array<i32>} : memref<8x32xf32, #tpu.memory_space<vmem>>, vector<8x32xf32>,
    %109 = arith.index_cast %c2_i32 : i32 to index
    %c0_73 = arith.constant 0 : index
    %c0_74 = arith.constant 0 : index
    %110 = vector.load %arg5[%109, %c0_73, %c0_74] : memref<16x8x64xf32, #tpu.memory_space<vmem>>, vector<1x8x32xf32>
    %111 = vector.shape_cast %110 : vector<1x8x32xf32> to vector<8x32xf32>
    %112 = vector.shape_cast %106 : vector<8x32xf32> to vector<1x8x32xf32>
    tpu.vector_store %arg5[%109, %c0_73, %c0_74], %112 {strides = array<i32>} : memref<16x8x64xf32, #tpu.memory_space<vmem>>, vector<1x8x32xf32>,
    %113 = arith.index_cast %c2_i32 : i32 to index
    %c0_75 = arith.constant 0 : index
    %c32_76 = arith.constant 32 : index
    %114 = vector.load %arg5[%113, %c0_75, %c32_76] : memref<16x8x64xf32, #tpu.memory_space<vmem>>, vector<1x8x32xf32>
    %115 = vector.shape_cast %114 : vector<1x8x32xf32> to vector<8x32xf32>
    %116 = vector.shape_cast %104 : vector<8x32xf32> to vector<1x8x32xf32>
    tpu.vector_store %arg5[%113, %c0_75, %c32_76], %116 {strides = array<i32>} : memref<16x8x64xf32, #tpu.memory_space<vmem>>, vector<1x8x32xf32>,
    %c3_i32 = arith.constant 3 : i32
    %117 = arith.index_cast %c3_i32 : i32 to index
    %c0_77 = arith.constant 0 : index
    %c0_78 = arith.constant 0 : index
    %118 = vector.load %arg1[%117, %c0_77, %c0_78] : memref<16x8x128xf32, #tpu.memory_space<vmem>>, vector<1x8x128xf32>
    %119 = vector.shape_cast %118 : vector<1x8x128xf32> to vector<8x128xf32>
    %c0_79 = arith.constant 0 : index
    %c0_80 = arith.constant 0 : index
    %120 = vector.load %arg8[%c0_79, %c0_80] : memref<8x128xf32, #tpu.memory_space<vmem>>, vector<8x128xf32>
    tpu.vector_store %arg8[%c0_79, %c0_80], %119 {strides = array<i32>} : memref<8x128xf32, #tpu.memory_space<vmem>>, vector<8x128xf32>,
    %c0_81 = arith.constant 0 : index
    %c0_82 = arith.constant 0 : index
    %121 = vector.load %arg6[%c0_81, %c0_82] : memref<8x32xf32, #tpu.memory_space<vmem>>, vector<8x32xf32>
    %c0_83 = arith.constant 0 : index
    %c0_84 = arith.constant 0 : index
    %122 = vector.load %arg8[%c0_83, %c0_84] : memref<8x128xf32, #tpu.memory_space<vmem>>, vector<8x32xf32>
    tpu.vector_store %arg8[%c0_83, %c0_84], %121 {strides = array<i32>} : memref<8x128xf32, #tpu.memory_space<vmem>>, vector<8x32xf32>,
    %c0_85 = arith.constant 0 : index
    %c0_86 = arith.constant 0 : index
    %123 = vector.load %arg8[%c0_85, %c0_86] : memref<8x128xf32, #tpu.memory_space<vmem>>, vector<8x128xf32>
    %c0_87 = arith.constant 0 : index
    %c0_88 = arith.constant 0 : index
    %124 = vector.load %arg2[%c0_87, %c0_88] : memref<128x128xf32, #tpu.memory_space<vmem>>, vector<128x128xf32>
    %cst_89 = arith.constant dense<0.000000e+00> : vector<8x128xf32>
    %125 = tpu.matmul %123, %124, %cst_89 {dimension_numbers = #tpu.dot_dimension_numbers<[1], [0], [0], [1], [0, 0, 1, 1], [], []>} : vector<8x128xf32>, vector<128x128xf32>, vector<8x128xf32> -> vector<8x128xf32>
    %126 = arith.negf %125 : vector<8x128xf32>
    %127 = math.exp %126 : vector<8x128xf32>
    %cst_90 = arith.constant 1.000000e+00 : f32
    %128 = vector.broadcast %cst_90 : f32 to vector<8x128xf32>
    %129 = arith.addf %128, %127 : vector<8x128xf32>
    %130 = arith.divf %128, %129 : vector<8x128xf32>
    %131 = vector.extract_strided_slice %130 {offsets = [0, 0], sizes = [8, 32], strides = [1, 1]} : vector<8x128xf32> to vector<8x32xf32>
    %132 = vector.extract_strided_slice %130 {offsets = [0, 32], sizes = [8, 32], strides = [1, 1]} : vector<8x128xf32> to vector<8x32xf32>
    %133 = vector.extract_strided_slice %130 {offsets = [0, 64], sizes = [8, 32], strides = [1, 1]} : vector<8x128xf32> to vector<8x32xf32>
    %134 = vector.extract_strided_slice %130 {offsets = [0, 96], sizes = [8, 32], strides = [1, 1]} : vector<8x128xf32> to vector<8x32xf32>
    %cst_91 = arith.constant 2.000000e+00 : f32
    %135 = vector.broadcast %cst_91 : f32 to vector<8x32xf32>
    %136 = arith.mulf %135, %134 : vector<8x32xf32>
    %cst_92 = arith.constant 1.000000e+00 : f32
    %137 = vector.broadcast %cst_92 : f32 to vector<8x32xf32>
    %138 = arith.subf %136, %137 : vector<8x32xf32>
    %c0_93 = arith.constant 0 : index
    %c0_94 = arith.constant 0 : index
    %139 = vector.load %arg7[%c0_93, %c0_94] : memref<8x32xf32, #tpu.memory_space<vmem>>, vector<8x32xf32>
    %140 = arith.mulf %132, %139 : vector<8x32xf32>
    %141 = arith.mulf %131, %138 : vector<8x32xf32>
    %142 = arith.addf %140, %141 : vector<8x32xf32>
    %143 = math.tanh %142 : vector<8x32xf32>
    %144 = arith.mulf %133, %143 : vector<8x32xf32>
    %c0_95 = arith.constant 0 : index
    %c0_96 = arith.constant 0 : index
    %145 = vector.load %arg6[%c0_95, %c0_96] : memref<8x32xf32, #tpu.memory_space<vmem>>, vector<8x32xf32>
    tpu.vector_store %arg6[%c0_95, %c0_96], %144 {strides = array<i32>} : memref<8x32xf32, #tpu.memory_space<vmem>>, vector<8x32xf32>,
    %c0_97 = arith.constant 0 : index
    %c0_98 = arith.constant 0 : index
    %146 = vector.load %arg7[%c0_97, %c0_98] : memref<8x32xf32, #tpu.memory_space<vmem>>, vector<8x32xf32>
    tpu.vector_store %arg7[%c0_97, %c0_98], %142 {strides = array<i32>} : memref<8x32xf32, #tpu.memory_space<vmem>>, vector<8x32xf32>,
    %147 = arith.index_cast %c3_i32 : i32 to index
    %c0_99 = arith.constant 0 : index
    %c0_100 = arith.constant 0 : index
    %148 = vector.load %arg5[%147, %c0_99, %c0_100] : memref<16x8x64xf32, #tpu.memory_space<vmem>>, vector<1x8x32xf32>
    %149 = vector.shape_cast %148 : vector<1x8x32xf32> to vector<8x32xf32>
    %150 = vector.shape_cast %144 : vector<8x32xf32> to vector<1x8x32xf32>
    tpu.vector_store %arg5[%147, %c0_99, %c0_100], %150 {strides = array<i32>} : memref<16x8x64xf32, #tpu.memory_space<vmem>>, vector<1x8x32xf32>,
    %151 = arith.index_cast %c3_i32 : i32 to index
    %c0_101 = arith.constant 0 : index
    %c32_102 = arith.constant 32 : index
    %152 = vector.load %arg5[%151, %c0_101, %c32_102] : memref<16x8x64xf32, #tpu.memory_space<vmem>>, vector<1x8x32xf32>
    %153 = vector.shape_cast %152 : vector<1x8x32xf32> to vector<8x32xf32>
    %154 = vector.shape_cast %142 : vector<8x32xf32> to vector<1x8x32xf32>
    tpu.vector_store %arg5[%151, %c0_101, %c32_102], %154 {strides = array<i32>} : memref<16x8x64xf32, #tpu.memory_space<vmem>>, vector<1x8x32xf32>,
    %c4_i32 = arith.constant 4 : i32
    %155 = arith.index_cast %c4_i32 : i32 to index
    %c0_103 = arith.constant 0 : index
    %c0_104 = arith.constant 0 : index
    %156 = vector.load %arg1[%155, %c0_103, %c0_104] : memref<16x8x128xf32, #tpu.memory_space<vmem>>, vector<1x8x128xf32>
    %157 = vector.shape_cast %156 : vector<1x8x128xf32> to vector<8x128xf32>
    %c0_105 = arith.constant 0 : index
    %c0_106 = arith.constant 0 : index
    %158 = vector.load %arg8[%c0_105, %c0_106] : memref<8x128xf32, #tpu.memory_space<vmem>>, vector<8x128xf32>
    tpu.vector_store %arg8[%c0_105, %c0_106], %157 {strides = array<i32>} : memref<8x128xf32, #tpu.memory_space<vmem>>, vector<8x128xf32>,
    %c0_107 = arith.constant 0 : index
    %c0_108 = arith.constant 0 : index
    %159 = vector.load %arg6[%c0_107, %c0_108] : memref<8x32xf32, #tpu.memory_space<vmem>>, vector<8x32xf32>
    %c0_109 = arith.constant 0 : index
    %c0_110 = arith.constant 0 : index
    %160 = vector.load %arg8[%c0_109, %c0_110] : memref<8x128xf32, #tpu.memory_space<vmem>>, vector<8x32xf32>
    tpu.vector_store %arg8[%c0_109, %c0_110], %159 {strides = array<i32>} : memref<8x128xf32, #tpu.memory_space<vmem>>, vector<8x32xf32>,
    %c0_111 = arith.constant 0 : index
    %c0_112 = arith.constant 0 : index
    %161 = vector.load %arg8[%c0_111, %c0_112] : memref<8x128xf32, #tpu.memory_space<vmem>>, vector<8x128xf32>
    %c0_113 = arith.constant 0 : index
    %c0_114 = arith.constant 0 : index
    %162 = vector.load %arg2[%c0_113, %c0_114] : memref<128x128xf32, #tpu.memory_space<vmem>>, vector<128x128xf32>
    %cst_115 = arith.constant dense<0.000000e+00> : vector<8x128xf32>
    %163 = tpu.matmul %161, %162, %cst_115 {dimension_numbers = #tpu.dot_dimension_numbers<[1], [0], [0], [1], [0, 0, 1, 1], [], []>} : vector<8x128xf32>, vector<128x128xf32>, vector<8x128xf32> -> vector<8x128xf32>
    %164 = arith.negf %163 : vector<8x128xf32>
    %165 = math.exp %164 : vector<8x128xf32>
    %cst_116 = arith.constant 1.000000e+00 : f32
    %166 = vector.broadcast %cst_116 : f32 to vector<8x128xf32>
    %167 = arith.addf %166, %165 : vector<8x128xf32>
    %168 = arith.divf %166, %167 : vector<8x128xf32>
    %169 = vector.extract_strided_slice %168 {offsets = [0, 0], sizes = [8, 32], strides = [1, 1]} : vector<8x128xf32> to vector<8x32xf32>
    %170 = vector.extract_strided_slice %168 {offsets = [0, 32], sizes = [8, 32], strides = [1, 1]} : vector<8x128xf32> to vector<8x32xf32>
    %171 = vector.extract_strided_slice %168 {offsets = [0, 64], sizes = [8, 32], strides = [1, 1]} : vector<8x128xf32> to vector<8x32xf32>
    %172 = vector.extract_strided_slice %168 {offsets = [0, 96], sizes = [8, 32], strides = [1, 1]} : vector<8x128xf32> to vector<8x32xf32>
    %cst_117 = arith.constant 2.000000e+00 : f32
    %173 = vector.broadcast %cst_117 : f32 to vector<8x32xf32>
    %174 = arith.mulf %173, %172 : vector<8x32xf32>
    %cst_118 = arith.constant 1.000000e+00 : f32
    %175 = vector.broadcast %cst_118 : f32 to vector<8x32xf32>
    %176 = arith.subf %174, %175 : vector<8x32xf32>
    %c0_119 = arith.constant 0 : index
    %c0_120 = arith.constant 0 : index
    %177 = vector.load %arg7[%c0_119, %c0_120] : memref<8x32xf32, #tpu.memory_space<vmem>>, vector<8x32xf32>
    %178 = arith.mulf %170, %177 : vector<8x32xf32>
    %179 = arith.mulf %169, %176 : vector<8x32xf32>
    %180 = arith.addf %178, %179 : vector<8x32xf32>
    %181 = math.tanh %180 : vector<8x32xf32>
    %182 = arith.mulf %171, %181 : vector<8x32xf32>
    %c0_121 = arith.constant 0 : index
    %c0_122 = arith.constant 0 : index
    %183 = vector.load %arg6[%c0_121, %c0_122] : memref<8x32xf32, #tpu.memory_space<vmem>>, vector<8x32xf32>
    tpu.vector_store %arg6[%c0_121, %c0_122], %182 {strides = array<i32>} : memref<8x32xf32, #tpu.memory_space<vmem>>, vector<8x32xf32>,
    %c0_123 = arith.constant 0 : index
    %c0_124 = arith.constant 0 : index
    %184 = vector.load %arg7[%c0_123, %c0_124] : memref<8x32xf32, #tpu.memory_space<vmem>>, vector<8x32xf32>
    tpu.vector_store %arg7[%c0_123, %c0_124], %180 {strides = array<i32>} : memref<8x32xf32, #tpu.memory_space<vmem>>, vector<8x32xf32>,
    %185 = arith.index_cast %c4_i32 : i32 to index
    %c0_125 = arith.constant 0 : index
    %c0_126 = arith.constant 0 : index
    %186 = vector.load %arg5[%185, %c0_125, %c0_126] : memref<16x8x64xf32, #tpu.memory_space<vmem>>, vector<1x8x32xf32>
    %187 = vector.shape_cast %186 : vector<1x8x32xf32> to vector<8x32xf32>
    %188 = vector.shape_cast %182 : vector<8x32xf32> to vector<1x8x32xf32>
    tpu.vector_store %arg5[%185, %c0_125, %c0_126], %188 {strides = array<i32>} : memref<16x8x64xf32, #tpu.memory_space<vmem>>, vector<1x8x32xf32>,
    %189 = arith.index_cast %c4_i32 : i32 to index
    %c0_127 = arith.constant 0 : index
    %c32_128 = arith.constant 32 : index
    %190 = vector.load %arg5[%189, %c0_127, %c32_128] : memref<16x8x64xf32, #tpu.memory_space<vmem>>, vector<1x8x32xf32>
    %191 = vector.shape_cast %190 : vector<1x8x32xf32> to vector<8x32xf32>
    %192 = vector.shape_cast %180 : vector<8x32xf32> to vector<1x8x32xf32>
    tpu.vector_store %arg5[%189, %c0_127, %c32_128], %192 {strides = array<i32>} : memref<16x8x64xf32, #tpu.memory_space<vmem>>, vector<1x8x32xf32>,
    %c5_i32 = arith.constant 5 : i32
    %193 = arith.index_cast %c5_i32 : i32 to index
    %c0_129 = arith.constant 0 : index
    %c0_130 = arith.constant 0 : index
    %194 = vector.load %arg1[%193, %c0_129, %c0_130] : memref<16x8x128xf32, #tpu.memory_space<vmem>>, vector<1x8x128xf32>
    %195 = vector.shape_cast %194 : vector<1x8x128xf32> to vector<8x128xf32>
    %c0_131 = arith.constant 0 : index
    %c0_132 = arith.constant 0 : index
    %196 = vector.load %arg8[%c0_131, %c0_132] : memref<8x128xf32, #tpu.memory_space<vmem>>, vector<8x128xf32>
    tpu.vector_store %arg8[%c0_131, %c0_132], %195 {strides = array<i32>} : memref<8x128xf32, #tpu.memory_space<vmem>>, vector<8x128xf32>,
    %c0_133 = arith.constant 0 : index
    %c0_134 = arith.constant 0 : index
    %197 = vector.load %arg6[%c0_133, %c0_134] : memref<8x32xf32, #tpu.memory_space<vmem>>, vector<8x32xf32>
    %c0_135 = arith.constant 0 : index
    %c0_136 = arith.constant 0 : index
    %198 = vector.load %arg8[%c0_135, %c0_136] : memref<8x128xf32, #tpu.memory_space<vmem>>, vector<8x32xf32>
    tpu.vector_store %arg8[%c0_135, %c0_136], %197 {strides = array<i32>} : memref<8x128xf32, #tpu.memory_space<vmem>>, vector<8x32xf32>,
    %c0_137 = arith.constant 0 : index
    %c0_138 = arith.constant 0 : index
    %199 = vector.load %arg8[%c0_137, %c0_138] : memref<8x128xf32, #tpu.memory_space<vmem>>, vector<8x128xf32>
    %c0_139 = arith.constant 0 : index
    %c0_140 = arith.constant 0 : index
    %200 = vector.load %arg2[%c0_139, %c0_140] : memref<128x128xf32, #tpu.memory_space<vmem>>, vector<128x128xf32>
    %cst_141 = arith.constant dense<0.000000e+00> : vector<8x128xf32>
    %201 = tpu.matmul %199, %200, %cst_141 {dimension_numbers = #tpu.dot_dimension_numbers<[1], [0], [0], [1], [0, 0, 1, 1], [], []>} : vector<8x128xf32>, vector<128x128xf32>, vector<8x128xf32> -> vector<8x128xf32>
    %202 = arith.negf %201 : vector<8x128xf32>
    %203 = math.exp %202 : vector<8x128xf32>
    %cst_142 = arith.constant 1.000000e+00 : f32
    %204 = vector.broadcast %cst_142 : f32 to vector<8x128xf32>
    %205 = arith.addf %204, %203 : vector<8x128xf32>
    %206 = arith.divf %204, %205 : vector<8x128xf32>
    %207 = vector.extract_strided_slice %206 {offsets = [0, 0], sizes = [8, 32], strides = [1, 1]} : vector<8x128xf32> to vector<8x32xf32>
    %208 = vector.extract_strided_slice %206 {offsets = [0, 32], sizes = [8, 32], strides = [1, 1]} : vector<8x128xf32> to vector<8x32xf32>
    %209 = vector.extract_strided_slice %206 {offsets = [0, 64], sizes = [8, 32], strides = [1, 1]} : vector<8x128xf32> to vector<8x32xf32>
    %210 = vector.extract_strided_slice %206 {offsets = [0, 96], sizes = [8, 32], strides = [1, 1]} : vector<8x128xf32> to vector<8x32xf32>
    %cst_143 = arith.constant 2.000000e+00 : f32
    %211 = vector.broadcast %cst_143 : f32 to vector<8x32xf32>
    %212 = arith.mulf %211, %210 : vector<8x32xf32>
    %cst_144 = arith.constant 1.000000e+00 : f32
    %213 = vector.broadcast %cst_144 : f32 to vector<8x32xf32>
    %214 = arith.subf %212, %213 : vector<8x32xf32>
    %c0_145 = arith.constant 0 : index
    %c0_146 = arith.constant 0 : index
    %215 = vector.load %arg7[%c0_145, %c0_146] : memref<8x32xf32, #tpu.memory_space<vmem>>, vector<8x32xf32>
    %216 = arith.mulf %208, %215 : vector<8x32xf32>
    %217 = arith.mulf %207, %214 : vector<8x32xf32>
    %218 = arith.addf %216, %217 : vector<8x32xf32>
    %219 = math.tanh %218 : vector<8x32xf32>
    %220 = arith.mulf %209, %219 : vector<8x32xf32>
    %c0_147 = arith.constant 0 : index
    %c0_148 = arith.constant 0 : index
    %221 = vector.load %arg6[%c0_147, %c0_148] : memref<8x32xf32, #tpu.memory_space<vmem>>, vector<8x32xf32>
    tpu.vector_store %arg6[%c0_147, %c0_148], %220 {strides = array<i32>} : memref<8x32xf32, #tpu.memory_space<vmem>>, vector<8x32xf32>,
    %c0_149 = arith.constant 0 : index
    %c0_150 = arith.constant 0 : index
    %222 = vector.load %arg7[%c0_149, %c0_150] : memref<8x32xf32, #tpu.memory_space<vmem>>, vector<8x32xf32>
    tpu.vector_store %arg7[%c0_149, %c0_150], %218 {strides = array<i32>} : memref<8x32xf32, #tpu.memory_space<vmem>>, vector<8x32xf32>,
    %223 = arith.index_cast %c5_i32 : i32 to index
    %c0_151 = arith.constant 0 : index
    %c0_152 = arith.constant 0 : index
    %224 = vector.load %arg5[%223, %c0_151, %c0_152] : memref<16x8x64xf32, #tpu.memory_space<vmem>>, vector<1x8x32xf32>
    %225 = vector.shape_cast %224 : vector<1x8x32xf32> to vector<8x32xf32>
    %226 = vector.shape_cast %220 : vector<8x32xf32> to vector<1x8x32xf32>
    tpu.vector_store %arg5[%223, %c0_151, %c0_152], %226 {strides = array<i32>} : memref<16x8x64xf32, #tpu.memory_space<vmem>>, vector<1x8x32xf32>,
    %227 = arith.index_cast %c5_i32 : i32 to index
    %c0_153 = arith.constant 0 : index
    %c32_154 = arith.constant 32 : index
    %228 = vector.load %arg5[%227, %c0_153, %c32_154] : memref<16x8x64xf32, #tpu.memory_space<vmem>>, vector<1x8x32xf32>
    %229 = vector.shape_cast %228 : vector<1x8x32xf32> to vector<8x32xf32>
    %230 = vector.shape_cast %218 : vector<8x32xf32> to vector<1x8x32xf32>
    tpu.vector_store %arg5[%227, %c0_153, %c32_154], %230 {strides = array<i32>} : memref<16x8x64xf32, #tpu.memory_space<vmem>>, vector<1x8x32xf32>,
    %c6_i32 = arith.constant 6 : i32
    %231 = arith.index_cast %c6_i32 : i32 to index
    %c0_155 = arith.constant 0 : index
    %c0_156 = arith.constant 0 : index
    %232 = vector.load %arg1[%231, %c0_155, %c0_156] : memref<16x8x128xf32, #tpu.memory_space<vmem>>, vector<1x8x128xf32>
    %233 = vector.shape_cast %232 : vector<1x8x128xf32> to vector<8x128xf32>
    %c0_157 = arith.constant 0 : index
    %c0_158 = arith.constant 0 : index
    %234 = vector.load %arg8[%c0_157, %c0_158] : memref<8x128xf32, #tpu.memory_space<vmem>>, vector<8x128xf32>
    tpu.vector_store %arg8[%c0_157, %c0_158], %233 {strides = array<i32>} : memref<8x128xf32, #tpu.memory_space<vmem>>, vector<8x128xf32>,
    %c0_159 = arith.constant 0 : index
    %c0_160 = arith.constant 0 : index
    %235 = vector.load %arg6[%c0_159, %c0_160] : memref<8x32xf32, #tpu.memory_space<vmem>>, vector<8x32xf32>
    %c0_161 = arith.constant 0 : index
    %c0_162 = arith.constant 0 : index
    %236 = vector.load %arg8[%c0_161, %c0_162] : memref<8x128xf32, #tpu.memory_space<vmem>>, vector<8x32xf32>
    tpu.vector_store %arg8[%c0_161, %c0_162], %235 {strides = array<i32>} : memref<8x128xf32, #tpu.memory_space<vmem>>, vector<8x32xf32>,
    %c0_163 = arith.constant 0 : index
    %c0_164 = arith.constant 0 : index
    %237 = vector.load %arg8[%c0_163, %c0_164] : memref<8x128xf32, #tpu.memory_space<vmem>>, vector<8x128xf32>
    %c0_165 = arith.constant 0 : index
    %c0_166 = arith.constant 0 : index
    %238 = vector.load %arg2[%c0_165, %c0_166] : memref<128x128xf32, #tpu.memory_space<vmem>>, vector<128x128xf32>
    %cst_167 = arith.constant dense<0.000000e+00> : vector<8x128xf32>
    %239 = tpu.matmul %237, %238, %cst_167 {dimension_numbers = #tpu.dot_dimension_numbers<[1], [0], [0], [1], [0, 0, 1, 1], [], []>} : vector<8x128xf32>, vector<128x128xf32>, vector<8x128xf32> -> vector<8x128xf32>
    %240 = arith.negf %239 : vector<8x128xf32>
    %241 = math.exp %240 : vector<8x128xf32>
    %cst_168 = arith.constant 1.000000e+00 : f32
    %242 = vector.broadcast %cst_168 : f32 to vector<8x128xf32>
    %243 = arith.addf %242, %241 : vector<8x128xf32>
    %244 = arith.divf %242, %243 : vector<8x128xf32>
    %245 = vector.extract_strided_slice %244 {offsets = [0, 0], sizes = [8, 32], strides = [1, 1]} : vector<8x128xf32> to vector<8x32xf32>
    %246 = vector.extract_strided_slice %244 {offsets = [0, 32], sizes = [8, 32], strides = [1, 1]} : vector<8x128xf32> to vector<8x32xf32>
    %247 = vector.extract_strided_slice %244 {offsets = [0, 64], sizes = [8, 32], strides = [1, 1]} : vector<8x128xf32> to vector<8x32xf32>
    %248 = vector.extract_strided_slice %244 {offsets = [0, 96], sizes = [8, 32], strides = [1, 1]} : vector<8x128xf32> to vector<8x32xf32>
    %cst_169 = arith.constant 2.000000e+00 : f32
    %249 = vector.broadcast %cst_169 : f32 to vector<8x32xf32>
    %250 = arith.mulf %249, %248 : vector<8x32xf32>
    %cst_170 = arith.constant 1.000000e+00 : f32
    %251 = vector.broadcast %cst_170 : f32 to vector<8x32xf32>
    %252 = arith.subf %250, %251 : vector<8x32xf32>
    %c0_171 = arith.constant 0 : index
    %c0_172 = arith.constant 0 : index
    %253 = vector.load %arg7[%c0_171, %c0_172] : memref<8x32xf32, #tpu.memory_space<vmem>>, vector<8x32xf32>
    %254 = arith.mulf %246, %253 : vector<8x32xf32>
    %255 = arith.mulf %245, %252 : vector<8x32xf32>
    %256 = arith.addf %254, %255 : vector<8x32xf32>
    %257 = math.tanh %256 : vector<8x32xf32>
    %258 = arith.mulf %247, %257 : vector<8x32xf32>
    %c0_173 = arith.constant 0 : index
    %c0_174 = arith.constant 0 : index
    %259 = vector.load %arg6[%c0_173, %c0_174] : memref<8x32xf32, #tpu.memory_space<vmem>>, vector<8x32xf32>
    tpu.vector_store %arg6[%c0_173, %c0_174], %258 {strides = array<i32>} : memref<8x32xf32, #tpu.memory_space<vmem>>, vector<8x32xf32>,
    %c0_175 = arith.constant 0 : index
    %c0_176 = arith.constant 0 : index
    %260 = vector.load %arg7[%c0_175, %c0_176] : memref<8x32xf32, #tpu.memory_space<vmem>>, vector<8x32xf32>
    tpu.vector_store %arg7[%c0_175, %c0_176], %256 {strides = array<i32>} : memref<8x32xf32, #tpu.memory_space<vmem>>, vector<8x32xf32>,
    %261 = arith.index_cast %c6_i32 : i32 to index
    %c0_177 = arith.constant 0 : index
    %c0_178 = arith.constant 0 : index
    %262 = vector.load %arg5[%261, %c0_177, %c0_178] : memref<16x8x64xf32, #tpu.memory_space<vmem>>, vector<1x8x32xf32>
    %263 = vector.shape_cast %262 : vector<1x8x32xf32> to vector<8x32xf32>
    %264 = vector.shape_cast %258 : vector<8x32xf32> to vector<1x8x32xf32>
    tpu.vector_store %arg5[%261, %c0_177, %c0_178], %264 {strides = array<i32>} : memref<16x8x64xf32, #tpu.memory_space<vmem>>, vector<1x8x32xf32>,
    %265 = arith.index_cast %c6_i32 : i32 to index
    %c0_179 = arith.constant 0 : index
    %c32_180 = arith.constant 32 : index
    %266 = vector.load %arg5[%265, %c0_179, %c32_180] : memref<16x8x64xf32, #tpu.memory_space<vmem>>, vector<1x8x32xf32>
    %267 = vector.shape_cast %266 : vector<1x8x32xf32> to vector<8x32xf32>
    %268 = vector.shape_cast %256 : vector<8x32xf32> to vector<1x8x32xf32>
    tpu.vector_store %arg5[%265, %c0_179, %c32_180], %268 {strides = array<i32>} : memref<16x8x64xf32, #tpu.memory_space<vmem>>, vector<1x8x32xf32>,
    %c7_i32 = arith.constant 7 : i32
    %269 = arith.index_cast %c7_i32 : i32 to index
    %c0_181 = arith.constant 0 : index
    %c0_182 = arith.constant 0 : index
    %270 = vector.load %arg1[%269, %c0_181, %c0_182] : memref<16x8x128xf32, #tpu.memory_space<vmem>>, vector<1x8x128xf32>
    %271 = vector.shape_cast %270 : vector<1x8x128xf32> to vector<8x128xf32>
    %c0_183 = arith.constant 0 : index
    %c0_184 = arith.constant 0 : index
    %272 = vector.load %arg8[%c0_183, %c0_184] : memref<8x128xf32, #tpu.memory_space<vmem>>, vector<8x128xf32>
    tpu.vector_store %arg8[%c0_183, %c0_184], %271 {strides = array<i32>} : memref<8x128xf32, #tpu.memory_space<vmem>>, vector<8x128xf32>,
    %c0_185 = arith.constant 0 : index
    %c0_186 = arith.constant 0 : index
    %273 = vector.load %arg6[%c0_185, %c0_186] : memref<8x32xf32, #tpu.memory_space<vmem>>, vector<8x32xf32>
    %c0_187 = arith.constant 0 : index
    %c0_188 = arith.constant 0 : index
    %274 = vector.load %arg8[%c0_187, %c0_188] : memref<8x128xf32, #tpu.memory_space<vmem>>, vector<8x32xf32>
    tpu.vector_store %arg8[%c0_187, %c0_188], %273 {strides = array<i32>} : memref<8x128xf32, #tpu.memory_space<vmem>>, vector<8x32xf32>,
    %c0_189 = arith.constant 0 : index
    %c0_190 = arith.constant 0 : index
    %275 = vector.load %arg8[%c0_189, %c0_190] : memref<8x128xf32, #tpu.memory_space<vmem>>, vector<8x128xf32>
    %c0_191 = arith.constant 0 : index
    %c0_192 = arith.constant 0 : index
    %276 = vector.load %arg2[%c0_191, %c0_192] : memref<128x128xf32, #tpu.memory_space<vmem>>, vector<128x128xf32>
    %cst_193 = arith.constant dense<0.000000e+00> : vector<8x128xf32>
    %277 = tpu.matmul %275, %276, %cst_193 {dimension_numbers = #tpu.dot_dimension_numbers<[1], [0], [0], [1], [0, 0, 1, 1], [], []>} : vector<8x128xf32>, vector<128x128xf32>, vector<8x128xf32> -> vector<8x128xf32>
    %278 = arith.negf %277 : vector<8x128xf32>
    %279 = math.exp %278 : vector<8x128xf32>
    %cst_194 = arith.constant 1.000000e+00 : f32
    %280 = vector.broadcast %cst_194 : f32 to vector<8x128xf32>
    %281 = arith.addf %280, %279 : vector<8x128xf32>
    %282 = arith.divf %280, %281 : vector<8x128xf32>
    %283 = vector.extract_strided_slice %282 {offsets = [0, 0], sizes = [8, 32], strides = [1, 1]} : vector<8x128xf32> to vector<8x32xf32>
    %284 = vector.extract_strided_slice %282 {offsets = [0, 32], sizes = [8, 32], strides = [1, 1]} : vector<8x128xf32> to vector<8x32xf32>
    %285 = vector.extract_strided_slice %282 {offsets = [0, 64], sizes = [8, 32], strides = [1, 1]} : vector<8x128xf32> to vector<8x32xf32>
    %286 = vector.extract_strided_slice %282 {offsets = [0, 96], sizes = [8, 32], strides = [1, 1]} : vector<8x128xf32> to vector<8x32xf32>
    %cst_195 = arith.constant 2.000000e+00 : f32
    %287 = vector.broadcast %cst_195 : f32 to vector<8x32xf32>
    %288 = arith.mulf %287, %286 : vector<8x32xf32>
    %cst_196 = arith.constant 1.000000e+00 : f32
    %289 = vector.broadcast %cst_196 : f32 to vector<8x32xf32>
    %290 = arith.subf %288, %289 : vector<8x32xf32>
    %c0_197 = arith.constant 0 : index
    %c0_198 = arith.constant 0 : index
    %291 = vector.load %arg7[%c0_197, %c0_198] : memref<8x32xf32, #tpu.memory_space<vmem>>, vector<8x32xf32>
    %292 = arith.mulf %284, %291 : vector<8x32xf32>
    %293 = arith.mulf %283, %290 : vector<8x32xf32>
    %294 = arith.addf %292, %293 : vector<8x32xf32>
    %295 = math.tanh %294 : vector<8x32xf32>
    %296 = arith.mulf %285, %295 : vector<8x32xf32>
    %c0_199 = arith.constant 0 : index
    %c0_200 = arith.constant 0 : index
    %297 = vector.load %arg6[%c0_199, %c0_200] : memref<8x32xf32, #tpu.memory_space<vmem>>, vector<8x32xf32>
    tpu.vector_store %arg6[%c0_199, %c0_200], %296 {strides = array<i32>} : memref<8x32xf32, #tpu.memory_space<vmem>>, vector<8x32xf32>,
    %c0_201 = arith.constant 0 : index
    %c0_202 = arith.constant 0 : index
    %298 = vector.load %arg7[%c0_201, %c0_202] : memref<8x32xf32, #tpu.memory_space<vmem>>, vector<8x32xf32>
    tpu.vector_store %arg7[%c0_201, %c0_202], %294 {strides = array<i32>} : memref<8x32xf32, #tpu.memory_space<vmem>>, vector<8x32xf32>,
    %299 = arith.index_cast %c7_i32 : i32 to index
    %c0_203 = arith.constant 0 : index
    %c0_204 = arith.constant 0 : index
    %300 = vector.load %arg5[%299, %c0_203, %c0_204] : memref<16x8x64xf32, #tpu.memory_space<vmem>>, vector<1x8x32xf32>
    %301 = vector.shape_cast %300 : vector<1x8x32xf32> to vector<8x32xf32>
    %302 = vector.shape_cast %296 : vector<8x32xf32> to vector<1x8x32xf32>
    tpu.vector_store %arg5[%299, %c0_203, %c0_204], %302 {strides = array<i32>} : memref<16x8x64xf32, #tpu.memory_space<vmem>>, vector<1x8x32xf32>,
    %303 = arith.index_cast %c7_i32 : i32 to index
    %c0_205 = arith.constant 0 : index
    %c32_206 = arith.constant 32 : index
    %304 = vector.load %arg5[%303, %c0_205, %c32_206] : memref<16x8x64xf32, #tpu.memory_space<vmem>>, vector<1x8x32xf32>
    %305 = vector.shape_cast %304 : vector<1x8x32xf32> to vector<8x32xf32>
    %306 = vector.shape_cast %294 : vector<8x32xf32> to vector<1x8x32xf32>
    tpu.vector_store %arg5[%303, %c0_205, %c32_206], %306 {strides = array<i32>} : memref<16x8x64xf32, #tpu.memory_space<vmem>>, vector<1x8x32xf32>,
    %c8_i32 = arith.constant 8 : i32
    %307 = arith.index_cast %c8_i32 : i32 to index
    %c0_207 = arith.constant 0 : index
    %c0_208 = arith.constant 0 : index
    %308 = vector.load %arg1[%307, %c0_207, %c0_208] : memref<16x8x128xf32, #tpu.memory_space<vmem>>, vector<1x8x128xf32>
    %309 = vector.shape_cast %308 : vector<1x8x128xf32> to vector<8x128xf32>
    %c0_209 = arith.constant 0 : index
    %c0_210 = arith.constant 0 : index
    %310 = vector.load %arg8[%c0_209, %c0_210] : memref<8x128xf32, #tpu.memory_space<vmem>>, vector<8x128xf32>
    tpu.vector_store %arg8[%c0_209, %c0_210], %309 {strides = array<i32>} : memref<8x128xf32, #tpu.memory_space<vmem>>, vector<8x128xf32>,
    %c0_211 = arith.constant 0 : index
    %c0_212 = arith.constant 0 : index
    %311 = vector.load %arg6[%c0_211, %c0_212] : memref<8x32xf32, #tpu.memory_space<vmem>>, vector<8x32xf32>
    %c0_213 = arith.constant 0 : index
    %c0_214 = arith.constant 0 : index
    %312 = vector.load %arg8[%c0_213, %c0_214] : memref<8x128xf32, #tpu.memory_space<vmem>>, vector<8x32xf32>
    tpu.vector_store %arg8[%c0_213, %c0_214], %311 {strides = array<i32>} : memref<8x128xf32, #tpu.memory_space<vmem>>, vector<8x32xf32>,
    %c0_215 = arith.constant 0 : index
    %c0_216 = arith.constant 0 : index
    %313 = vector.load %arg8[%c0_215, %c0_216] : memref<8x128xf32, #tpu.memory_space<vmem>>, vector<8x128xf32>
    %c0_217 = arith.constant 0 : index
    %c0_218 = arith.constant 0 : index
    %314 = vector.load %arg2[%c0_217, %c0_218] : memref<128x128xf32, #tpu.memory_space<vmem>>, vector<128x128xf32>
    %cst_219 = arith.constant dense<0.000000e+00> : vector<8x128xf32>
    %315 = tpu.matmul %313, %314, %cst_219 {dimension_numbers = #tpu.dot_dimension_numbers<[1], [0], [0], [1], [0, 0, 1, 1], [], []>} : vector<8x128xf32>, vector<128x128xf32>, vector<8x128xf32> -> vector<8x128xf32>
    %316 = arith.negf %315 : vector<8x128xf32>
    %317 = math.exp %316 : vector<8x128xf32>
    %cst_220 = arith.constant 1.000000e+00 : f32
    %318 = vector.broadcast %cst_220 : f32 to vector<8x128xf32>
    %319 = arith.addf %318, %317 : vector<8x128xf32>
    %320 = arith.divf %318, %319 : vector<8x128xf32>
    %321 = vector.extract_strided_slice %320 {offsets = [0, 0], sizes = [8, 32], strides = [1, 1]} : vector<8x128xf32> to vector<8x32xf32>
    %322 = vector.extract_strided_slice %320 {offsets = [0, 32], sizes = [8, 32], strides = [1, 1]} : vector<8x128xf32> to vector<8x32xf32>
    %323 = vector.extract_strided_slice %320 {offsets = [0, 64], sizes = [8, 32], strides = [1, 1]} : vector<8x128xf32> to vector<8x32xf32>
    %324 = vector.extract_strided_slice %320 {offsets = [0, 96], sizes = [8, 32], strides = [1, 1]} : vector<8x128xf32> to vector<8x32xf32>
    %cst_221 = arith.constant 2.000000e+00 : f32
    %325 = vector.broadcast %cst_221 : f32 to vector<8x32xf32>
    %326 = arith.mulf %325, %324 : vector<8x32xf32>
    %cst_222 = arith.constant 1.000000e+00 : f32
    %327 = vector.broadcast %cst_222 : f32 to vector<8x32xf32>
    %328 = arith.subf %326, %327 : vector<8x32xf32>
    %c0_223 = arith.constant 0 : index
    %c0_224 = arith.constant 0 : index
    %329 = vector.load %arg7[%c0_223, %c0_224] : memref<8x32xf32, #tpu.memory_space<vmem>>, vector<8x32xf32>
    %330 = arith.mulf %322, %329 : vector<8x32xf32>
    %331 = arith.mulf %321, %328 : vector<8x32xf32>
    %332 = arith.addf %330, %331 : vector<8x32xf32>
    %333 = math.tanh %332 : vector<8x32xf32>
    %334 = arith.mulf %323, %333 : vector<8x32xf32>
    %c0_225 = arith.constant 0 : index
    %c0_226 = arith.constant 0 : index
    %335 = vector.load %arg6[%c0_225, %c0_226] : memref<8x32xf32, #tpu.memory_space<vmem>>, vector<8x32xf32>
    tpu.vector_store %arg6[%c0_225, %c0_226], %334 {strides = array<i32>} : memref<8x32xf32, #tpu.memory_space<vmem>>, vector<8x32xf32>,
    %c0_227 = arith.constant 0 : index
    %c0_228 = arith.constant 0 : index
    %336 = vector.load %arg7[%c0_227, %c0_228] : memref<8x32xf32, #tpu.memory_space<vmem>>, vector<8x32xf32>
    tpu.vector_store %arg7[%c0_227, %c0_228], %332 {strides = array<i32>} : memref<8x32xf32, #tpu.memory_space<vmem>>, vector<8x32xf32>,
    %337 = arith.index_cast %c8_i32 : i32 to index
    %c0_229 = arith.constant 0 : index
    %c0_230 = arith.constant 0 : index
    %338 = vector.load %arg5[%337, %c0_229, %c0_230] : memref<16x8x64xf32, #tpu.memory_space<vmem>>, vector<1x8x32xf32>
    %339 = vector.shape_cast %338 : vector<1x8x32xf32> to vector<8x32xf32>
    %340 = vector.shape_cast %334 : vector<8x32xf32> to vector<1x8x32xf32>
    tpu.vector_store %arg5[%337, %c0_229, %c0_230], %340 {strides = array<i32>} : memref<16x8x64xf32, #tpu.memory_space<vmem>>, vector<1x8x32xf32>,
    %341 = arith.index_cast %c8_i32 : i32 to index
    %c0_231 = arith.constant 0 : index
    %c32_232 = arith.constant 32 : index
    %342 = vector.load %arg5[%341, %c0_231, %c32_232] : memref<16x8x64xf32, #tpu.memory_space<vmem>>, vector<1x8x32xf32>
    %343 = vector.shape_cast %342 : vector<1x8x32xf32> to vector<8x32xf32>
    %344 = vector.shape_cast %332 : vector<8x32xf32> to vector<1x8x32xf32>
    tpu.vector_store %arg5[%341, %c0_231, %c32_232], %344 {strides = array<i32>} : memref<16x8x64xf32, #tpu.memory_space<vmem>>, vector<1x8x32xf32>,
    %c9_i32 = arith.constant 9 : i32
    %345 = arith.index_cast %c9_i32 : i32 to index
    %c0_233 = arith.constant 0 : index
    %c0_234 = arith.constant 0 : index
    %346 = vector.load %arg1[%345, %c0_233, %c0_234] : memref<16x8x128xf32, #tpu.memory_space<vmem>>, vector<1x8x128xf32>
    %347 = vector.shape_cast %346 : vector<1x8x128xf32> to vector<8x128xf32>
    %c0_235 = arith.constant 0 : index
    %c0_236 = arith.constant 0 : index
    %348 = vector.load %arg8[%c0_235, %c0_236] : memref<8x128xf32, #tpu.memory_space<vmem>>, vector<8x128xf32>
    tpu.vector_store %arg8[%c0_235, %c0_236], %347 {strides = array<i32>} : memref<8x128xf32, #tpu.memory_space<vmem>>, vector<8x128xf32>,
    %c0_237 = arith.constant 0 : index
    %c0_238 = arith.constant 0 : index
    %349 = vector.load %arg6[%c0_237, %c0_238] : memref<8x32xf32, #tpu.memory_space<vmem>>, vector<8x32xf32>
    %c0_239 = arith.constant 0 : index
    %c0_240 = arith.constant 0 : index
    %350 = vector.load %arg8[%c0_239, %c0_240] : memref<8x128xf32, #tpu.memory_space<vmem>>, vector<8x32xf32>
    tpu.vector_store %arg8[%c0_239, %c0_240], %349 {strides = array<i32>} : memref<8x128xf32, #tpu.memory_space<vmem>>, vector<8x32xf32>,
    %c0_241 = arith.constant 0 : index
    %c0_242 = arith.constant 0 : index
    %351 = vector.load %arg8[%c0_241, %c0_242] : memref<8x128xf32, #tpu.memory_space<vmem>>, vector<8x128xf32>
    %c0_243 = arith.constant 0 : index
    %c0_244 = arith.constant 0 : index
    %352 = vector.load %arg2[%c0_243, %c0_244] : memref<128x128xf32, #tpu.memory_space<vmem>>, vector<128x128xf32>
    %cst_245 = arith.constant dense<0.000000e+00> : vector<8x128xf32>
    %353 = tpu.matmul %351, %352, %cst_245 {dimension_numbers = #tpu.dot_dimension_numbers<[1], [0], [0], [1], [0, 0, 1, 1], [], []>} : vector<8x128xf32>, vector<128x128xf32>, vector<8x128xf32> -> vector<8x128xf32>
    %354 = arith.negf %353 : vector<8x128xf32>
    %355 = math.exp %354 : vector<8x128xf32>
    %cst_246 = arith.constant 1.000000e+00 : f32
    %356 = vector.broadcast %cst_246 : f32 to vector<8x128xf32>
    %357 = arith.addf %356, %355 : vector<8x128xf32>
    %358 = arith.divf %356, %357 : vector<8x128xf32>
    %359 = vector.extract_strided_slice %358 {offsets = [0, 0], sizes = [8, 32], strides = [1, 1]} : vector<8x128xf32> to vector<8x32xf32>
    %360 = vector.extract_strided_slice %358 {offsets = [0, 32], sizes = [8, 32], strides = [1, 1]} : vector<8x128xf32> to vector<8x32xf32>
    %361 = vector.extract_strided_slice %358 {offsets = [0, 64], sizes = [8, 32], strides = [1, 1]} : vector<8x128xf32> to vector<8x32xf32>
    %362 = vector.extract_strided_slice %358 {offsets = [0, 96], sizes = [8, 32], strides = [1, 1]} : vector<8x128xf32> to vector<8x32xf32>
    %cst_247 = arith.constant 2.000000e+00 : f32
    %363 = vector.broadcast %cst_247 : f32 to vector<8x32xf32>
    %364 = arith.mulf %363, %362 : vector<8x32xf32>
    %cst_248 = arith.constant 1.000000e+00 : f32
    %365 = vector.broadcast %cst_248 : f32 to vector<8x32xf32>
    %366 = arith.subf %364, %365 : vector<8x32xf32>
    %c0_249 = arith.constant 0 : index
    %c0_250 = arith.constant 0 : index
    %367 = vector.load %arg7[%c0_249, %c0_250] : memref<8x32xf32, #tpu.memory_space<vmem>>, vector<8x32xf32>
    %368 = arith.mulf %360, %367 : vector<8x32xf32>
    %369 = arith.mulf %359, %366 : vector<8x32xf32>
    %370 = arith.addf %368, %369 : vector<8x32xf32>
    %371 = math.tanh %370 : vector<8x32xf32>
    %372 = arith.mulf %361, %371 : vector<8x32xf32>
    %c0_251 = arith.constant 0 : index
    %c0_252 = arith.constant 0 : index
    %373 = vector.load %arg6[%c0_251, %c0_252] : memref<8x32xf32, #tpu.memory_space<vmem>>, vector<8x32xf32>
    tpu.vector_store %arg6[%c0_251, %c0_252], %372 {strides = array<i32>} : memref<8x32xf32, #tpu.memory_space<vmem>>, vector<8x32xf32>,
    %c0_253 = arith.constant 0 : index
    %c0_254 = arith.constant 0 : index
    %374 = vector.load %arg7[%c0_253, %c0_254] : memref<8x32xf32, #tpu.memory_space<vmem>>, vector<8x32xf32>
    tpu.vector_store %arg7[%c0_253, %c0_254], %370 {strides = array<i32>} : memref<8x32xf32, #tpu.memory_space<vmem>>, vector<8x32xf32>,
    %375 = arith.index_cast %c9_i32 : i32 to index
    %c0_255 = arith.constant 0 : index
    %c0_256 = arith.constant 0 : index
    %376 = vector.load %arg5[%375, %c0_255, %c0_256] : memref<16x8x64xf32, #tpu.memory_space<vmem>>, vector<1x8x32xf32>
    %377 = vector.shape_cast %376 : vector<1x8x32xf32> to vector<8x32xf32>
    %378 = vector.shape_cast %372 : vector<8x32xf32> to vector<1x8x32xf32>
    tpu.vector_store %arg5[%375, %c0_255, %c0_256], %378 {strides = array<i32>} : memref<16x8x64xf32, #tpu.memory_space<vmem>>, vector<1x8x32xf32>,
    %379 = arith.index_cast %c9_i32 : i32 to index
    %c0_257 = arith.constant 0 : index
    %c32_258 = arith.constant 32 : index
    %380 = vector.load %arg5[%379, %c0_257, %c32_258] : memref<16x8x64xf32, #tpu.memory_space<vmem>>, vector<1x8x32xf32>
    %381 = vector.shape_cast %380 : vector<1x8x32xf32> to vector<8x32xf32>
    %382 = vector.shape_cast %370 : vector<8x32xf32> to vector<1x8x32xf32>
    tpu.vector_store %arg5[%379, %c0_257, %c32_258], %382 {strides = array<i32>} : memref<16x8x64xf32, #tpu.memory_space<vmem>>, vector<1x8x32xf32>,
    %c10_i32 = arith.constant 10 : i32
    %383 = arith.index_cast %c10_i32 : i32 to index
    %c0_259 = arith.constant 0 : index
    %c0_260 = arith.constant 0 : index
    %384 = vector.load %arg1[%383, %c0_259, %c0_260] : memref<16x8x128xf32, #tpu.memory_space<vmem>>, vector<1x8x128xf32>
    %385 = vector.shape_cast %384 : vector<1x8x128xf32> to vector<8x128xf32>
    %c0_261 = arith.constant 0 : index
    %c0_262 = arith.constant 0 : index
    %386 = vector.load %arg8[%c0_261, %c0_262] : memref<8x128xf32, #tpu.memory_space<vmem>>, vector<8x128xf32>
    tpu.vector_store %arg8[%c0_261, %c0_262], %385 {strides = array<i32>} : memref<8x128xf32, #tpu.memory_space<vmem>>, vector<8x128xf32>,
    %c0_263 = arith.constant 0 : index
    %c0_264 = arith.constant 0 : index
    %387 = vector.load %arg6[%c0_263, %c0_264] : memref<8x32xf32, #tpu.memory_space<vmem>>, vector<8x32xf32>
    %c0_265 = arith.constant 0 : index
    %c0_266 = arith.constant 0 : index
    %388 = vector.load %arg8[%c0_265, %c0_266] : memref<8x128xf32, #tpu.memory_space<vmem>>, vector<8x32xf32>
    tpu.vector_store %arg8[%c0_265, %c0_266], %387 {strides = array<i32>} : memref<8x128xf32, #tpu.memory_space<vmem>>, vector<8x32xf32>,
    %c0_267 = arith.constant 0 : index
    %c0_268 = arith.constant 0 : index
    %389 = vector.load %arg8[%c0_267, %c0_268] : memref<8x128xf32, #tpu.memory_space<vmem>>, vector<8x128xf32>
    %c0_269 = arith.constant 0 : index
    %c0_270 = arith.constant 0 : index
    %390 = vector.load %arg2[%c0_269, %c0_270] : memref<128x128xf32, #tpu.memory_space<vmem>>, vector<128x128xf32>
    %cst_271 = arith.constant dense<0.000000e+00> : vector<8x128xf32>
    %391 = tpu.matmul %389, %390, %cst_271 {dimension_numbers = #tpu.dot_dimension_numbers<[1], [0], [0], [1], [0, 0, 1, 1], [], []>} : vector<8x128xf32>, vector<128x128xf32>, vector<8x128xf32> -> vector<8x128xf32>
    %392 = arith.negf %391 : vector<8x128xf32>
    %393 = math.exp %392 : vector<8x128xf32>
    %cst_272 = arith.constant 1.000000e+00 : f32
    %394 = vector.broadcast %cst_272 : f32 to vector<8x128xf32>
    %395 = arith.addf %394, %393 : vector<8x128xf32>
    %396 = arith.divf %394, %395 : vector<8x128xf32>
    %397 = vector.extract_strided_slice %396 {offsets = [0, 0], sizes = [8, 32], strides = [1, 1]} : vector<8x128xf32> to vector<8x32xf32>
    %398 = vector.extract_strided_slice %396 {offsets = [0, 32], sizes = [8, 32], strides = [1, 1]} : vector<8x128xf32> to vector<8x32xf32>
    %399 = vector.extract_strided_slice %396 {offsets = [0, 64], sizes = [8, 32], strides = [1, 1]} : vector<8x128xf32> to vector<8x32xf32>
    %400 = vector.extract_strided_slice %396 {offsets = [0, 96], sizes = [8, 32], strides = [1, 1]} : vector<8x128xf32> to vector<8x32xf32>
    %cst_273 = arith.constant 2.000000e+00 : f32
    %401 = vector.broadcast %cst_273 : f32 to vector<8x32xf32>
    %402 = arith.mulf %401, %400 : vector<8x32xf32>
    %cst_274 = arith.constant 1.000000e+00 : f32
    %403 = vector.broadcast %cst_274 : f32 to vector<8x32xf32>
    %404 = arith.subf %402, %403 : vector<8x32xf32>
    %c0_275 = arith.constant 0 : index
    %c0_276 = arith.constant 0 : index
    %405 = vector.load %arg7[%c0_275, %c0_276] : memref<8x32xf32, #tpu.memory_space<vmem>>, vector<8x32xf32>
    %406 = arith.mulf %398, %405 : vector<8x32xf32>
    %407 = arith.mulf %397, %404 : vector<8x32xf32>
    %408 = arith.addf %406, %407 : vector<8x32xf32>
    %409 = math.tanh %408 : vector<8x32xf32>
    %410 = arith.mulf %399, %409 : vector<8x32xf32>
    %c0_277 = arith.constant 0 : index
    %c0_278 = arith.constant 0 : index
    %411 = vector.load %arg6[%c0_277, %c0_278] : memref<8x32xf32, #tpu.memory_space<vmem>>, vector<8x32xf32>
    tpu.vector_store %arg6[%c0_277, %c0_278], %410 {strides = array<i32>} : memref<8x32xf32, #tpu.memory_space<vmem>>, vector<8x32xf32>,
    %c0_279 = arith.constant 0 : index
    %c0_280 = arith.constant 0 : index
    %412 = vector.load %arg7[%c0_279, %c0_280] : memref<8x32xf32, #tpu.memory_space<vmem>>, vector<8x32xf32>
    tpu.vector_store %arg7[%c0_279, %c0_280], %408 {strides = array<i32>} : memref<8x32xf32, #tpu.memory_space<vmem>>, vector<8x32xf32>,
    %413 = arith.index_cast %c10_i32 : i32 to index
    %c0_281 = arith.constant 0 : index
    %c0_282 = arith.constant 0 : index
    %414 = vector.load %arg5[%413, %c0_281, %c0_282] : memref<16x8x64xf32, #tpu.memory_space<vmem>>, vector<1x8x32xf32>
    %415 = vector.shape_cast %414 : vector<1x8x32xf32> to vector<8x32xf32>
    %416 = vector.shape_cast %410 : vector<8x32xf32> to vector<1x8x32xf32>
    tpu.vector_store %arg5[%413, %c0_281, %c0_282], %416 {strides = array<i32>} : memref<16x8x64xf32, #tpu.memory_space<vmem>>, vector<1x8x32xf32>,
    %417 = arith.index_cast %c10_i32 : i32 to index
    %c0_283 = arith.constant 0 : index
    %c32_284 = arith.constant 32 : index
    %418 = vector.load %arg5[%417, %c0_283, %c32_284] : memref<16x8x64xf32, #tpu.memory_space<vmem>>, vector<1x8x32xf32>
    %419 = vector.shape_cast %418 : vector<1x8x32xf32> to vector<8x32xf32>
    %420 = vector.shape_cast %408 : vector<8x32xf32> to vector<1x8x32xf32>
    tpu.vector_store %arg5[%417, %c0_283, %c32_284], %420 {strides = array<i32>} : memref<16x8x64xf32, #tpu.memory_space<vmem>>, vector<1x8x32xf32>,
    %c11_i32 = arith.constant 11 : i32
    %421 = arith.index_cast %c11_i32 : i32 to index
    %c0_285 = arith.constant 0 : index
    %c0_286 = arith.constant 0 : index
    %422 = vector.load %arg1[%421, %c0_285, %c0_286] : memref<16x8x128xf32, #tpu.memory_space<vmem>>, vector<1x8x128xf32>
    %423 = vector.shape_cast %422 : vector<1x8x128xf32> to vector<8x128xf32>
    %c0_287 = arith.constant 0 : index
    %c0_288 = arith.constant 0 : index
    %424 = vector.load %arg8[%c0_287, %c0_288] : memref<8x128xf32, #tpu.memory_space<vmem>>, vector<8x128xf32>
    tpu.vector_store %arg8[%c0_287, %c0_288], %423 {strides = array<i32>} : memref<8x128xf32, #tpu.memory_space<vmem>>, vector<8x128xf32>,
    %c0_289 = arith.constant 0 : index
    %c0_290 = arith.constant 0 : index
    %425 = vector.load %arg6[%c0_289, %c0_290] : memref<8x32xf32, #tpu.memory_space<vmem>>, vector<8x32xf32>
    %c0_291 = arith.constant 0 : index
    %c0_292 = arith.constant 0 : index
    %426 = vector.load %arg8[%c0_291, %c0_292] : memref<8x128xf32, #tpu.memory_space<vmem>>, vector<8x32xf32>
    tpu.vector_store %arg8[%c0_291, %c0_292], %425 {strides = array<i32>} : memref<8x128xf32, #tpu.memory_space<vmem>>, vector<8x32xf32>,
    %c0_293 = arith.constant 0 : index
    %c0_294 = arith.constant 0 : index
    %427 = vector.load %arg8[%c0_293, %c0_294] : memref<8x128xf32, #tpu.memory_space<vmem>>, vector<8x128xf32>
    %c0_295 = arith.constant 0 : index
    %c0_296 = arith.constant 0 : index
    %428 = vector.load %arg2[%c0_295, %c0_296] : memref<128x128xf32, #tpu.memory_space<vmem>>, vector<128x128xf32>
    %cst_297 = arith.constant dense<0.000000e+00> : vector<8x128xf32>
    %429 = tpu.matmul %427, %428, %cst_297 {dimension_numbers = #tpu.dot_dimension_numbers<[1], [0], [0], [1], [0, 0, 1, 1], [], []>} : vector<8x128xf32>, vector<128x128xf32>, vector<8x128xf32> -> vector<8x128xf32>
    %430 = arith.negf %429 : vector<8x128xf32>
    %431 = math.exp %430 : vector<8x128xf32>
    %cst_298 = arith.constant 1.000000e+00 : f32
    %432 = vector.broadcast %cst_298 : f32 to vector<8x128xf32>
    %433 = arith.addf %432, %431 : vector<8x128xf32>
    %434 = arith.divf %432, %433 : vector<8x128xf32>
    %435 = vector.extract_strided_slice %434 {offsets = [0, 0], sizes = [8, 32], strides = [1, 1]} : vector<8x128xf32> to vector<8x32xf32>
    %436 = vector.extract_strided_slice %434 {offsets = [0, 32], sizes = [8, 32], strides = [1, 1]} : vector<8x128xf32> to vector<8x32xf32>
    %437 = vector.extract_strided_slice %434 {offsets = [0, 64], sizes = [8, 32], strides = [1, 1]} : vector<8x128xf32> to vector<8x32xf32>
    %438 = vector.extract_strided_slice %434 {offsets = [0, 96], sizes = [8, 32], strides = [1, 1]} : vector<8x128xf32> to vector<8x32xf32>
    %cst_299 = arith.constant 2.000000e+00 : f32
    %439 = vector.broadcast %cst_299 : f32 to vector<8x32xf32>
    %440 = arith.mulf %439, %438 : vector<8x32xf32>
    %cst_300 = arith.constant 1.000000e+00 : f32
    %441 = vector.broadcast %cst_300 : f32 to vector<8x32xf32>
    %442 = arith.subf %440, %441 : vector<8x32xf32>
    %c0_301 = arith.constant 0 : index
    %c0_302 = arith.constant 0 : index
    %443 = vector.load %arg7[%c0_301, %c0_302] : memref<8x32xf32, #tpu.memory_space<vmem>>, vector<8x32xf32>
    %444 = arith.mulf %436, %443 : vector<8x32xf32>
    %445 = arith.mulf %435, %442 : vector<8x32xf32>
    %446 = arith.addf %444, %445 : vector<8x32xf32>
    %447 = math.tanh %446 : vector<8x32xf32>
    %448 = arith.mulf %437, %447 : vector<8x32xf32>
    %c0_303 = arith.constant 0 : index
    %c0_304 = arith.constant 0 : index
    %449 = vector.load %arg6[%c0_303, %c0_304] : memref<8x32xf32, #tpu.memory_space<vmem>>, vector<8x32xf32>
    tpu.vector_store %arg6[%c0_303, %c0_304], %448 {strides = array<i32>} : memref<8x32xf32, #tpu.memory_space<vmem>>, vector<8x32xf32>,
    %c0_305 = arith.constant 0 : index
    %c0_306 = arith.constant 0 : index
    %450 = vector.load %arg7[%c0_305, %c0_306] : memref<8x32xf32, #tpu.memory_space<vmem>>, vector<8x32xf32>
    tpu.vector_store %arg7[%c0_305, %c0_306], %446 {strides = array<i32>} : memref<8x32xf32, #tpu.memory_space<vmem>>, vector<8x32xf32>,
    %451 = arith.index_cast %c11_i32 : i32 to index
    %c0_307 = arith.constant 0 : index
    %c0_308 = arith.constant 0 : index
    %452 = vector.load %arg5[%451, %c0_307, %c0_308] : memref<16x8x64xf32, #tpu.memory_space<vmem>>, vector<1x8x32xf32>
    %453 = vector.shape_cast %452 : vector<1x8x32xf32> to vector<8x32xf32>
    %454 = vector.shape_cast %448 : vector<8x32xf32> to vector<1x8x32xf32>
    tpu.vector_store %arg5[%451, %c0_307, %c0_308], %454 {strides = array<i32>} : memref<16x8x64xf32, #tpu.memory_space<vmem>>, vector<1x8x32xf32>,
    %455 = arith.index_cast %c11_i32 : i32 to index
    %c0_309 = arith.constant 0 : index
    %c32_310 = arith.constant 32 : index
    %456 = vector.load %arg5[%455, %c0_309, %c32_310] : memref<16x8x64xf32, #tpu.memory_space<vmem>>, vector<1x8x32xf32>
    %457 = vector.shape_cast %456 : vector<1x8x32xf32> to vector<8x32xf32>
    %458 = vector.shape_cast %446 : vector<8x32xf32> to vector<1x8x32xf32>
    tpu.vector_store %arg5[%455, %c0_309, %c32_310], %458 {strides = array<i32>} : memref<16x8x64xf32, #tpu.memory_space<vmem>>, vector<1x8x32xf32>,
    %c12_i32 = arith.constant 12 : i32
    %459 = arith.index_cast %c12_i32 : i32 to index
    %c0_311 = arith.constant 0 : index
    %c0_312 = arith.constant 0 : index
    %460 = vector.load %arg1[%459, %c0_311, %c0_312] : memref<16x8x128xf32, #tpu.memory_space<vmem>>, vector<1x8x128xf32>
    %461 = vector.shape_cast %460 : vector<1x8x128xf32> to vector<8x128xf32>
    %c0_313 = arith.constant 0 : index
    %c0_314 = arith.constant 0 : index
    %462 = vector.load %arg8[%c0_313, %c0_314] : memref<8x128xf32, #tpu.memory_space<vmem>>, vector<8x128xf32>
    tpu.vector_store %arg8[%c0_313, %c0_314], %461 {strides = array<i32>} : memref<8x128xf32, #tpu.memory_space<vmem>>, vector<8x128xf32>,
    %c0_315 = arith.constant 0 : index
    %c0_316 = arith.constant 0 : index
    %463 = vector.load %arg6[%c0_315, %c0_316] : memref<8x32xf32, #tpu.memory_space<vmem>>, vector<8x32xf32>
    %c0_317 = arith.constant 0 : index
    %c0_318 = arith.constant 0 : index
    %464 = vector.load %arg8[%c0_317, %c0_318] : memref<8x128xf32, #tpu.memory_space<vmem>>, vector<8x32xf32>
    tpu.vector_store %arg8[%c0_317, %c0_318], %463 {strides = array<i32>} : memref<8x128xf32, #tpu.memory_space<vmem>>, vector<8x32xf32>,
    %c0_319 = arith.constant 0 : index
    %c0_320 = arith.constant 0 : index
    %465 = vector.load %arg8[%c0_319, %c0_320] : memref<8x128xf32, #tpu.memory_space<vmem>>, vector<8x128xf32>
    %c0_321 = arith.constant 0 : index
    %c0_322 = arith.constant 0 : index
    %466 = vector.load %arg2[%c0_321, %c0_322] : memref<128x128xf32, #tpu.memory_space<vmem>>, vector<128x128xf32>
    %cst_323 = arith.constant dense<0.000000e+00> : vector<8x128xf32>
    %467 = tpu.matmul %465, %466, %cst_323 {dimension_numbers = #tpu.dot_dimension_numbers<[1], [0], [0], [1], [0, 0, 1, 1], [], []>} : vector<8x128xf32>, vector<128x128xf32>, vector<8x128xf32> -> vector<8x128xf32>
    %468 = arith.negf %467 : vector<8x128xf32>
    %469 = math.exp %468 : vector<8x128xf32>
    %cst_324 = arith.constant 1.000000e+00 : f32
    %470 = vector.broadcast %cst_324 : f32 to vector<8x128xf32>
    %471 = arith.addf %470, %469 : vector<8x128xf32>
    %472 = arith.divf %470, %471 : vector<8x128xf32>
    %473 = vector.extract_strided_slice %472 {offsets = [0, 0], sizes = [8, 32], strides = [1, 1]} : vector<8x128xf32> to vector<8x32xf32>
    %474 = vector.extract_strided_slice %472 {offsets = [0, 32], sizes = [8, 32], strides = [1, 1]} : vector<8x128xf32> to vector<8x32xf32>
    %475 = vector.extract_strided_slice %472 {offsets = [0, 64], sizes = [8, 32], strides = [1, 1]} : vector<8x128xf32> to vector<8x32xf32>
    %476 = vector.extract_strided_slice %472 {offsets = [0, 96], sizes = [8, 32], strides = [1, 1]} : vector<8x128xf32> to vector<8x32xf32>
    %cst_325 = arith.constant 2.000000e+00 : f32
    %477 = vector.broadcast %cst_325 : f32 to vector<8x32xf32>
    %478 = arith.mulf %477, %476 : vector<8x32xf32>
    %cst_326 = arith.constant 1.000000e+00 : f32
    %479 = vector.broadcast %cst_326 : f32 to vector<8x32xf32>
    %480 = arith.subf %478, %479 : vector<8x32xf32>
    %c0_327 = arith.constant 0 : index
    %c0_328 = arith.constant 0 : index
    %481 = vector.load %arg7[%c0_327, %c0_328] : memref<8x32xf32, #tpu.memory_space<vmem>>, vector<8x32xf32>
    %482 = arith.mulf %474, %481 : vector<8x32xf32>
    %483 = arith.mulf %473, %480 : vector<8x32xf32>
    %484 = arith.addf %482, %483 : vector<8x32xf32>
    %485 = math.tanh %484 : vector<8x32xf32>
    %486 = arith.mulf %475, %485 : vector<8x32xf32>
    %c0_329 = arith.constant 0 : index
    %c0_330 = arith.constant 0 : index
    %487 = vector.load %arg6[%c0_329, %c0_330] : memref<8x32xf32, #tpu.memory_space<vmem>>, vector<8x32xf32>
    tpu.vector_store %arg6[%c0_329, %c0_330], %486 {strides = array<i32>} : memref<8x32xf32, #tpu.memory_space<vmem>>, vector<8x32xf32>,
    %c0_331 = arith.constant 0 : index
    %c0_332 = arith.constant 0 : index
    %488 = vector.load %arg7[%c0_331, %c0_332] : memref<8x32xf32, #tpu.memory_space<vmem>>, vector<8x32xf32>
    tpu.vector_store %arg7[%c0_331, %c0_332], %484 {strides = array<i32>} : memref<8x32xf32, #tpu.memory_space<vmem>>, vector<8x32xf32>,
    %489 = arith.index_cast %c12_i32 : i32 to index
    %c0_333 = arith.constant 0 : index
    %c0_334 = arith.constant 0 : index
    %490 = vector.load %arg5[%489, %c0_333, %c0_334] : memref<16x8x64xf32, #tpu.memory_space<vmem>>, vector<1x8x32xf32>
    %491 = vector.shape_cast %490 : vector<1x8x32xf32> to vector<8x32xf32>
    %492 = vector.shape_cast %486 : vector<8x32xf32> to vector<1x8x32xf32>
    tpu.vector_store %arg5[%489, %c0_333, %c0_334], %492 {strides = array<i32>} : memref<16x8x64xf32, #tpu.memory_space<vmem>>, vector<1x8x32xf32>,
    %493 = arith.index_cast %c12_i32 : i32 to index
    %c0_335 = arith.constant 0 : index
    %c32_336 = arith.constant 32 : index
    %494 = vector.load %arg5[%493, %c0_335, %c32_336] : memref<16x8x64xf32, #tpu.memory_space<vmem>>, vector<1x8x32xf32>
    %495 = vector.shape_cast %494 : vector<1x8x32xf32> to vector<8x32xf32>
    %496 = vector.shape_cast %484 : vector<8x32xf32> to vector<1x8x32xf32>
    tpu.vector_store %arg5[%493, %c0_335, %c32_336], %496 {strides = array<i32>} : memref<16x8x64xf32, #tpu.memory_space<vmem>>, vector<1x8x32xf32>,
    %c13_i32 = arith.constant 13 : i32
    %497 = arith.index_cast %c13_i32 : i32 to index
    %c0_337 = arith.constant 0 : index
    %c0_338 = arith.constant 0 : index
    %498 = vector.load %arg1[%497, %c0_337, %c0_338] : memref<16x8x128xf32, #tpu.memory_space<vmem>>, vector<1x8x128xf32>
    %499 = vector.shape_cast %498 : vector<1x8x128xf32> to vector<8x128xf32>
    %c0_339 = arith.constant 0 : index
    %c0_340 = arith.constant 0 : index
    %500 = vector.load %arg8[%c0_339, %c0_340] : memref<8x128xf32, #tpu.memory_space<vmem>>, vector<8x128xf32>
    tpu.vector_store %arg8[%c0_339, %c0_340], %499 {strides = array<i32>} : memref<8x128xf32, #tpu.memory_space<vmem>>, vector<8x128xf32>,
    %c0_341 = arith.constant 0 : index
    %c0_342 = arith.constant 0 : index
    %501 = vector.load %arg6[%c0_341, %c0_342] : memref<8x32xf32, #tpu.memory_space<vmem>>, vector<8x32xf32>
    %c0_343 = arith.constant 0 : index
    %c0_344 = arith.constant 0 : index
    %502 = vector.load %arg8[%c0_343, %c0_344] : memref<8x128xf32, #tpu.memory_space<vmem>>, vector<8x32xf32>
    tpu.vector_store %arg8[%c0_343, %c0_344], %501 {strides = array<i32>} : memref<8x128xf32, #tpu.memory_space<vmem>>, vector<8x32xf32>,
    %c0_345 = arith.constant 0 : index
    %c0_346 = arith.constant 0 : index
    %503 = vector.load %arg8[%c0_345, %c0_346] : memref<8x128xf32, #tpu.memory_space<vmem>>, vector<8x128xf32>
    %c0_347 = arith.constant 0 : index
    %c0_348 = arith.constant 0 : index
    %504 = vector.load %arg2[%c0_347, %c0_348] : memref<128x128xf32, #tpu.memory_space<vmem>>, vector<128x128xf32>
    %cst_349 = arith.constant dense<0.000000e+00> : vector<8x128xf32>
    %505 = tpu.matmul %503, %504, %cst_349 {dimension_numbers = #tpu.dot_dimension_numbers<[1], [0], [0], [1], [0, 0, 1, 1], [], []>} : vector<8x128xf32>, vector<128x128xf32>, vector<8x128xf32> -> vector<8x128xf32>
    %506 = arith.negf %505 : vector<8x128xf32>
    %507 = math.exp %506 : vector<8x128xf32>
    %cst_350 = arith.constant 1.000000e+00 : f32
    %508 = vector.broadcast %cst_350 : f32 to vector<8x128xf32>
    %509 = arith.addf %508, %507 : vector<8x128xf32>
    %510 = arith.divf %508, %509 : vector<8x128xf32>
    %511 = vector.extract_strided_slice %510 {offsets = [0, 0], sizes = [8, 32], strides = [1, 1]} : vector<8x128xf32> to vector<8x32xf32>
    %512 = vector.extract_strided_slice %510 {offsets = [0, 32], sizes = [8, 32], strides = [1, 1]} : vector<8x128xf32> to vector<8x32xf32>
    %513 = vector.extract_strided_slice %510 {offsets = [0, 64], sizes = [8, 32], strides = [1, 1]} : vector<8x128xf32> to vector<8x32xf32>
    %514 = vector.extract_strided_slice %510 {offsets = [0, 96], sizes = [8, 32], strides = [1, 1]} : vector<8x128xf32> to vector<8x32xf32>
    %cst_351 = arith.constant 2.000000e+00 : f32
    %515 = vector.broadcast %cst_351 : f32 to vector<8x32xf32>
    %516 = arith.mulf %515, %514 : vector<8x32xf32>
    %cst_352 = arith.constant 1.000000e+00 : f32
    %517 = vector.broadcast %cst_352 : f32 to vector<8x32xf32>
    %518 = arith.subf %516, %517 : vector<8x32xf32>
    %c0_353 = arith.constant 0 : index
    %c0_354 = arith.constant 0 : index
    %519 = vector.load %arg7[%c0_353, %c0_354] : memref<8x32xf32, #tpu.memory_space<vmem>>, vector<8x32xf32>
    %520 = arith.mulf %512, %519 : vector<8x32xf32>
    %521 = arith.mulf %511, %518 : vector<8x32xf32>
    %522 = arith.addf %520, %521 : vector<8x32xf32>
    %523 = math.tanh %522 : vector<8x32xf32>
    %524 = arith.mulf %513, %523 : vector<8x32xf32>
    %c0_355 = arith.constant 0 : index
    %c0_356 = arith.constant 0 : index
    %525 = vector.load %arg6[%c0_355, %c0_356] : memref<8x32xf32, #tpu.memory_space<vmem>>, vector<8x32xf32>
    tpu.vector_store %arg6[%c0_355, %c0_356], %524 {strides = array<i32>} : memref<8x32xf32, #tpu.memory_space<vmem>>, vector<8x32xf32>,
    %c0_357 = arith.constant 0 : index
    %c0_358 = arith.constant 0 : index
    %526 = vector.load %arg7[%c0_357, %c0_358] : memref<8x32xf32, #tpu.memory_space<vmem>>, vector<8x32xf32>
    tpu.vector_store %arg7[%c0_357, %c0_358], %522 {strides = array<i32>} : memref<8x32xf32, #tpu.memory_space<vmem>>, vector<8x32xf32>,
    %527 = arith.index_cast %c13_i32 : i32 to index
    %c0_359 = arith.constant 0 : index
    %c0_360 = arith.constant 0 : index
    %528 = vector.load %arg5[%527, %c0_359, %c0_360] : memref<16x8x64xf32, #tpu.memory_space<vmem>>, vector<1x8x32xf32>
    %529 = vector.shape_cast %528 : vector<1x8x32xf32> to vector<8x32xf32>
    %530 = vector.shape_cast %524 : vector<8x32xf32> to vector<1x8x32xf32>
    tpu.vector_store %arg5[%527, %c0_359, %c0_360], %530 {strides = array<i32>} : memref<16x8x64xf32, #tpu.memory_space<vmem>>, vector<1x8x32xf32>,
    %531 = arith.index_cast %c13_i32 : i32 to index
    %c0_361 = arith.constant 0 : index
    %c32_362 = arith.constant 32 : index
    %532 = vector.load %arg5[%531, %c0_361, %c32_362] : memref<16x8x64xf32, #tpu.memory_space<vmem>>, vector<1x8x32xf32>
    %533 = vector.shape_cast %532 : vector<1x8x32xf32> to vector<8x32xf32>
    %534 = vector.shape_cast %522 : vector<8x32xf32> to vector<1x8x32xf32>
    tpu.vector_store %arg5[%531, %c0_361, %c32_362], %534 {strides = array<i32>} : memref<16x8x64xf32, #tpu.memory_space<vmem>>, vector<1x8x32xf32>,
    %c14_i32 = arith.constant 14 : i32
    %535 = arith.index_cast %c14_i32 : i32 to index
    %c0_363 = arith.constant 0 : index
    %c0_364 = arith.constant 0 : index
    %536 = vector.load %arg1[%535, %c0_363, %c0_364] : memref<16x8x128xf32, #tpu.memory_space<vmem>>, vector<1x8x128xf32>
    %537 = vector.shape_cast %536 : vector<1x8x128xf32> to vector<8x128xf32>
    %c0_365 = arith.constant 0 : index
    %c0_366 = arith.constant 0 : index
    %538 = vector.load %arg8[%c0_365, %c0_366] : memref<8x128xf32, #tpu.memory_space<vmem>>, vector<8x128xf32>
    tpu.vector_store %arg8[%c0_365, %c0_366], %537 {strides = array<i32>} : memref<8x128xf32, #tpu.memory_space<vmem>>, vector<8x128xf32>,
    %c0_367 = arith.constant 0 : index
    %c0_368 = arith.constant 0 : index
    %539 = vector.load %arg6[%c0_367, %c0_368] : memref<8x32xf32, #tpu.memory_space<vmem>>, vector<8x32xf32>
    %c0_369 = arith.constant 0 : index
    %c0_370 = arith.constant 0 : index
    %540 = vector.load %arg8[%c0_369, %c0_370] : memref<8x128xf32, #tpu.memory_space<vmem>>, vector<8x32xf32>
    tpu.vector_store %arg8[%c0_369, %c0_370], %539 {strides = array<i32>} : memref<8x128xf32, #tpu.memory_space<vmem>>, vector<8x32xf32>,
    %c0_371 = arith.constant 0 : index
    %c0_372 = arith.constant 0 : index
    %541 = vector.load %arg8[%c0_371, %c0_372] : memref<8x128xf32, #tpu.memory_space<vmem>>, vector<8x128xf32>
    %c0_373 = arith.constant 0 : index
    %c0_374 = arith.constant 0 : index
    %542 = vector.load %arg2[%c0_373, %c0_374] : memref<128x128xf32, #tpu.memory_space<vmem>>, vector<128x128xf32>
    %cst_375 = arith.constant dense<0.000000e+00> : vector<8x128xf32>
    %543 = tpu.matmul %541, %542, %cst_375 {dimension_numbers = #tpu.dot_dimension_numbers<[1], [0], [0], [1], [0, 0, 1, 1], [], []>} : vector<8x128xf32>, vector<128x128xf32>, vector<8x128xf32> -> vector<8x128xf32>
    %544 = arith.negf %543 : vector<8x128xf32>
    %545 = math.exp %544 : vector<8x128xf32>
    %cst_376 = arith.constant 1.000000e+00 : f32
    %546 = vector.broadcast %cst_376 : f32 to vector<8x128xf32>
    %547 = arith.addf %546, %545 : vector<8x128xf32>
    %548 = arith.divf %546, %547 : vector<8x128xf32>
    %549 = vector.extract_strided_slice %548 {offsets = [0, 0], sizes = [8, 32], strides = [1, 1]} : vector<8x128xf32> to vector<8x32xf32>
    %550 = vector.extract_strided_slice %548 {offsets = [0, 32], sizes = [8, 32], strides = [1, 1]} : vector<8x128xf32> to vector<8x32xf32>
    %551 = vector.extract_strided_slice %548 {offsets = [0, 64], sizes = [8, 32], strides = [1, 1]} : vector<8x128xf32> to vector<8x32xf32>
    %552 = vector.extract_strided_slice %548 {offsets = [0, 96], sizes = [8, 32], strides = [1, 1]} : vector<8x128xf32> to vector<8x32xf32>
    %cst_377 = arith.constant 2.000000e+00 : f32
    %553 = vector.broadcast %cst_377 : f32 to vector<8x32xf32>
    %554 = arith.mulf %553, %552 : vector<8x32xf32>
    %cst_378 = arith.constant 1.000000e+00 : f32
    %555 = vector.broadcast %cst_378 : f32 to vector<8x32xf32>
    %556 = arith.subf %554, %555 : vector<8x32xf32>
    %c0_379 = arith.constant 0 : index
    %c0_380 = arith.constant 0 : index
    %557 = vector.load %arg7[%c0_379, %c0_380] : memref<8x32xf32, #tpu.memory_space<vmem>>, vector<8x32xf32>
    %558 = arith.mulf %550, %557 : vector<8x32xf32>
    %559 = arith.mulf %549, %556 : vector<8x32xf32>
    %560 = arith.addf %558, %559 : vector<8x32xf32>
    %561 = math.tanh %560 : vector<8x32xf32>
    %562 = arith.mulf %551, %561 : vector<8x32xf32>
    %c0_381 = arith.constant 0 : index
    %c0_382 = arith.constant 0 : index
    %563 = vector.load %arg6[%c0_381, %c0_382] : memref<8x32xf32, #tpu.memory_space<vmem>>, vector<8x32xf32>
    tpu.vector_store %arg6[%c0_381, %c0_382], %562 {strides = array<i32>} : memref<8x32xf32, #tpu.memory_space<vmem>>, vector<8x32xf32>,
    %c0_383 = arith.constant 0 : index
    %c0_384 = arith.constant 0 : index
    %564 = vector.load %arg7[%c0_383, %c0_384] : memref<8x32xf32, #tpu.memory_space<vmem>>, vector<8x32xf32>
    tpu.vector_store %arg7[%c0_383, %c0_384], %560 {strides = array<i32>} : memref<8x32xf32, #tpu.memory_space<vmem>>, vector<8x32xf32>,
    %565 = arith.index_cast %c14_i32 : i32 to index
    %c0_385 = arith.constant 0 : index
    %c0_386 = arith.constant 0 : index
    %566 = vector.load %arg5[%565, %c0_385, %c0_386] : memref<16x8x64xf32, #tpu.memory_space<vmem>>, vector<1x8x32xf32>
    %567 = vector.shape_cast %566 : vector<1x8x32xf32> to vector<8x32xf32>
    %568 = vector.shape_cast %562 : vector<8x32xf32> to vector<1x8x32xf32>
    tpu.vector_store %arg5[%565, %c0_385, %c0_386], %568 {strides = array<i32>} : memref<16x8x64xf32, #tpu.memory_space<vmem>>, vector<1x8x32xf32>,
    %569 = arith.index_cast %c14_i32 : i32 to index
    %c0_387 = arith.constant 0 : index
    %c32_388 = arith.constant 32 : index
    %570 = vector.load %arg5[%569, %c0_387, %c32_388] : memref<16x8x64xf32, #tpu.memory_space<vmem>>, vector<1x8x32xf32>
    %571 = vector.shape_cast %570 : vector<1x8x32xf32> to vector<8x32xf32>
    %572 = vector.shape_cast %560 : vector<8x32xf32> to vector<1x8x32xf32>
    tpu.vector_store %arg5[%569, %c0_387, %c32_388], %572 {strides = array<i32>} : memref<16x8x64xf32, #tpu.memory_space<vmem>>, vector<1x8x32xf32>,
    %c15_i32 = arith.constant 15 : i32
    %573 = arith.index_cast %c15_i32 : i32 to index
    %c0_389 = arith.constant 0 : index
    %c0_390 = arith.constant 0 : index
    %574 = vector.load %arg1[%573, %c0_389, %c0_390] : memref<16x8x128xf32, #tpu.memory_space<vmem>>, vector<1x8x128xf32>
    %575 = vector.shape_cast %574 : vector<1x8x128xf32> to vector<8x128xf32>
    %c0_391 = arith.constant 0 : index
    %c0_392 = arith.constant 0 : index
    %576 = vector.load %arg8[%c0_391, %c0_392] : memref<8x128xf32, #tpu.memory_space<vmem>>, vector<8x128xf32>
    tpu.vector_store %arg8[%c0_391, %c0_392], %575 {strides = array<i32>} : memref<8x128xf32, #tpu.memory_space<vmem>>, vector<8x128xf32>,
    %c0_393 = arith.constant 0 : index
    %c0_394 = arith.constant 0 : index
    %577 = vector.load %arg6[%c0_393, %c0_394] : memref<8x32xf32, #tpu.memory_space<vmem>>, vector<8x32xf32>
    %c0_395 = arith.constant 0 : index
    %c0_396 = arith.constant 0 : index
    %578 = vector.load %arg8[%c0_395, %c0_396] : memref<8x128xf32, #tpu.memory_space<vmem>>, vector<8x32xf32>
    tpu.vector_store %arg8[%c0_395, %c0_396], %577 {strides = array<i32>} : memref<8x128xf32, #tpu.memory_space<vmem>>, vector<8x32xf32>,
    %c0_397 = arith.constant 0 : index
    %c0_398 = arith.constant 0 : index
    %579 = vector.load %arg8[%c0_397, %c0_398] : memref<8x128xf32, #tpu.memory_space<vmem>>, vector<8x128xf32>
    %c0_399 = arith.constant 0 : index
    %c0_400 = arith.constant 0 : index
    %580 = vector.load %arg2[%c0_399, %c0_400] : memref<128x128xf32, #tpu.memory_space<vmem>>, vector<128x128xf32>
    %cst_401 = arith.constant dense<0.000000e+00> : vector<8x128xf32>
    %581 = tpu.matmul %579, %580, %cst_401 {dimension_numbers = #tpu.dot_dimension_numbers<[1], [0], [0], [1], [0, 0, 1, 1], [], []>} : vector<8x128xf32>, vector<128x128xf32>, vector<8x128xf32> -> vector<8x128xf32>
    %582 = arith.negf %581 : vector<8x128xf32>
    %583 = math.exp %582 : vector<8x128xf32>
    %cst_402 = arith.constant 1.000000e+00 : f32
    %584 = vector.broadcast %cst_402 : f32 to vector<8x128xf32>
    %585 = arith.addf %584, %583 : vector<8x128xf32>
    %586 = arith.divf %584, %585 : vector<8x128xf32>
    %587 = vector.extract_strided_slice %586 {offsets = [0, 0], sizes = [8, 32], strides = [1, 1]} : vector<8x128xf32> to vector<8x32xf32>
    %588 = vector.extract_strided_slice %586 {offsets = [0, 32], sizes = [8, 32], strides = [1, 1]} : vector<8x128xf32> to vector<8x32xf32>
    %589 = vector.extract_strided_slice %586 {offsets = [0, 64], sizes = [8, 32], strides = [1, 1]} : vector<8x128xf32> to vector<8x32xf32>
    %590 = vector.extract_strided_slice %586 {offsets = [0, 96], sizes = [8, 32], strides = [1, 1]} : vector<8x128xf32> to vector<8x32xf32>
    %cst_403 = arith.constant 2.000000e+00 : f32
    %591 = vector.broadcast %cst_403 : f32 to vector<8x32xf32>
    %592 = arith.mulf %591, %590 : vector<8x32xf32>
    %cst_404 = arith.constant 1.000000e+00 : f32
    %593 = vector.broadcast %cst_404 : f32 to vector<8x32xf32>
    %594 = arith.subf %592, %593 : vector<8x32xf32>
    %c0_405 = arith.constant 0 : index
    %c0_406 = arith.constant 0 : index
    %595 = vector.load %arg7[%c0_405, %c0_406] : memref<8x32xf32, #tpu.memory_space<vmem>>, vector<8x32xf32>
    %596 = arith.mulf %588, %595 : vector<8x32xf32>
    %597 = arith.mulf %587, %594 : vector<8x32xf32>
    %598 = arith.addf %596, %597 : vector<8x32xf32>
    %599 = math.tanh %598 : vector<8x32xf32>
    %600 = arith.mulf %589, %599 : vector<8x32xf32>
    %c0_407 = arith.constant 0 : index
    %c0_408 = arith.constant 0 : index
    %601 = vector.load %arg6[%c0_407, %c0_408] : memref<8x32xf32, #tpu.memory_space<vmem>>, vector<8x32xf32>
    tpu.vector_store %arg6[%c0_407, %c0_408], %600 {strides = array<i32>} : memref<8x32xf32, #tpu.memory_space<vmem>>, vector<8x32xf32>,
    %c0_409 = arith.constant 0 : index
    %c0_410 = arith.constant 0 : index
    %602 = vector.load %arg7[%c0_409, %c0_410] : memref<8x32xf32, #tpu.memory_space<vmem>>, vector<8x32xf32>
    tpu.vector_store %arg7[%c0_409, %c0_410], %598 {strides = array<i32>} : memref<8x32xf32, #tpu.memory_space<vmem>>, vector<8x32xf32>,
    %603 = arith.index_cast %c15_i32 : i32 to index
    %c0_411 = arith.constant 0 : index
    %c0_412 = arith.constant 0 : index
    %604 = vector.load %arg5[%603, %c0_411, %c0_412] : memref<16x8x64xf32, #tpu.memory_space<vmem>>, vector<1x8x32xf32>
    %605 = vector.shape_cast %604 : vector<1x8x32xf32> to vector<8x32xf32>
    %606 = vector.shape_cast %600 : vector<8x32xf32> to vector<1x8x32xf32>
    tpu.vector_store %arg5[%603, %c0_411, %c0_412], %606 {strides = array<i32>} : memref<16x8x64xf32, #tpu.memory_space<vmem>>, vector<1x8x32xf32>,
    %607 = arith.index_cast %c15_i32 : i32 to index
    %c0_413 = arith.constant 0 : index
    %c32_414 = arith.constant 32 : index
    %608 = vector.load %arg5[%607, %c0_413, %c32_414] : memref<16x8x64xf32, #tpu.memory_space<vmem>>, vector<1x8x32xf32>
    %609 = vector.shape_cast %608 : vector<1x8x32xf32> to vector<8x32xf32>
    %610 = vector.shape_cast %598 : vector<8x32xf32> to vector<1x8x32xf32>
    tpu.vector_store %arg5[%607, %c0_413, %c32_414], %610 {strides = array<i32>} : memref<16x8x64xf32, #tpu.memory_space<vmem>>, vector<1x8x32xf32>,
    %c16_i32 = arith.constant 16 : i32
    return
  }
  func.func @transform_0(%arg0: i32) -> (i32, i32, i32) {
    %c0_i32 = arith.constant 0 : i32
    %c0_i32_0 = arith.constant 0 : i32
    %c0_i32_1 = arith.constant 0 : i32
    return %arg0, %c0_i32, %c0_i32_0 : i32, i32, i32
  }
  func.func @transform_1(%arg0: i32) -> (i32, i32) {
    %c0_i32 = arith.constant 0 : i32
    %c0_i32_0 = arith.constant 0 : i32
    %c0_i32_1 = arith.constant 0 : i32
    return %c0_i32, %c0_i32_0 : i32, i32
  }
  func.func @transform_2(%arg0: i32) -> (i32, i32) {
    %c0_i32 = arith.constant 0 : i32
    %c0_i32_0 = arith.constant 0 : i32
    %c0_i32_1 = arith.constant 0 : i32
    return %c0_i32, %c0_i32_0 : i32, i32
  }
  func.func @transform_3(%arg0: i32) -> (i32, i32) {
    %c0_i32 = arith.constant 0 : i32
    %c0_i32_0 = arith.constant 0 : i32
    %c0_i32_1 = arith.constant 0 : i32
    return %c0_i32, %c0_i32_0 : i32, i32
  }
  func.func @transform_4(%arg0: i32) -> (i32, i32, i32) {
    %c0_i32 = arith.constant 0 : i32
    %c0_i32_0 = arith.constant 0 : i32
    %c0_i32_1 = arith.constant 0 : i32
    return %arg0, %c0_i32, %c0_i32_0 : i32, i32, i32
  }
}

</mosaic_0001>

<bundles_post_ra>
// kernel: lstm_unit_forward_seq.1
= control target key start
LH: loop header
LB: loop body
LE: loop exit
PB: predicated region body
PF: predicated region fallthrough
CT: control target
= control target key end

     0   :  { %s2066_s15 = smov 0   ;;  %s2732_s0 = inlined_call_operand.vmem [shape: f32[32,8,128], index: 0, kind: input, shape index: {}]   ;;  %s2733_s1 = inlined_call_operand.vmem [shape: f32[128,128], index: 1, kind: input, shape index: {}]   ;;  %s2734_s2 = inlined_call_operand.vmem [shape: f32[8,32], index: 2, kind: input, shape index: {}]   ;;  %s2735_s3 = inlined_call_operand.vmem [shape: f32[8,32], index: 3, kind: input, shape index: {}]   ;;  %s2736_s4 = inlined_call_operand.vmem [shape: f32[32,8,64], index: 4, kind: output, shape index: {}]  }
   0x1 LB: > { %s1834_s16 = sadd.s32 4294967295, %s2036_s15   ;;  %p1838_p0 = scmp.ge.s32.totalorder %s2036_s15, 1  ;;  %s2036_s15 = sphi %s2066_s15, %s14_s15  }
   0x2   : > { %p163_p1 = scmp.lt.s32.totalorder %s2036_s15, 3 }
   0x4   : > { %p164_p2 = pnand %p1838_p0, %p163_p1 }
   0x5   : > { %s1839_s17 = sshll.u32 (!%p164_p2), %s1834_s16, 4  ;;  %p1843_p4 = scmp.ne.s32.totalorder (!%p164_p2), %s1834_s16, 0 }
   0x6   : > { %167 = sbr.rel (%p164_p2) target bundleno = 10055 (0x2747), region = 36  ;;  %p190_p3 = scmp.lt.s32.totalorder (!%p164_p2), %s1839_s17, 31 }
   0xb   : > { %s2738_s17 = smov (!%p190_p3, %s1839_s17), 31  ;;  %204 = sbr.rel (%p1843_p4) target bundleno = 19 (0x13), region = 40 }
   0xc   : > { %s1840_s18 = sshll.u32 %s2738_s17, 3 }
   0xd   : > { %s2077_s21 = scalar_lea.vmem %s2732_s0, %s1840_s18  ;;  %s2082_s24 = scalar_lea.vmem %s2736_s4, %s1840_s18 }
  0x10   : > { %v205_v0 = vld [vmem:[%s2734_s2] sm:$0xff]  ;;  %vm206_vm0 = vcmask 261120  }
  0x11   : > { %v208_v1 = vld [vmem:[%s2735_s3] sm:$0xff]  ;;  %207 = vst.msk [vmem:[#allocation2] sm:$0xff] %vm206_vm0, %v205_v0 }
  0x12   : > { %209 = vst.msk [vmem:[#allocation3] sm:$0xff] %vm206_vm0, %v208_v1 }
  0x13 PF: > { %v2093_v2 = vld [vmem:[%s2733_s1 + $0x78] sm:$0xff]  ;;  %v2098_v3 = vld [vmem:[%s2733_s1 + $0x70] sm:$0xff]  ;;  %v2105_v4 = vld [vmem:[%s2733_s1 + $0x68] sm:$0xff]  ;;  %vm213_vm1 = vcmask 261120   ;;  %s2038_s12 = smov 32   ;;  %s2039_s13 = smov 64  }
  0x14   : > { %232 = vmatpush.msra.mxu0 %v2093_v2  ;;  %330 = vmatpush.msra.mxu1 %v2093_v2  ;;  %v2114_v5 = vld [vmem:[%s2733_s1 + $0x60] sm:$0xff]  ;;  %v2124_v8 = vld [vmem:[%s2733_s1 + $0x58] sm:$0xff]  ;;  %v2134_v9 = vld [vmem:[%s2733_s1 + $0x50] sm:$0xff]  ;;  %s2040_s14 = smov 96   ;;  %vm306_vm6 = vcmask 523520  }
  0x15   : > { %428 = vmatpush.msra.mxu2 %v2093_v2  ;;  %526 = vmatpush.msra.mxu3 %v2093_v2  ;;  %v210_v6 = vld [vmem:[%s2077_s21] sm:$0xff]  ;;  %v2143_v10 = vld [vmem:[%s2733_s1 + $0x48] sm:$0xff]  ;;  %v2162_v13 = vld [vmem:[%s2733_s1 + $0x38] sm:$0xff] }
  0x16   : > { %233 = vmatpush.msra.mxu0 %v2098_v3  ;;  %331 = vmatpush.msra.mxu1 %v2098_v3  ;;  %211 = vst [vmem:[#allocation4] sm:$0xff] %v210_v6  ;;  %v2152_v11 = vld [vmem:[%s2733_s1 + $0x40] sm:$0xff]  ;;  %v1846_v12 = vld [vmem:[%s2077_s21 + $0x8] sm:$0xff]  ;;  %v2171_v15 = vld [vmem:[%s2733_s1 + $0x30] sm:$0xff] }
  0x17   : > { %429 = vmatpush.msra.mxu2 %v2098_v3  ;;  %527 = vmatpush.msra.mxu3 %v2098_v3  ;;  %v2180_v16 = vld [vmem:[%s2733_s1 + $0x28] sm:$0xff]  ;;  %v2189_v17 = vld [vmem:[%s2733_s1 + $0x20] sm:$0xff]  ;;  %v2198_v18 = vld [vmem:[%s2733_s1 + $0x18] sm:$0xff] }
  0x18   : > { %234 = vmatpush.msra.mxu0 %v2105_v4  ;;  %v212_v7 = vld [vmem:[#allocation2] sm:$0xff]  ;;  %332 = vmatpush.msra.mxu1 %v2105_v4  ;;  %v218_v19 = vld [vmem:[%s2733_s1 + $0x10] sm:$0xff]  ;;  %v217_v20 = vld [vmem:[%s2733_s1 + $0x8] sm:$0xff] }
  0x19   : > { %430 = vmatpush.msra.mxu2 %v2105_v4  ;;  %528 = vmatpush.msra.mxu3 %v2105_v4  ;;  %214 = vst.msk [vmem:[#allocation4] sm:$0xff] %vm213_vm1, %v212_v7  ;;  %v216_v21 = vld [vmem:[%s2733_s1] sm:$0xff]  ;;  %v273_v38 = vld [vmem:[#allocation3] sm:$0xff]  ;;  %v1851_v51 = vld [vmem:[%s2077_s21 + $0x10] sm:$0xff] }
  0x1a   : > { %235 = vmatpush.msra.mxu0 %v2114_v5  ;;  %333 = vmatpush.msra.mxu1 %v2114_v5 }
  0x1b   : > { %431 = vmatpush.msra.mxu2 %v2114_v5  ;;  %529 = vmatpush.msra.mxu3 %v2114_v5 }
  0x1c   : > { %236 = vmatpush.msra.mxu0 %v2124_v8  ;;  %334 = vmatpush.msra.mxu1 %v2124_v8 }
  0x1d   : > { %432 = vmatpush.msra.mxu2 %v2124_v8  ;;  %530 = vmatpush.msra.mxu3 %v2124_v8 }
  0x1e   : > { %237 = vmatpush.msra.mxu0 %v2134_v9  ;;  %335 = vmatpush.msra.mxu1 %v2134_v9 }
  0x1f   : > { %433 = vmatpush.msra.mxu2 %v2134_v9  ;;  %531 = vmatpush.msra.mxu3 %v2134_v9 }
  0x20   : > { %238 = vmatpush.msra.mxu0 %v2143_v10  ;;  %336 = vmatpush.msra.mxu1 %v2143_v10  ;;  %v215_v14 = vld [vmem:[#allocation4] sm:$0xff] }
  0x21   : > { %434 = vmatpush.msra.mxu2 %v2143_v10  ;;  %532 = vmatpush.msra.mxu3 %v2143_v10  ;;  %310 = vst [vmem:[#allocation4] sm:$0xff] %v1846_v12 }
  0x22   : > { %239 = vmatpush.msra.mxu0 %v2152_v11  ;;  %337 = vmatpush.msra.mxu1 %v2152_v11 }
  0x23   : > { %435 = vmatpush.msra.mxu2 %v2152_v11  ;;  %533 = vmatpush.msra.mxu3 %v2152_v11 }
  0x24   : > { %240 = vmatpush.msra.mxu0 %v2162_v13  ;;  %338 = vmatpush.msra.mxu1 %v2162_v13 }
  0x25   : > { %436 = vmatpush.msra.mxu2 %v2162_v13  ;;  %534 = vmatpush.msra.mxu3 %v2162_v13 }
  0x26   : > { %241 = vmatpush.msra.mxu0 %v2171_v15  ;;  %339 = vmatpush.msra.mxu1 %v2171_v15 }
  0x27   : > { %437 = vmatpush.msra.mxu2 %v2171_v15  ;;  %535 = vmatpush.msra.mxu3 %v2171_v15 }
  0x28   : > { %242 = vmatpush.msra.mxu0 %v2180_v16  ;;  %340 = vmatpush.msra.mxu1 %v2180_v16 }
  0x29   : > { %438 = vmatpush.msra.mxu2 %v2180_v16  ;;  %536 = vmatpush.msra.mxu3 %v2180_v16 }
  0x2a   : > { %243 = vmatpush.msra.mxu0 %v2189_v17  ;;  %341 = vmatpush.msra.mxu1 %v2189_v17 }
  0x2b   : > { %439 = vmatpush.msra.mxu2 %v2189_v17  ;;  %537 = vmatpush.msra.mxu3 %v2189_v17 }
  0x2c   : > { %244 = vmatpush.msra.mxu0 %v2198_v18  ;;  %342 = vmatpush.msra.mxu1 %v2198_v18 }
  0x2d   : > { %440 = vmatpush.msra.mxu2 %v2198_v18  ;;  %538 = vmatpush.msra.mxu3 %v2198_v18 }
  0x2e   : > { %245 = vmatpush.msra.mxu0 %v218_v19  ;;  %343 = vmatpush.msra.mxu1 %v218_v19 }
  0x2f   : > { %441 = vmatpush.msra.mxu2 %v218_v19  ;;  %539 = vmatpush.msra.mxu3 %v218_v19 }
  0x30   : > { %246 = vmatpush.msra.mxu0 %v217_v20  ;;  %344 = vmatpush.msra.mxu1 %v217_v20 }
  0x31   : > { %442 = vmatpush.msra.mxu2 %v217_v20  ;;  %540 = vmatpush.msra.mxu3 %v217_v20 }
  0x32   : > { %247 = vmatpush.msra.mxu0 %v216_v21  ;;  %345 = vmatpush.msra.mxu1 %v216_v21 }
  0x33   : > { %248 = vmatmul.f32.vlgmr.msra.gmra.mxu0 %v215_v14  ;;  %443 = vmatpush.msra.mxu2 %v216_v21 }
  0x34   : > { %541 = vmatpush.msra.mxu3 %v216_v21  ;;  %624 = vmatpush.msrb.mxu0 %v2093_v2 }
  0x35   : > { %722 = vmatpush.msrb.mxu1 %v2093_v2  ;;  %820 = vmatpush.msrb.mxu2 %v2093_v2 }
  0x36   : > { %625 = vmatpush.msrb.mxu0 %v2098_v3 }
  0x37   : > { %723 = vmatpush.msrb.mxu1 %v2098_v3  ;;  %821 = vmatpush.msrb.mxu2 %v2098_v3 }
  0x38   : > { %626 = vmatpush.msrb.mxu0 %v2105_v4 }
  0x39   : > { %724 = vmatpush.msrb.mxu1 %v2105_v4  ;;  %822 = vmatpush.msrb.mxu2 %v2105_v4 }
  0x3a   : > { %627 = vmatpush.msrb.mxu0 %v2114_v5 }
  0x3b   : > { %725 = vmatpush.msrb.mxu1 %v2114_v5  ;;  %823 = vmatpush.msrb.mxu2 %v2114_v5 }
  0x3c   : > { %628 = vmatpush.msrb.mxu0 %v2124_v8 }
  0x3d   : > { %726 = vmatpush.msrb.mxu1 %v2124_v8  ;;  %824 = vmatpush.msrb.mxu2 %v2124_v8 }
  0x3e   : > { %629 = vmatpush.msrb.mxu0 %v2134_v9 }
  0x3f   : > { %727 = vmatpush.msrb.mxu1 %v2134_v9  ;;  %825 = vmatpush.msrb.mxu2 %v2134_v9 }
  0x40   : > { %630 = vmatpush.msrb.mxu0 %v2143_v10 }
  0x41   : > { %728 = vmatpush.msrb.mxu1 %v2143_v10  ;;  %826 = vmatpush.msrb.mxu2 %v2143_v10 }
  0x42   : > { %631 = vmatpush.msrb.mxu0 %v2152_v11 }
  0x43   : > { %729 = vmatpush.msrb.mxu1 %v2152_v11  ;;  %827 = vmatpush.msrb.mxu2 %v2152_v11 }
  0x44   : > { %632 = vmatpush.msrb.mxu0 %v2162_v13 }
  0x45   : > { %730 = vmatpush.msrb.mxu1 %v2162_v13  ;;  %828 = vmatpush.msrb.mxu2 %v2162_v13 }
  0x46   : > { %633 = vmatpush.msrb.mxu0 %v2171_v15 }
  0x47   : > { %731 = vmatpush.msrb.mxu1 %v2171_v15  ;;  %829 = vmatpush.msrb.mxu2 %v2171_v15 }
  0x48   : > { %634 = vmatpush.msrb.mxu0 %v2180_v16 }
  0x49   : > { %732 = vmatpush.msrb.mxu1 %v2180_v16  ;;  %830 = vmatpush.msrb.mxu2 %v2180_v16 }
  0x4a   : > { %635 = vmatpush.msrb.mxu0 %v2189_v17 }
  0x4b   : > { %733 = vmatpush.msrb.mxu1 %v2189_v17  ;;  %831 = vmatpush.msrb.mxu2 %v2189_v17 }
  0x4c   : > { %636 = vmatpush.msrb.mxu0 %v2198_v18 }
  0x4d   : > { %734 = vmatpush.msrb.mxu1 %v2198_v18  ;;  %832 = vmatpush.msrb.mxu2 %v2198_v18 }
  0x4e   : > { %637 = vmatpush.msrb.mxu0 %v218_v19 }
  0x4f   : > { %735 = vmatpush.msrb.mxu1 %v218_v19  ;;  %833 = vmatpush.msrb.mxu2 %v218_v19  ;;  %v1856_v19 = vld [vmem:[%s2077_s21 + $0x18] sm:$0xff] }
  0x50   : > { %638 = vmatpush.msrb.mxu0 %v217_v20 }
  0x51   : > { %736 = vmatpush.msrb.mxu1 %v217_v20  ;;  %834 = vmatpush.msrb.mxu2 %v217_v20 }
  0x52   : > { %639 = vmatpush.msrb.mxu0 %v216_v21 }
  0x53   : > { %737 = vmatpush.msrb.mxu1 %v216_v21  ;;  %835 = vmatpush.msrb.mxu2 %v216_v21 }
  0xb0   : > { %v249_v22 = vpop.f32.mrf.mxu0 }
  0xb1   : > { %v1844_v23 = vmul.f32 -1.442695, %v249_v22 }
  0xb3   : > { %1934 = vpow2.f32 %v1844_v23 }
  0xb9   : > { %v1935_v24 = vpop.eup %1934 }
  0xba   : > { %v255_v25 = vadd.f32 1.0, %v1935_v24 }
  0xbc   : > { %1936 = vrcp.f32 %v255_v25  ;;  %v267_v29 = vand.u32 2147483648, %v255_v25  ;;  %v265_v31 = vand.u32 2147483647, %v255_v25  ;;  %vm261_vm3 = vweird.f32 %v255_v25 }
  0xbe   : > { %v268_v33 = vor.u32 1.1754944e-38, %v267_v29  ;;  %vm266_vm5 = vcmp.eq.f32.partialorder %v265_v31, 8.507059e+37 }
  0xc2   : > { %v1937_v26 = vpop.eup %1936 }
  0xc3   : > { %v257_v27 = vmul.f32 %v1937_v26, %v255_v25  ;;  %vm262_vm2 = vweird.f32 %v1937_v26 }
  0xc4   : > { %vm263_vm4 = vmor %vm261_vm3, %vm262_vm2 }
  0xc5   : > { %v258_v28 = vsub.f32 1.0, %v257_v27 }
  0xc7   : > { %v259_v30 = vmul.f32 %v1937_v26, %v258_v28 }
  0xc9   : > { %v260_v32 = vadd.f32 %v1937_v26, %v259_v30 }
  0xcb   : > { %v264_v34 = vsel %vm263_vm4, %v1937_v26, %v260_v32 }
  0xcc   : > { %v269_v35 = vsel %vm266_vm5, %v268_v33, %v264_v34 }
  0xcd   : > { %v271_v36 = vmul.f32 2.0, %v269_v35 }
  0xcf   : > { %v1845_v37 = vadd.f32 -1.0, %v271_v36 }
  0xd1   : > { %280 = vrot.lane.b32.xlu0 %v1845_v37, %s2038_s12 }
  0xd9   : > { %275 = vrot.lane.b32.xlu0 %v273_v38, %s2038_s12 }
 0x143   : > { %v281_v39 = vpop.permute.xlu0 %280 }
 0x144   : > { %v283_v40 = vmul.f32 %v281_v39, %v269_v35 }
 0x146   : > { %285 = vrot.lane.b32.xlu1 %v283_v40, %s2038_s12 }
 0x14b   : > { %v276_v41 = vpop.permute.xlu0 %275 }
 0x14c   : > { %v278_v42 = vmul.f32 %v276_v41, %v269_v35 }
 0x1b8   : > { %v286_v43 = vpop.permute.xlu1 %285 }
 0x1b9   : > { %v288_v44 = vadd.f32 %v286_v43, %v278_v42 }
 0x1bb   : > { %1938 = vtanh.f32 %v288_v44 }
 0x1c1   : > { %v1939_v45 = vpop.eup %1938 }
 0x1c2   : > { %291 = vrot.lane.b32.xlu1 %v1939_v45, %s2038_s12 }
 0x234   : > { %v292_v46 = vpop.permute.xlu1 %291 }
 0x235   : > { %v294_v47 = vmul.f32 %v292_v46, %v269_v35 }
 0x237   : > { %296 = vrot.lane.b32.xlu2 %v294_v47, %s2039_s13 }
 0x23f   : > { %301 = vrot.lane.b32.xlu2 %v288_v44, %s2040_s14 }
 0x291   : > { %v297_v48 = vpop.permute.xlu2 %296 }
 0x292   : > { %299 = vst.msk [vmem:[#allocation2] sm:$0xff] %vm213_vm1, %v297_v48 }
 0x293   : > { %305 = vst.msk [vmem:[%s2082_s24] sm:$0xff] %vm213_vm1, %v297_v48 }
 0x294   : > { %307 = vst.msk [vmem:[%s2082_s24] sm:$0xff] %vm306_vm6, %v288_v44 }
 0x299   : > { %v302_v49 = vpop.permute.xlu2 %301  ;;  %v311_v50 = vld [vmem:[#allocation2] sm:$0xff] }
 0x29a   : > { %304 = vst.msk [vmem:[#allocation3] sm:$0xff] %vm213_vm1, %v302_v49 }
 0x29b   : > { %312 = vst.msk [vmem:[#allocation4] sm:$0xff] %vm213_vm1, %v311_v50  ;;  %v1861_v50 = vld [vmem:[%s2077_s21 + $0x20] sm:$0xff] }
 0x2a1   : > { %v371_v52 = vld [vmem:[#allocation3] sm:$0xff] }
 0x2a2   : > { %v313_v53 = vld [vmem:[#allocation4] sm:$0xff]  ;;  %373 = vrot.lane.b32.xlu1 %v371_v52, %s2038_s12 }
 0x2a3   : > { %346 = vmatmul.f32.vlgmr.msra.gmra.mxu1 %v313_v53  ;;  %408 = vst [vmem:[#allocation4] sm:$0xff] %v1851_v51 }
 0x314   : > { %v374_v8 = vpop.permute.xlu1 %373 }
 0x320   : > { %v347_v54 = vpop.f32.mrf.mxu1 }
 0x321   : > { %v1847_v55 = vmul.f32 -1.442695, %v347_v54 }
 0x323   : > { %1940 = vpow2.f32 %v1847_v55 }
 0x329   : > { %v1941_v56 = vpop.eup %1940 }
 0x32a   : > { %v353_v57 = vadd.f32 1.0, %v1941_v56 }
 0x32c   : > { %1942 = vrcp.f32 %v353_v57  ;;  %v365_v61 = vand.u32 2147483648, %v353_v57  ;;  %v363_v63 = vand.u32 2147483647, %v353_v57  ;;  %vm359_vm8 = vweird.f32 %v353_v57 }
 0x32e   : > { %v366_v1 = vor.u32 1.1754944e-38, %v365_v61  ;;  %vm364_vm10 = vcmp.eq.f32.partialorder %v363_v63, 8.507059e+37 }
 0x332   : > { %v1943_v58 = vpop.eup %1942 }
 0x333   : > { %v355_v59 = vmul.f32 %v1943_v58, %v353_v57  ;;  %vm360_vm7 = vweird.f32 %v1943_v58 }
 0x334   : > { %vm361_vm9 = vmor %vm359_vm8, %vm360_vm7 }
 0x335   : > { %v356_v60 = vsub.f32 1.0, %v355_v59 }
 0x337   : > { %v357_v62 = vmul.f32 %v1943_v58, %v356_v60 }
 0x339   : > { %v358_v0 = vadd.f32 %v1943_v58, %v357_v62 }
 0x33b   : > { %v362_v2 = vsel %vm361_vm9, %v1943_v58, %v358_v0 }
 0x33c   : > { %v367_v3 = vsel %vm364_vm10, %v366_v1, %v362_v2 }
 0x33d   : > { %v369_v4 = vmul.f32 2.0, %v367_v3  ;;  %v376_v9 = vmul.f32 %v374_v8, %v367_v3 }
 0x33f   : > { %v1848_v5 = vadd.f32 -1.0, %v369_v4 }
 0x341   : > { %378 = vrot.lane.b32.xlu0 %v1848_v5, %s2038_s12 }
 0x3b3   : > { %v379_v6 = vpop.permute.xlu0 %378 }
 0x3b4   : > { %v381_v7 = vmul.f32 %v379_v6, %v367_v3 }
 0x3b6   : > { %383 = vrot.lane.b32.xlu2 %v381_v7, %s2038_s12 }
 0x410   : > { %v384_v10 = vpop.permute.xlu2 %383 }
 0x411   : > { %v386_v11 = vadd.f32 %v384_v10, %v376_v9 }
 0x413   : > { %1944 = vtanh.f32 %v386_v11  ;;  %399 = vrot.lane.b32.xlu2 %v386_v11, %s2040_s14 }
 0x419   : > { %v1945_v12 = vpop.eup %1944 }
 0x41a   : > { %389 = vrot.lane.b32.xlu0 %v1945_v12, %s2038_s12 }
 0x46d   : > { %v400_v13 = vpop.permute.xlu2 %399 }
 0x46e   : > { %402 = vst.msk [vmem:[#allocation3] sm:$0xff] %vm213_vm1, %v400_v13 }
 0x475   : > { %v469_v16 = vld [vmem:[#allocation3] sm:$0xff] }
 0x48c   : > { %v390_v14 = vpop.permute.xlu0 %389 }
 0x48d   : > { %v392_v15 = vmul.f32 %v390_v14, %v367_v3 }
 0x48f   : > { %394 = vrot.lane.b32.xlu1 %v392_v15, %s2039_s13 }
 0x497   : > { %471 = vrot.lane.b32.xlu1 %v469_v16, %s2038_s12 }
 0x501   : > { %v395_v17 = vpop.permute.xlu1 %394 }
 0x502   : > { %397 = vst.msk [vmem:[#allocation2] sm:$0xff] %vm213_vm1, %v395_v17 }
 0x503   : > { %1849 = vst.msk [vmem:[%s2082_s24 + $0x8] sm:$0xff] %vm213_vm1, %v395_v17  ;;  %v1866_v17 = vld [vmem:[%s2077_s21 + $0x28] sm:$0xff] }
 0x504   : > { %1850 = vst.msk [vmem:[%s2082_s24 + $0x8] sm:$0xff] %vm306_vm6, %v386_v11 }
 0x509   : > { %v409_v18 = vld [vmem:[#allocation2] sm:$0xff]  ;;  %v472_v39 = vpop.permute.xlu1 %471 }
 0x50a   : > { %410 = vst.msk [vmem:[#allocation4] sm:$0xff] %vm213_vm1, %v409_v18 }
 0x511   : > { %v411_v20 = vld [vmem:[#allocation4] sm:$0xff] }
 0x512   : > { %444 = vmatmul.f32.vlgmr.msra.gmra.mxu2 %v411_v20  ;;  %506 = vst [vmem:[#allocation4] sm:$0xff] %v1856_v19 }
 0x595   : > { %v445_v21 = vpop.f32.mrf.mxu2 }
 0x596   : > { %v1852_v22 = vmul.f32 -1.442695, %v445_v21 }
 0x598   : > { %1946 = vpow2.f32 %v1852_v22 }
 0x59e   : > { %v1947_v23 = vpop.eup %1946 }
 0x59f   : > { %v451_v24 = vadd.f32 1.0, %v1947_v23 }
 0x5a1   : > { %1948 = vrcp.f32 %v451_v24  ;;  %v463_v28 = vand.u32 2147483648, %v451_v24  ;;  %v461_v30 = vand.u32 2147483647, %v451_v24  ;;  %vm457_vm12 = vweird.f32 %v451_v24 }
 0x5a3   : > { %v464_v32 = vor.u32 1.1754944e-38, %v463_v28  ;;  %vm462_vm14 = vcmp.eq.f32.partialorder %v461_v30, 8.507059e+37 }
 0x5a7   : > { %v1949_v25 = vpop.eup %1948 }
 0x5a8   : > { %v453_v26 = vmul.f32 %v1949_v25, %v451_v24  ;;  %vm458_vm11 = vweird.f32 %v1949_v25 }
 0x5a9   : > { %vm459_vm13 = vmor %vm457_vm12, %vm458_vm11 }
 0x5aa   : > { %v454_v27 = vsub.f32 1.0, %v453_v26 }
 0x5ac   : > { %v455_v29 = vmul.f32 %v1949_v25, %v454_v27 }
 0x5ae   : > { %v456_v31 = vadd.f32 %v1949_v25, %v455_v29 }
 0x5b0   : > { %v460_v33 = vsel %vm459_vm13, %v1949_v25, %v456_v31 }
 0x5b1   : > { %v465_v34 = vsel %vm462_vm14, %v464_v32, %v460_v33 }
 0x5b2   : > { %v467_v35 = vmul.f32 2.0, %v465_v34  ;;  %v474_v40 = vmul.f32 %v472_v39, %v465_v34 }
 0x5b4   : > { %v1853_v36 = vadd.f32 -1.0, %v467_v35 }
 0x5b6   : > { %476 = vrot.lane.b32.xlu0 %v1853_v36, %s2038_s12 }
 0x628   : > { %v477_v37 = vpop.permute.xlu0 %476 }
 0x629   : > { %v479_v38 = vmul.f32 %v477_v37, %v465_v34 }
 0x62b   : > { %481 = vrot.lane.b32.xlu2 %v479_v38, %s2038_s12 }
 0x685   : > { %v482_v41 = vpop.permute.xlu2 %481 }
 0x686   : > { %v484_v42 = vadd.f32 %v482_v41, %v474_v40 }
 0x688   : > { %1950 = vtanh.f32 %v484_v42  ;;  %497 = vrot.lane.b32.xlu2 %v484_v42, %s2040_s14 }
 0x68e   : > { %v1951_v43 = vpop.eup %1950 }
 0x68f   : > { %487 = vrot.lane.b32.xlu0 %v1951_v43, %s2038_s12 }
 0x6e2   : > { %v498_v44 = vpop.permute.xlu2 %497 }
 0x6e3   : > { %500 = vst.msk [vmem:[#allocation3] sm:$0xff] %vm213_vm1, %v498_v44 }
 0x6ea   : > { %v567_v47 = vld [vmem:[#allocation3] sm:$0xff] }
 0x701   : > { %v488_v45 = vpop.permute.xlu0 %487 }
 0x702   : > { %v490_v46 = vmul.f32 %v488_v45, %v465_v34 }
 0x704   : > { %492 = vrot.lane.b32.xlu1 %v490_v46, %s2039_s13 }
 0x70c   : > { %569 = vrot.lane.b32.xlu1 %v567_v47, %s2038_s12 }
 0x776   : > { %v493_v48 = vpop.permute.xlu1 %492 }
 0x777   : > { %495 = vst.msk [vmem:[#allocation2] sm:$0xff] %vm213_vm1, %v493_v48 }
 0x778   : > { %1854 = vst.msk [vmem:[%s2082_s24 + $0x10] sm:$0xff] %vm213_vm1, %v493_v48  ;;  %v1871_v48 = vld [vmem:[%s2077_s21 + $0x30] sm:$0xff] }
 0x779   : > { %1855 = vst.msk [vmem:[%s2082_s24 + $0x10] sm:$0xff] %vm306_vm6, %v484_v42 }
 0x77e   : > { %v507_v49 = vld [vmem:[#allocation2] sm:$0xff]  ;;  %v570_v6 = vpop.permute.xlu1 %569 }
 0x77f   : > { %508 = vst.msk [vmem:[#allocation4] sm:$0xff] %vm213_vm1, %v507_v49 }
 0x786   : > { %v509_v51 = vld [vmem:[#allocation4] sm:$0xff] }
 0x787   : > { %542 = vmatmul.f32.vlgmr.msra.gmra.mxu3 %v509_v51  ;;  %604 = vst [vmem:[#allocation4] sm:$0xff] %v1861_v50 }
 0x80a   : > { %v543_v52 = vpop.f32.mrf.mxu3 }
 0x80b   : > { %v1857_v53 = vmul.f32 -1.442695, %v543_v52 }
 0x80d   : > { %1952 = vpow2.f32 %v1857_v53 }
 0x813   : > { %v1953_v54 = vpop.eup %1952 }
 0x814   : > { %v549_v55 = vadd.f32 1.0, %v1953_v54 }
 0x816   : > { %1954 = vrcp.f32 %v549_v55  ;;  %v561_v59 = vand.u32 2147483648, %v549_v55  ;;  %v559_v61 = vand.u32 2147483647, %v549_v55  ;;  %vm555_vm0 = vweird.f32 %v549_v55 }
 0x818   : > { %v562_v63 = vor.u32 1.1754944e-38, %v561_v59  ;;  %vm560_vm3 = vcmp.eq.f32.partialorder %v559_v61, 8.507059e+37 }
 0x81c   : > { %v1955_v56 = vpop.eup %1954 }
 0x81d   : > { %v551_v57 = vmul.f32 %v1955_v56, %v549_v55  ;;  %vm556_vm15 = vweird.f32 %v1955_v56 }
 0x81e   : > { %vm557_vm2 = vmor %vm555_vm0, %vm556_vm15 }
 0x81f   : > { %v552_v58 = vsub.f32 1.0, %v551_v57 }
 0x821   : > { %v553_v60 = vmul.f32 %v1955_v56, %v552_v58 }
 0x823   : > { %v554_v62 = vadd.f32 %v1955_v56, %v553_v60 }
 0x825   : > { %v558_v0 = vsel %vm557_vm2, %v1955_v56, %v554_v62 }
 0x826   : > { %v563_v1 = vsel %vm560_vm3, %v562_v63, %v558_v0 }
 0x827   : > { %v565_v2 = vmul.f32 2.0, %v563_v1  ;;  %v572_v7 = vmul.f32 %v570_v6, %v563_v1 }
 0x829   : > { %v1858_v3 = vadd.f32 -1.0, %v565_v2 }
 0x82b   : > { %574 = vrot.lane.b32.xlu0 %v1858_v3, %s2038_s12 }
 0x89d   : > { %v575_v4 = vpop.permute.xlu0 %574 }
 0x89e   : > { %v577_v5 = vmul.f32 %v575_v4, %v563_v1 }
 0x8a0   : > { %579 = vrot.lane.b32.xlu2 %v577_v5, %s2038_s12 }
 0x8fa   : > { %v580_v8 = vpop.permute.xlu2 %579 }
 0x8fb   : > { %v582_v9 = vadd.f32 %v580_v8, %v572_v7 }
 0x8fd   : > { %1956 = vtanh.f32 %v582_v9  ;;  %595 = vrot.lane.b32.xlu2 %v582_v9, %s2040_s14 }
 0x903   : > { %v1957_v10 = vpop.eup %1956 }
 0x904   : > { %585 = vrot.lane.b32.xlu0 %v1957_v10, %s2038_s12 }
 0x957   : > { %v596_v11 = vpop.permute.xlu2 %595 }
 0x958   : > { %598 = vst.msk [vmem:[#allocation3] sm:$0xff] %vm213_vm1, %v596_v11 }
 0x95f   : > { %v665_v14 = vld [vmem:[#allocation3] sm:$0xff] }
 0x976   : > { %v586_v12 = vpop.permute.xlu0 %585 }
 0x977   : > { %v588_v13 = vmul.f32 %v586_v12, %v563_v1 }
 0x979   : > { %590 = vrot.lane.b32.xlu1 %v588_v13, %s2039_s13 }
 0x981   : > { %667 = vrot.lane.b32.xlu1 %v665_v14, %s2038_s12 }
 0x9eb   : > { %v591_v15 = vpop.permute.xlu1 %590 }
 0x9ec   : > { %593 = vst.msk [vmem:[#allocation2] sm:$0xff] %vm213_vm1, %v591_v15 }
 0x9ed   : > { %1859 = vst.msk [vmem:[%s2082_s24 + $0x18] sm:$0xff] %vm213_vm1, %v591_v15  ;;  %v1876_v15 = vld [vmem:[%s2077_s21 + $0x38] sm:$0xff] }
 0x9ee   : > { %1860 = vst.msk [vmem:[%s2082_s24 + $0x18] sm:$0xff] %vm306_vm6, %v582_v9 }
 0x9f3   : > { %v605_v16 = vld [vmem:[#allocation2] sm:$0xff]  ;;  %v668_v37 = vpop.permute.xlu1 %667 }
 0x9f4   : > { %606 = vst.msk [vmem:[#allocation4] sm:$0xff] %vm213_vm1, %v605_v16 }
 0x9fb   : > { %v607_v18 = vld [vmem:[#allocation4] sm:$0xff] }
 0x9fc   : > { %640 = vmatmul.f32.vlgmr.msrb.gmra.mxu0 %v607_v18  ;;  %702 = vst [vmem:[#allocation4] sm:$0xff] %v1866_v17 }
 0xa79   : > { %v641_v19 = vpop.f32.mrf.mxu0 }
 0xa7a   : > { %v1862_v20 = vmul.f32 -1.442695, %v641_v19 }
 0xa7c   : > { %1958 = vpow2.f32 %v1862_v20 }
 0xa82   : > { %v1959_v21 = vpop.eup %1958 }
 0xa83   : > { %v647_v22 = vadd.f32 1.0, %v1959_v21 }
 0xa85   : > { %1960 = vrcp.f32 %v647_v22  ;;  %v659_v26 = vand.u32 2147483648, %v647_v22  ;;  %v657_v28 = vand.u32 2147483647, %v647_v22  ;;  %vm653_vm5 = vweird.f32 %v647_v22 }
 0xa87   : > { %v660_v30 = vor.u32 1.1754944e-38, %v659_v26  ;;  %vm658_vm8 = vcmp.eq.f32.partialorder %v657_v28, 8.507059e+37 }
 0xa8b   : > { %v1961_v23 = vpop.eup %1960 }
 0xa8c   : > { %v649_v24 = vmul.f32 %v1961_v23, %v647_v22  ;;  %vm654_vm4 = vweird.f32 %v1961_v23 }
 0xa8d   : > { %vm655_vm7 = vmor %vm653_vm5, %vm654_vm4 }
 0xa8e   : > { %v650_v25 = vsub.f32 1.0, %v649_v24 }
 0xa90   : > { %v651_v27 = vmul.f32 %v1961_v23, %v650_v25 }
 0xa92   : > { %v652_v29 = vadd.f32 %v1961_v23, %v651_v27 }
 0xa94   : > { %v656_v31 = vsel %vm655_vm7, %v1961_v23, %v652_v29 }
 0xa95   : > { %v661_v32 = vsel %vm658_vm8, %v660_v30, %v656_v31 }
 0xa96   : > { %v663_v33 = vmul.f32 2.0, %v661_v32  ;;  %v670_v38 = vmul.f32 %v668_v37, %v661_v32 }
 0xa98   : > { %v1863_v34 = vadd.f32 -1.0, %v663_v33 }
 0xa9a   : > { %672 = vrot.lane.b32.xlu0 %v1863_v34, %s2038_s12 }
 0xb0c   : > { %v673_v35 = vpop.permute.xlu0 %672 }
 0xb0d   : > { %v675_v36 = vmul.f32 %v673_v35, %v661_v32 }
 0xb0f   : > { %677 = vrot.lane.b32.xlu2 %v675_v36, %s2038_s12 }
 0xb69   : > { %v678_v39 = vpop.permute.xlu2 %677 }
 0xb6a   : > { %v680_v40 = vadd.f32 %v678_v39, %v670_v38 }
 0xb6c   : > { %1962 = vtanh.f32 %v680_v40  ;;  %693 = vrot.lane.b32.xlu2 %v680_v40, %s2040_s14 }
 0xb72   : > { %v1963_v41 = vpop.eup %1962 }
 0xb73   : > { %683 = vrot.lane.b32.xlu0 %v1963_v41, %s2038_s12  ;;  %v2355_v41 = vld [vmem:[%s2733_s1 + $0x78] sm:$0xff] }
 0xb74   : > { %918 = vmatpush.msrb.mxu3 %v2355_v41  ;;  %1016 = vmatpush.msra.mxu0 %v2355_v41 }
 0xb75   : > { %1114 = vmatpush.msra.mxu1 %v2355_v41  ;;  %1212 = vmatpush.msra.mxu2 %v2355_v41 }
 0xbc6   : > { %v694_v42 = vpop.permute.xlu2 %693 }
 0xbc7   : > { %696 = vst.msk [vmem:[#allocation3] sm:$0xff] %vm213_vm1, %v694_v42  ;;  %v2360_v42 = vld [vmem:[%s2733_s1 + $0x70] sm:$0xff] }
 0xbc8   : > { %919 = vmatpush.msrb.mxu3 %v2360_v42  ;;  %1017 = vmatpush.msra.mxu0 %v2360_v42 }
 0xbc9   : > { %1115 = vmatpush.msra.mxu1 %v2360_v42  ;;  %1213 = vmatpush.msra.mxu2 %v2360_v42 }
 0xbce   : > { %v763_v45 = vld [vmem:[#allocation3] sm:$0xff] }
 0xbe5   : > { %v684_v43 = vpop.permute.xlu0 %683 }
 0xbe6   : > { %v686_v44 = vmul.f32 %v684_v43, %v661_v32  ;;  %v2367_v43 = vld [vmem:[%s2733_s1 + $0x68] sm:$0xff] }
 0xbe7   : > { %920 = vmatpush.msrb.mxu3 %v2367_v43  ;;  %1018 = vmatpush.msra.mxu0 %v2367_v43 }
 0xbe8   : > { %688 = vrot.lane.b32.xlu1 %v686_v44, %s2039_s13  ;;  %v2376_v44 = vld [vmem:[%s2733_s1 + $0x60] sm:$0xff]  ;;  %1116 = vmatpush.msra.mxu1 %v2367_v43 }
 0xbe9   : > { %1214 = vmatpush.msra.mxu2 %v2367_v43  ;;  %921 = vmatpush.msrb.mxu3 %v2376_v44 }
 0xbea   : > { %1019 = vmatpush.msra.mxu0 %v2376_v44  ;;  %1117 = vmatpush.msra.mxu1 %v2376_v44 }
 0xbeb   : > { %1215 = vmatpush.msra.mxu2 %v2376_v44 }
 0xbf0   : > { %765 = vrot.lane.b32.xlu1 %v763_v45, %s2038_s12  ;;  %v2385_v45 = vld [vmem:[%s2733_s1 + $0x58] sm:$0xff] }
 0xbf1   : > { %922 = vmatpush.msrb.mxu3 %v2385_v45  ;;  %1020 = vmatpush.msra.mxu0 %v2385_v45 }
 0xbf2   : > { %1118 = vmatpush.msra.mxu1 %v2385_v45  ;;  %1216 = vmatpush.msra.mxu2 %v2385_v45 }
 0xc5a   : > { %v689_v46 = vpop.permute.xlu1 %688 }
 0xc5b   : > { %691 = vst.msk [vmem:[#allocation2] sm:$0xff] %vm213_vm1, %v689_v46 }
 0xc5c   : > { %1864 = vst.msk [vmem:[%s2082_s24 + $0x20] sm:$0xff] %vm213_vm1, %v689_v46  ;;  %v2394_v46 = vld [vmem:[%s2733_s1 + $0x50] sm:$0xff] }
 0xc5d   : > { %1865 = vst.msk [vmem:[%s2082_s24 + $0x20] sm:$0xff] %vm306_vm6, %v680_v40  ;;  %923 = vmatpush.msrb.mxu3 %v2394_v46  ;;  %1021 = vmatpush.msra.mxu0 %v2394_v46 }
 0xc5e   : > { %1119 = vmatpush.msra.mxu1 %v2394_v46  ;;  %1217 = vmatpush.msra.mxu2 %v2394_v46 }
 0xc62   : > { %v703_v47 = vld [vmem:[#allocation2] sm:$0xff]  ;;  %v766_v4 = vpop.permute.xlu1 %765 }
 0xc63   : > { %704 = vst.msk [vmem:[#allocation4] sm:$0xff] %vm213_vm1, %v703_v47  ;;  %v2403_v47 = vld [vmem:[%s2733_s1 + $0x48] sm:$0xff] }
 0xc64   : > { %924 = vmatpush.msrb.mxu3 %v2403_v47  ;;  %1022 = vmatpush.msra.mxu0 %v2403_v47 }
 0xc65   : > { %1120 = vmatpush.msra.mxu1 %v2403_v47  ;;  %1218 = vmatpush.msra.mxu2 %v2403_v47 }
 0xc6a   : > { %v705_v49 = vld [vmem:[#allocation4] sm:$0xff] }
 0xc6b   : > { %738 = vmatmul.f32.vlgmr.msrb.gmra.mxu1 %v705_v49  ;;  %800 = vst [vmem:[#allocation4] sm:$0xff] %v1871_v48  ;;  %v2412_v48 = vld [vmem:[%s2733_s1 + $0x40] sm:$0xff] }
 0xc6c   : > { %925 = vmatpush.msrb.mxu3 %v2412_v48  ;;  %1023 = vmatpush.msra.mxu0 %v2412_v48 }
 0xc6d   : > { %1121 = vmatpush.msra.mxu1 %v2412_v48  ;;  %1219 = vmatpush.msra.mxu2 %v2412_v48 }
 0xce8   : > { %v739_v50 = vpop.f32.mrf.mxu1 }
 0xce9   : > { %v1867_v51 = vmul.f32 -1.442695, %v739_v50 }
 0xceb   : > { %1964 = vpow2.f32 %v1867_v51 }
 0xcf1   : > { %v1965_v52 = vpop.eup %1964 }
 0xcf2   : > { %v745_v53 = vadd.f32 1.0, %v1965_v52  ;;  %v2429_v52 = vld [vmem:[%s2733_s1 + $0x38] sm:$0xff] }
 0xcf3   : > { %926 = vmatpush.msrb.mxu3 %v2429_v52  ;;  %1024 = vmatpush.msra.mxu0 %v2429_v52 }
 0xcf4   : > { %1966 = vrcp.f32 %v745_v53  ;;  %v757_v57 = vand.u32 2147483648, %v745_v53  ;;  %v755_v59 = vand.u32 2147483647, %v745_v53  ;;  %vm751_vm10 = vweird.f32 %v745_v53  ;;  %1122 = vmatpush.msra.mxu1 %v2429_v52  ;;  %1220 = vmatpush.msra.mxu2 %v2429_v52 }
 0xcf6   : > { %v758_v61 = vor.u32 1.1754944e-38, %v757_v57  ;;  %vm756_vm12 = vcmp.eq.f32.partialorder %v755_v59, 8.507059e+37  ;;  %v2468_v57 = vld [vmem:[%s2733_s1 + $0x10] sm:$0xff]  ;;  %v2486_v59 = vld [vmem:[%s2733_s1] sm:$0xff] }
 0xcfa   : > { %v1967_v54 = vpop.eup %1966 }
 0xcfb   : > { %v747_v55 = vmul.f32 %v1967_v54, %v745_v53  ;;  %vm752_vm9 = vweird.f32 %v1967_v54  ;;  %v2435_v53 = vld [vmem:[%s2733_s1 + $0x30] sm:$0xff] }
 0xcfc   : > { %vm753_vm11 = vmor %vm751_vm10, %vm752_vm9  ;;  %927 = vmatpush.msrb.mxu3 %v2435_v53  ;;  %1025 = vmatpush.msra.mxu0 %v2435_v53 }
 0xcfd   : > { %v748_v56 = vsub.f32 1.0, %v747_v55  ;;  %v2450_v55 = vld [vmem:[%s2733_s1 + $0x20] sm:$0xff]  ;;  %1123 = vmatpush.msra.mxu1 %v2435_v53  ;;  %1221 = vmatpush.msra.mxu2 %v2435_v53 }
 0xcff   : > { %v749_v58 = vmul.f32 %v1967_v54, %v748_v56  ;;  %v2459_v56 = vld [vmem:[%s2733_s1 + $0x18] sm:$0xff] }
 0xd01   : > { %v750_v60 = vadd.f32 %v1967_v54, %v749_v58  ;;  %v2477_v58 = vld [vmem:[%s2733_s1 + $0x8] sm:$0xff] }
 0xd03   : > { %v754_v62 = vsel %vm753_vm11, %v1967_v54, %v750_v60  ;;  %v2441_v54 = vld [vmem:[%s2733_s1 + $0x28] sm:$0xff] }
 0xd04   : > { %v759_v63 = vsel %vm756_vm12, %v758_v61, %v754_v62  ;;  %928 = vmatpush.msrb.mxu3 %v2441_v54  ;;  %1026 = vmatpush.msra.mxu0 %v2441_v54  ;;  %v1881_v62 = vld [vmem:[%s2077_s21 + $0x40] sm:$0xff] }
 0xd05   : > { %v761_v0 = vmul.f32 2.0, %v759_v63  ;;  %v768_v5 = vmul.f32 %v766_v4, %v759_v63  ;;  %1124 = vmatpush.msra.mxu1 %v2441_v54  ;;  %1222 = vmatpush.msra.mxu2 %v2441_v54 }
 0xd06   : > { %929 = vmatpush.msrb.mxu3 %v2450_v55  ;;  %1027 = vmatpush.msra.mxu0 %v2450_v55 }
 0xd07   : > { %v1868_v1 = vadd.f32 -1.0, %v761_v0  ;;  %1125 = vmatpush.msra.mxu1 %v2450_v55  ;;  %1223 = vmatpush.msra.mxu2 %v2450_v55 }
 0xd08   : > { %930 = vmatpush.msrb.mxu3 %v2459_v56  ;;  %1028 = vmatpush.msra.mxu0 %v2459_v56 }
 0xd09   : > { %770 = vrot.lane.b32.xlu0 %v1868_v1, %s2038_s12  ;;  %1126 = vmatpush.msra.mxu1 %v2459_v56 }
 0xd0a   : > { %1224 = vmatpush.msra.mxu2 %v2459_v56  ;;  %931 = vmatpush.msrb.mxu3 %v2468_v57 }
 0xd0b   : > { %1029 = vmatpush.msra.mxu0 %v2468_v57  ;;  %1127 = vmatpush.msra.mxu1 %v2468_v57 }
 0xd0c   : > { %1225 = vmatpush.msra.mxu2 %v2468_v57  ;;  %932 = vmatpush.msrb.mxu3 %v2477_v58 }
 0xd0d   : > { %1030 = vmatpush.msra.mxu0 %v2477_v58  ;;  %1128 = vmatpush.msra.mxu1 %v2477_v58 }
 0xd0e   : > { %1226 = vmatpush.msra.mxu2 %v2477_v58  ;;  %933 = vmatpush.msrb.mxu3 %v2486_v59 }
 0xd0f   : > { %1031 = vmatpush.msra.mxu0 %v2486_v59  ;;  %1129 = vmatpush.msra.mxu1 %v2486_v59 }
 0xd10   : > { %1227 = vmatpush.msra.mxu2 %v2486_v59  ;;  %1310 = vmatpush.msra.mxu3 %v2355_v41 }
 0xd11   : > { %1408 = vmatpush.msrb.mxu0 %v2355_v41  ;;  %1506 = vmatpush.msrb.mxu1 %v2355_v41 }
 0xd12   : > { %1311 = vmatpush.msra.mxu3 %v2360_v42 }
 0xd13   : > { %1409 = vmatpush.msrb.mxu0 %v2360_v42  ;;  %1507 = vmatpush.msrb.mxu1 %v2360_v42 }
 0xd14   : > { %1312 = vmatpush.msra.mxu3 %v2367_v43 }
 0xd15   : > { %1410 = vmatpush.msrb.mxu0 %v2367_v43  ;;  %1508 = vmatpush.msrb.mxu1 %v2367_v43 }
 0xd16   : > { %1313 = vmatpush.msra.mxu3 %v2376_v44 }
 0xd17   : > { %1411 = vmatpush.msrb.mxu0 %v2376_v44  ;;  %1509 = vmatpush.msrb.mxu1 %v2376_v44 }
 0xd18   : > { %1314 = vmatpush.msra.mxu3 %v2385_v45 }
 0xd19   : > { %1412 = vmatpush.msrb.mxu0 %v2385_v45  ;;  %1510 = vmatpush.msrb.mxu1 %v2385_v45 }
 0xd1a   : > { %1315 = vmatpush.msra.mxu3 %v2394_v46 }
 0xd1b   : > { %1413 = vmatpush.msrb.mxu0 %v2394_v46  ;;  %1511 = vmatpush.msrb.mxu1 %v2394_v46 }
 0xd1c   : > { %1316 = vmatpush.msra.mxu3 %v2403_v47 }
 0xd1d   : > { %1414 = vmatpush.msrb.mxu0 %v2403_v47  ;;  %1512 = vmatpush.msrb.mxu1 %v2403_v47 }
 0xd1e   : > { %1317 = vmatpush.msra.mxu3 %v2412_v48 }
 0xd1f   : > { %1415 = vmatpush.msrb.mxu0 %v2412_v48  ;;  %1513 = vmatpush.msrb.mxu1 %v2412_v48 }
 0xd20   : > { %1318 = vmatpush.msra.mxu3 %v2429_v52 }
 0xd21   : > { %1416 = vmatpush.msrb.mxu0 %v2429_v52  ;;  %1514 = vmatpush.msrb.mxu1 %v2429_v52 }
 0xd22   : > { %1319 = vmatpush.msra.mxu3 %v2435_v53 }
 0xd23   : > { %1417 = vmatpush.msrb.mxu0 %v2435_v53  ;;  %1515 = vmatpush.msrb.mxu1 %v2435_v53 }
 0xd24   : > { %1320 = vmatpush.msra.mxu3 %v2441_v54 }
 0xd25   : > { %1418 = vmatpush.msrb.mxu0 %v2441_v54  ;;  %1516 = vmatpush.msrb.mxu1 %v2441_v54 }
 0xd26   : > { %1321 = vmatpush.msra.mxu3 %v2450_v55 }
 0xd27   : > { %1419 = vmatpush.msrb.mxu0 %v2450_v55  ;;  %1517 = vmatpush.msrb.mxu1 %v2450_v55 }
 0xd28   : > { %1322 = vmatpush.msra.mxu3 %v2459_v56 }
 0xd29   : > { %1420 = vmatpush.msrb.mxu0 %v2459_v56  ;;  %1518 = vmatpush.msrb.mxu1 %v2459_v56 }
 0xd2a   : > { %1323 = vmatpush.msra.mxu3 %v2468_v57 }
 0xd2b   : > { %1421 = vmatpush.msrb.mxu0 %v2468_v57  ;;  %1519 = vmatpush.msrb.mxu1 %v2468_v57 }
 0xd2c   : > { %1324 = vmatpush.msra.mxu3 %v2477_v58 }
 0xd2d   : > { %1422 = vmatpush.msrb.mxu0 %v2477_v58  ;;  %1520 = vmatpush.msrb.mxu1 %v2477_v58 }
 0xd2e   : > { %1325 = vmatpush.msra.mxu3 %v2486_v59 }
 0xd2f   : > { %1423 = vmatpush.msrb.mxu0 %v2486_v59  ;;  %1521 = vmatpush.msrb.mxu1 %v2486_v59 }
 0xd7b   : > { %v771_v2 = vpop.permute.xlu0 %770 }
 0xd7c   : > { %v773_v3 = vmul.f32 %v771_v2, %v759_v63 }
 0xd7e   : > { %775 = vrot.lane.b32.xlu2 %v773_v3, %s2038_s12 }
 0xdd8   : > { %v776_v6 = vpop.permute.xlu2 %775 }
 0xdd9   : > { %v778_v7 = vadd.f32 %v776_v6, %v768_v5 }
 0xddb   : > { %1968 = vtanh.f32 %v778_v7  ;;  %791 = vrot.lane.b32.xlu2 %v778_v7, %s2040_s14 }
 0xde1   : > { %v1969_v8 = vpop.eup %1968 }
 0xde2   : > { %781 = vrot.lane.b32.xlu0 %v1969_v8, %s2038_s12 }
 0xe35   : > { %v792_v9 = vpop.permute.xlu2 %791 }
 0xe36   : > { %794 = vst.msk [vmem:[#allocation3] sm:$0xff] %vm213_vm1, %v792_v9 }
 0xe3d   : > { %v861_v12 = vld [vmem:[#allocation3] sm:$0xff] }
 0xe54   : > { %v782_v10 = vpop.permute.xlu0 %781 }
 0xe55   : > { %v784_v11 = vmul.f32 %v782_v10, %v759_v63 }
 0xe57   : > { %786 = vrot.lane.b32.xlu1 %v784_v11, %s2039_s13 }
 0xe5f   : > { %863 = vrot.lane.b32.xlu1 %v861_v12, %s2038_s12 }
 0xec9   : > { %v787_v13 = vpop.permute.xlu1 %786 }
 0xeca   : > { %789 = vst.msk [vmem:[#allocation2] sm:$0xff] %vm213_vm1, %v787_v13 }
 0xecb   : > { %1869 = vst.msk [vmem:[%s2082_s24 + $0x28] sm:$0xff] %vm213_vm1, %v787_v13 }
 0xecc   : > { %1870 = vst.msk [vmem:[%s2082_s24 + $0x28] sm:$0xff] %vm306_vm6, %v778_v7 }
 0xed1   : > { %v801_v14 = vld [vmem:[#allocation2] sm:$0xff]  ;;  %v864_v35 = vpop.permute.xlu1 %863 }
 0xed2   : > { %802 = vst.msk [vmem:[#allocation4] sm:$0xff] %vm213_vm1, %v801_v14 }
 0xed9   : > { %v803_v16 = vld [vmem:[#allocation4] sm:$0xff] }
 0xeda   : > { %836 = vmatmul.f32.vlgmr.msrb.gmra.mxu2 %v803_v16  ;;  %898 = vst [vmem:[#allocation4] sm:$0xff] %v1876_v15 }
 0xf5d   : > { %v837_v17 = vpop.f32.mrf.mxu2 }
 0xf5e   : > { %v1872_v18 = vmul.f32 -1.442695, %v837_v17 }
 0xf60   : > { %1970 = vpow2.f32 %v1872_v18 }
 0xf66   : > { %v1971_v19 = vpop.eup %1970 }
 0xf67   : > { %v843_v20 = vadd.f32 1.0, %v1971_v19 }
 0xf69   : > { %1972 = vrcp.f32 %v843_v20  ;;  %v855_v24 = vand.u32 2147483648, %v843_v20  ;;  %v853_v26 = vand.u32 2147483647, %v843_v20  ;;  %vm849_vm14 = vweird.f32 %v843_v20 }
 0xf6b   : > { %v856_v28 = vor.u32 1.1754944e-38, %v855_v24  ;;  %vm854_vm0 = vcmp.eq.f32.partialorder %v853_v26, 8.507059e+37 }
 0xf6f   : > { %v1973_v21 = vpop.eup %1972 }
 0xf70   : > { %v845_v22 = vmul.f32 %v1973_v21, %v843_v20  ;;  %vm850_vm13 = vweird.f32 %v1973_v21 }
 0xf71   : > { %vm851_vm15 = vmor %vm849_vm14, %vm850_vm13 }
 0xf72   : > { %v846_v23 = vsub.f32 1.0, %v845_v22 }
 0xf74   : > { %v847_v25 = vmul.f32 %v1973_v21, %v846_v23 }
 0xf76   : > { %v848_v27 = vadd.f32 %v1973_v21, %v847_v25 }
 0xf78   : > { %v852_v29 = vsel %vm851_vm15, %v1973_v21, %v848_v27 }
 0xf79   : > { %v857_v30 = vsel %vm854_vm0, %v856_v28, %v852_v29  ;;  %v1886_v29 = vld [vmem:[%s2077_s21 + $0x48] sm:$0xff] }
 0xf7a   : > { %v859_v31 = vmul.f32 2.0, %v857_v30  ;;  %v866_v36 = vmul.f32 %v864_v35, %v857_v30 }
 0xf7c   : > { %v1873_v32 = vadd.f32 -1.0, %v859_v31 }
 0xf7e   : > { %868 = vrot.lane.b32.xlu0 %v1873_v32, %s2038_s12 }
 0xff0   : > { %v869_v33 = vpop.permute.xlu0 %868 }
 0xff1   : > { %v871_v34 = vmul.f32 %v869_v33, %v857_v30 }
 0xff3   : > { %873 = vrot.lane.b32.xlu2 %v871_v34, %s2038_s12 }
0x104d   : > { %v874_v37 = vpop.permute.xlu2 %873 }
0x104e   : > { %v2345_v38 = vadd.f32 %v874_v37, %v866_v36 }
0x1050   : > { %1974 = vtanh.f32 %v2345_v38  ;;  %889 = vrot.lane.b32.xlu2 %v2345_v38, %s2040_s14 }
0x1056   : > { %v1975_v39 = vpop.eup %1974 }
0x1057   : > { %879 = vrot.lane.b32.xlu0 %v1975_v39, %s2038_s12 }
0x10aa   : > { %v890_v40 = vpop.permute.xlu2 %889 }
0x10ab   : > { %892 = vst.msk [vmem:[#allocation3] sm:$0xff] %vm213_vm1, %v890_v40 }
0x10b2   : > { %v959_v51 = vld [vmem:[#allocation3] sm:$0xff] }
0x10c9   : > { %v880_v49 = vpop.permute.xlu0 %879 }
0x10ca   : > { %v882_v50 = vmul.f32 %v880_v49, %v857_v30 }
0x10cc   : > { %884 = vrot.lane.b32.xlu1 %v882_v50, %s2039_s13 }
0x10d4   : > { %961 = vrot.lane.b32.xlu1 %v959_v51, %s2038_s12 }
0x113e   : > { %v885_v60 = vpop.permute.xlu1 %884 }
0x113f   : > { %887 = vst.msk [vmem:[#allocation2] sm:$0xff] %vm213_vm1, %v885_v60 }
0x1140   : > { %1874 = vst.msk [vmem:[%s2082_s24 + $0x30] sm:$0xff] %vm213_vm1, %v885_v60  ;;  %v1891_v60 = vld [vmem:[%s2077_s21 + $0x50] sm:$0xff] }
0x1141   : > { %1875 = vst.msk [vmem:[%s2082_s24 + $0x30] sm:$0xff] %vm306_vm6, %v2345_v38 }
0x1146   : > { %v899_v61 = vld [vmem:[#allocation2] sm:$0xff]  ;;  %v962_v18 = vpop.permute.xlu1 %961 }
0x1147   : > { %900 = vst.msk [vmem:[#allocation4] sm:$0xff] %vm213_vm1, %v899_v61 }
0x114e   : > { %v901_v63 = vld [vmem:[#allocation4] sm:$0xff] }
0x114f   : > { %934 = vmatmul.f32.vlgmr.msrb.gmra.mxu3 %v901_v63  ;;  %996 = vst [vmem:[#allocation4] sm:$0xff] %v1881_v62 }
0x11d2   : > { %v935_v0 = vpop.f32.mrf.mxu3 }
0x11d3   : > { %v1877_v1 = vmul.f32 -1.442695, %v935_v0 }
0x11d5   : > { %1976 = vpow2.f32 %v1877_v1 }
0x11db   : > { %v1977_v2 = vpop.eup %1976 }
0x11dc   : > { %v941_v3 = vadd.f32 1.0, %v1977_v2 }
0x11de   : > { %1978 = vrcp.f32 %v941_v3  ;;  %v953_v7 = vand.u32 2147483648, %v941_v3  ;;  %v951_v9 = vand.u32 2147483647, %v941_v3  ;;  %vm947_vm3 = vweird.f32 %v941_v3 }
0x11e0   : > { %v954_v11 = vor.u32 1.1754944e-38, %v953_v7  ;;  %vm952_vm5 = vcmp.eq.f32.partialorder %v951_v9, 8.507059e+37 }
0x11e4   : > { %v1979_v4 = vpop.eup %1978 }
0x11e5   : > { %v943_v5 = vmul.f32 %v1979_v4, %v941_v3  ;;  %vm948_vm2 = vweird.f32 %v1979_v4 }
0x11e6   : > { %vm949_vm4 = vmor %vm947_vm3, %vm948_vm2 }
0x11e7   : > { %v944_v6 = vsub.f32 1.0, %v943_v5 }
0x11e9   : > { %v945_v8 = vmul.f32 %v1979_v4, %v944_v6 }
0x11eb   : > { %v946_v10 = vadd.f32 %v1979_v4, %v945_v8 }
0x11ed   : > { %v950_v12 = vsel %vm949_vm4, %v1979_v4, %v946_v10 }
0x11ee   : > { %v955_v13 = vsel %vm952_vm5, %v954_v11, %v950_v12 }
0x11ef   : > { %v957_v14 = vmul.f32 2.0, %v955_v13  ;;  %v964_v19 = vmul.f32 %v962_v18, %v955_v13 }
0x11f1   : > { %v1878_v15 = vadd.f32 -1.0, %v957_v14 }
0x11f3   : > { %966 = vrot.lane.b32.xlu0 %v1878_v15, %s2038_s12 }
0x1265   : > { %v967_v16 = vpop.permute.xlu0 %966 }
0x1266   : > { %v969_v17 = vmul.f32 %v967_v16, %v955_v13 }
0x1268   : > { %971 = vrot.lane.b32.xlu2 %v969_v17, %s2038_s12 }
0x12c2   : > { %v972_v20 = vpop.permute.xlu2 %971 }
0x12c3   : > { %v974_v21 = vadd.f32 %v972_v20, %v964_v19 }
0x12c5   : > { %1980 = vtanh.f32 %v974_v21  ;;  %987 = vrot.lane.b32.xlu2 %v974_v21, %s2040_s14 }
0x12cb   : > { %v1981_v22 = vpop.eup %1980 }
0x12cc   : > { %977 = vrot.lane.b32.xlu0 %v1981_v22, %s2038_s12 }
0x131f   : > { %v988_v23 = vpop.permute.xlu2 %987 }
0x1320   : > { %990 = vst.msk [vmem:[#allocation3] sm:$0xff] %vm213_vm1, %v988_v23 }
0x1327   : > { %v1057_v26 = vld [vmem:[#allocation3] sm:$0xff] }
0x133e   : > { %v978_v24 = vpop.permute.xlu0 %977 }
0x133f   : > { %v980_v25 = vmul.f32 %v978_v24, %v955_v13 }
0x1341   : > { %982 = vrot.lane.b32.xlu1 %v980_v25, %s2039_s13 }
0x1349   : > { %1059 = vrot.lane.b32.xlu1 %v1057_v26, %s2038_s12 }
0x13b3   : > { %v983_v27 = vpop.permute.xlu1 %982 }
0x13b4   : > { %985 = vst.msk [vmem:[#allocation2] sm:$0xff] %vm213_vm1, %v983_v27 }
0x13b5   : > { %1879 = vst.msk [vmem:[%s2082_s24 + $0x38] sm:$0xff] %vm213_vm1, %v983_v27  ;;  %v1896_v27 = vld [vmem:[%s2077_s21 + $0x58] sm:$0xff] }
0x13b6   : > { %1880 = vst.msk [vmem:[%s2082_s24 + $0x38] sm:$0xff] %vm306_vm6, %v974_v21 }
0x13bb   : > { %v997_v28 = vld [vmem:[#allocation2] sm:$0xff]  ;;  %v1060_v49 = vpop.permute.xlu1 %1059 }
0x13bc   : > { %998 = vst.msk [vmem:[#allocation4] sm:$0xff] %vm213_vm1, %v997_v28 }
0x13c3   : > { %v999_v30 = vld [vmem:[#allocation4] sm:$0xff] }
0x13c4   : > { %1032 = vmatmul.f32.vlgmr.msra.gmra.mxu0 %v999_v30  ;;  %1094 = vst [vmem:[#allocation4] sm:$0xff] %v1886_v29 }
0x1441   : > { %v1033_v31 = vpop.f32.mrf.mxu0 }
0x1442   : > { %v1882_v32 = vmul.f32 -1.442695, %v1033_v31 }
0x1444   : > { %1982 = vpow2.f32 %v1882_v32 }
0x144a   : > { %v1983_v33 = vpop.eup %1982 }
0x144b   : > { %v1039_v34 = vadd.f32 1.0, %v1983_v33 }
0x144d   : > { %1984 = vrcp.f32 %v1039_v34  ;;  %v1051_v38 = vand.u32 2147483648, %v1039_v34  ;;  %v1049_v40 = vand.u32 2147483647, %v1039_v34  ;;  %vm1045_vm8 = vweird.f32 %v1039_v34 }
0x144f   : > { %v1052_v42 = vor.u32 1.1754944e-38, %v1051_v38  ;;  %vm1050_vm10 = vcmp.eq.f32.partialorder %v1049_v40, 8.507059e+37 }
0x1453   : > { %v1985_v35 = vpop.eup %1984 }
0x1454   : > { %v1041_v36 = vmul.f32 %v1985_v35, %v1039_v34  ;;  %vm1046_vm7 = vweird.f32 %v1985_v35 }
0x1455   : > { %vm1047_vm9 = vmor %vm1045_vm8, %vm1046_vm7 }
0x1456   : > { %v1042_v37 = vsub.f32 1.0, %v1041_v36 }
0x1458   : > { %v1043_v39 = vmul.f32 %v1985_v35, %v1042_v37 }
0x145a   : > { %v1044_v41 = vadd.f32 %v1985_v35, %v1043_v39 }
0x145c   : > { %v1048_v43 = vsel %vm1047_vm9, %v1985_v35, %v1044_v41 }
0x145d   : > { %v1053_v44 = vsel %vm1050_vm10, %v1052_v42, %v1048_v43 }
0x145e   : > { %v1055_v45 = vmul.f32 2.0, %v1053_v44  ;;  %v1062_v50 = vmul.f32 %v1060_v49, %v1053_v44 }
0x1460   : > { %v1883_v46 = vadd.f32 -1.0, %v1055_v45 }
0x1462   : > { %1064 = vrot.lane.b32.xlu0 %v1883_v46, %s2038_s12 }
0x14d4   : > { %v1065_v47 = vpop.permute.xlu0 %1064 }
0x14d5   : > { %v1067_v48 = vmul.f32 %v1065_v47, %v1053_v44 }
0x14d7   : > { %1069 = vrot.lane.b32.xlu2 %v1067_v48, %s2038_s12 }
0x1531   : > { %v1070_v51 = vpop.permute.xlu2 %1069 }
0x1532   : > { %v1072_v52 = vadd.f32 %v1070_v51, %v1062_v50 }
0x1534   : > { %1986 = vtanh.f32 %v1072_v52  ;;  %1085 = vrot.lane.b32.xlu2 %v1072_v52, %s2040_s14 }
0x153a   : > { %v1987_v53 = vpop.eup %1986 }
0x153b   : > { %1075 = vrot.lane.b32.xlu0 %v1987_v53, %s2038_s12 }
0x158e   : > { %v1086_v54 = vpop.permute.xlu2 %1085 }
0x158f   : > { %1088 = vst.msk [vmem:[#allocation3] sm:$0xff] %vm213_vm1, %v1086_v54 }
0x1596   : > { %v1155_v57 = vld [vmem:[#allocation3] sm:$0xff] }
0x15ad   : > { %v1076_v55 = vpop.permute.xlu0 %1075 }
0x15ae   : > { %v1078_v56 = vmul.f32 %v1076_v55, %v1053_v44 }
0x15b0   : > { %1080 = vrot.lane.b32.xlu1 %v1078_v56, %s2039_s13 }
0x15b8   : > { %1157 = vrot.lane.b32.xlu1 %v1155_v57, %s2038_s12 }
0x1622   : > { %v1081_v58 = vpop.permute.xlu1 %1080 }
0x1623   : > { %1083 = vst.msk [vmem:[#allocation2] sm:$0xff] %vm213_vm1, %v1081_v58 }
0x1624   : > { %1884 = vst.msk [vmem:[%s2082_s24 + $0x40] sm:$0xff] %vm213_vm1, %v1081_v58  ;;  %v1901_v58 = vld [vmem:[%s2077_s21 + $0x60] sm:$0xff] }
0x1625   : > { %1885 = vst.msk [vmem:[%s2082_s24 + $0x40] sm:$0xff] %vm306_vm6, %v1072_v52 }
0x162a   : > { %v1095_v59 = vld [vmem:[#allocation2] sm:$0xff]  ;;  %v1158_v16 = vpop.permute.xlu1 %1157 }
0x162b   : > { %1096 = vst.msk [vmem:[#allocation4] sm:$0xff] %vm213_vm1, %v1095_v59 }
0x1632   : > { %v1097_v61 = vld [vmem:[#allocation4] sm:$0xff] }
0x1633   : > { %1130 = vmatmul.f32.vlgmr.msra.gmra.mxu1 %v1097_v61  ;;  %1192 = vst [vmem:[#allocation4] sm:$0xff] %v1891_v60 }
0x16b0   : > { %v1131_v62 = vpop.f32.mrf.mxu1 }
0x16b1   : > { %v1887_v63 = vmul.f32 -1.442695, %v1131_v62 }
0x16b3   : > { %1988 = vpow2.f32 %v1887_v63 }
0x16b9   : > { %v1989_v0 = vpop.eup %1988 }
0x16ba   : > { %v1137_v1 = vadd.f32 1.0, %v1989_v0 }
0x16bc   : > { %1990 = vrcp.f32 %v1137_v1  ;;  %v1149_v5 = vand.u32 2147483648, %v1137_v1  ;;  %v1147_v7 = vand.u32 2147483647, %v1137_v1  ;;  %vm1143_vm12 = vweird.f32 %v1137_v1 }
0x16be   : > { %v1150_v9 = vor.u32 1.1754944e-38, %v1149_v5  ;;  %vm1148_vm14 = vcmp.eq.f32.partialorder %v1147_v7, 8.507059e+37 }
0x16c2   : > { %v1991_v2 = vpop.eup %1990 }
0x16c3   : > { %v1139_v3 = vmul.f32 %v1991_v2, %v1137_v1  ;;  %vm1144_vm11 = vweird.f32 %v1991_v2 }
0x16c4   : > { %vm1145_vm13 = vmor %vm1143_vm12, %vm1144_vm11 }
0x16c5   : > { %v1140_v4 = vsub.f32 1.0, %v1139_v3 }
0x16c7   : > { %v1141_v6 = vmul.f32 %v1991_v2, %v1140_v4 }
0x16c9   : > { %v1142_v8 = vadd.f32 %v1991_v2, %v1141_v6 }
0x16cb   : > { %v1146_v10 = vsel %vm1145_vm13, %v1991_v2, %v1142_v8 }
0x16cc   : > { %v1151_v11 = vsel %vm1148_vm14, %v1150_v9, %v1146_v10 }
0x16cd   : > { %v1153_v12 = vmul.f32 2.0, %v1151_v11  ;;  %v1160_v17 = vmul.f32 %v1158_v16, %v1151_v11 }
0x16cf   : > { %v1888_v13 = vadd.f32 -1.0, %v1153_v12 }
0x16d1   : > { %1162 = vrot.lane.b32.xlu0 %v1888_v13, %s2038_s12 }
0x1743   : > { %v1163_v14 = vpop.permute.xlu0 %1162 }
0x1744   : > { %v1165_v15 = vmul.f32 %v1163_v14, %v1151_v11 }
0x1746   : > { %1167 = vrot.lane.b32.xlu2 %v1165_v15, %s2038_s12 }
0x17a0   : > { %v1168_v18 = vpop.permute.xlu2 %1167 }
0x17a1   : > { %v1170_v19 = vadd.f32 %v1168_v18, %v1160_v17 }
0x17a3   : > { %1992 = vtanh.f32 %v1170_v19  ;;  %1183 = vrot.lane.b32.xlu2 %v1170_v19, %s2040_s14 }
0x17a9   : > { %v1993_v20 = vpop.eup %1992 }
0x17aa   : > { %1173 = vrot.lane.b32.xlu0 %v1993_v20, %s2038_s12 }
0x17fd   : > { %v1184_v21 = vpop.permute.xlu2 %1183 }
0x17fe   : > { %1186 = vst.msk [vmem:[#allocation3] sm:$0xff] %vm213_vm1, %v1184_v21 }
0x1805   : > { %v1253_v24 = vld [vmem:[#allocation3] sm:$0xff] }
0x181c   : > { %v1174_v22 = vpop.permute.xlu0 %1173 }
0x181d   : > { %v1176_v23 = vmul.f32 %v1174_v22, %v1151_v11 }
0x181f   : > { %1178 = vrot.lane.b32.xlu1 %v1176_v23, %s2039_s13 }
0x1827   : > { %1255 = vrot.lane.b32.xlu1 %v1253_v24, %s2038_s12 }
0x1891   : > { %v1179_v25 = vpop.permute.xlu1 %1178 }
0x1892   : > { %1181 = vst.msk [vmem:[#allocation2] sm:$0xff] %vm213_vm1, %v1179_v25 }
0x1893   : > { %1889 = vst.msk [vmem:[%s2082_s24 + $0x48] sm:$0xff] %vm213_vm1, %v1179_v25  ;;  %v1906_v25 = vld [vmem:[%s2077_s21 + $0x68] sm:$0xff] }
0x1894   : > { %1890 = vst.msk [vmem:[%s2082_s24 + $0x48] sm:$0xff] %vm306_vm6, %v1170_v19 }
0x1899   : > { %v1193_v26 = vld [vmem:[#allocation2] sm:$0xff]  ;;  %v1256_v47 = vpop.permute.xlu1 %1255 }
0x189a   : > { %1194 = vst.msk [vmem:[#allocation4] sm:$0xff] %vm213_vm1, %v1193_v26 }
0x18a1   : > { %v1195_v28 = vld [vmem:[#allocation4] sm:$0xff] }
0x18a2   : > { %1228 = vmatmul.f32.vlgmr.msra.gmra.mxu2 %v1195_v28  ;;  %1290 = vst [vmem:[#allocation4] sm:$0xff] %v1896_v27 }
0x1925   : > { %v1229_v29 = vpop.f32.mrf.mxu2 }
0x1926   : > { %v1892_v30 = vmul.f32 -1.442695, %v1229_v29 }
0x1928   : > { %1994 = vpow2.f32 %v1892_v30 }
0x192e   : > { %v1995_v31 = vpop.eup %1994 }
0x192f   : > { %v1235_v32 = vadd.f32 1.0, %v1995_v31 }
0x1931   : > { %1996 = vrcp.f32 %v1235_v32  ;;  %v1247_v36 = vand.u32 2147483648, %v1235_v32  ;;  %v1245_v38 = vand.u32 2147483647, %v1235_v32  ;;  %vm1241_vm0 = vweird.f32 %v1235_v32 }
0x1933   : > { %v1248_v40 = vor.u32 1.1754944e-38, %v1247_v36  ;;  %vm1246_vm3 = vcmp.eq.f32.partialorder %v1245_v38, 8.507059e+37 }
0x1937   : > { %v1997_v33 = vpop.eup %1996 }
0x1938   : > { %v1237_v34 = vmul.f32 %v1997_v33, %v1235_v32  ;;  %vm1242_vm15 = vweird.f32 %v1997_v33 }
0x1939   : > { %vm1243_vm2 = vmor %vm1241_vm0, %vm1242_vm15 }
0x193a   : > { %v1238_v35 = vsub.f32 1.0, %v1237_v34 }
0x193c   : > { %v1239_v37 = vmul.f32 %v1997_v33, %v1238_v35 }
0x193e   : > { %v1240_v39 = vadd.f32 %v1997_v33, %v1239_v37 }
0x1940   : > { %v1244_v41 = vsel %vm1243_vm2, %v1997_v33, %v1240_v39 }
0x1941   : > { %v1249_v42 = vsel %vm1246_vm3, %v1248_v40, %v1244_v41 }
0x1942   : > { %v1251_v43 = vmul.f32 2.0, %v1249_v42  ;;  %v1258_v48 = vmul.f32 %v1256_v47, %v1249_v42 }
0x1944   : > { %v1893_v44 = vadd.f32 -1.0, %v1251_v43 }
0x1946   : > { %1260 = vrot.lane.b32.xlu0 %v1893_v44, %s2038_s12 }
0x19b8   : > { %v1261_v45 = vpop.permute.xlu0 %1260 }
0x19b9   : > { %v1263_v46 = vmul.f32 %v1261_v45, %v1249_v42 }
0x19bb   : > { %1265 = vrot.lane.b32.xlu2 %v1263_v46, %s2038_s12 }
0x1a15   : > { %v1266_v49 = vpop.permute.xlu2 %1265 }
0x1a16   : > { %v1268_v50 = vadd.f32 %v1266_v49, %v1258_v48 }
0x1a18   : > { %1998 = vtanh.f32 %v1268_v50  ;;  %1281 = vrot.lane.b32.xlu2 %v1268_v50, %s2040_s14 }
0x1a1e   : > { %v1999_v51 = vpop.eup %1998 }
0x1a1f   : > { %1271 = vrot.lane.b32.xlu0 %v1999_v51, %s2038_s12 }
0x1a72   : > { %v1282_v52 = vpop.permute.xlu2 %1281 }
0x1a73   : > { %1284 = vst.msk [vmem:[#allocation3] sm:$0xff] %vm213_vm1, %v1282_v52 }
0x1a7a   : > { %v1351_v55 = vld [vmem:[#allocation3] sm:$0xff] }
0x1a91   : > { %v1272_v53 = vpop.permute.xlu0 %1271 }
0x1a92   : > { %v1274_v54 = vmul.f32 %v1272_v53, %v1249_v42 }
0x1a94   : > { %1276 = vrot.lane.b32.xlu1 %v1274_v54, %s2039_s13 }
0x1a9c   : > { %1353 = vrot.lane.b32.xlu1 %v1351_v55, %s2038_s12 }
0x1b06   : > { %v1277_v56 = vpop.permute.xlu1 %1276 }
0x1b07   : > { %1279 = vst.msk [vmem:[#allocation2] sm:$0xff] %vm213_vm1, %v1277_v56 }
0x1b08   : > { %1894 = vst.msk [vmem:[%s2082_s24 + $0x50] sm:$0xff] %vm213_vm1, %v1277_v56  ;;  %v1911_v56 = vld [vmem:[%s2077_s21 + $0x70] sm:$0xff] }
0x1b09   : > { %1895 = vst.msk [vmem:[%s2082_s24 + $0x50] sm:$0xff] %vm306_vm6, %v1268_v50 }
0x1b0e   : > { %v1291_v57 = vld [vmem:[#allocation2] sm:$0xff]  ;;  %v1354_v14 = vpop.permute.xlu1 %1353 }
0x1b0f   : > { %1292 = vst.msk [vmem:[#allocation4] sm:$0xff] %vm213_vm1, %v1291_v57 }
0x1b16   : > { %v1293_v59 = vld [vmem:[#allocation4] sm:$0xff] }
0x1b17   : > { %1326 = vmatmul.f32.vlgmr.msra.gmra.mxu3 %v1293_v59  ;;  %1388 = vst [vmem:[#allocation4] sm:$0xff] %v1901_v58 }
0x1b9a   : > { %v1327_v60 = vpop.f32.mrf.mxu3 }
0x1b9b   : > { %v1897_v61 = vmul.f32 -1.442695, %v1327_v60 }
0x1b9d   : > { %2000 = vpow2.f32 %v1897_v61 }
0x1ba3   : > { %v2001_v62 = vpop.eup %2000 }
0x1ba4   : > { %v1333_v63 = vadd.f32 1.0, %v2001_v62 }
0x1ba6   : > { %2002 = vrcp.f32 %v1333_v63  ;;  %v1345_v3 = vand.u32 2147483648, %v1333_v63  ;;  %v1343_v5 = vand.u32 2147483647, %v1333_v63  ;;  %vm1339_vm5 = vweird.f32 %v1333_v63 }
0x1ba8   : > { %v1346_v7 = vor.u32 1.1754944e-38, %v1345_v3  ;;  %vm1344_vm8 = vcmp.eq.f32.partialorder %v1343_v5, 8.507059e+37 }
0x1bac   : > { %v2003_v0 = vpop.eup %2002 }
0x1bad   : > { %v1335_v1 = vmul.f32 %v2003_v0, %v1333_v63  ;;  %vm1340_vm4 = vweird.f32 %v2003_v0 }
0x1bae   : > { %vm1341_vm7 = vmor %vm1339_vm5, %vm1340_vm4 }
0x1baf   : > { %v1336_v2 = vsub.f32 1.0, %v1335_v1 }
0x1bb1   : > { %v1337_v4 = vmul.f32 %v2003_v0, %v1336_v2 }
0x1bb3   : > { %v1338_v6 = vadd.f32 %v2003_v0, %v1337_v4 }
0x1bb5   : > { %v1342_v8 = vsel %vm1341_vm7, %v2003_v0, %v1338_v6 }
0x1bb6   : > { %v1347_v9 = vsel %vm1344_vm8, %v1346_v7, %v1342_v8 }
0x1bb7   : > { %v1349_v10 = vmul.f32 2.0, %v1347_v9  ;;  %v1356_v15 = vmul.f32 %v1354_v14, %v1347_v9 }
0x1bb9   : > { %v1898_v11 = vadd.f32 -1.0, %v1349_v10 }
0x1bbb   : > { %1358 = vrot.lane.b32.xlu0 %v1898_v11, %s2038_s12 }
0x1c2d   : > { %v1359_v12 = vpop.permute.xlu0 %1358 }
0x1c2e   : > { %v1361_v13 = vmul.f32 %v1359_v12, %v1347_v9 }
0x1c30   : > { %1363 = vrot.lane.b32.xlu2 %v1361_v13, %s2038_s12 }
0x1c8a   : > { %v1364_v16 = vpop.permute.xlu2 %1363 }
0x1c8b   : > { %v1366_v17 = vadd.f32 %v1364_v16, %v1356_v15 }
0x1c8d   : > { %2004 = vtanh.f32 %v1366_v17  ;;  %1379 = vrot.lane.b32.xlu2 %v1366_v17, %s2040_s14 }
0x1c93   : > { %v2005_v18 = vpop.eup %2004 }
0x1c94   : > { %1369 = vrot.lane.b32.xlu0 %v2005_v18, %s2038_s12  ;;  %v1603_v18 = vld [vmem:[%s2733_s1 + $0x78] sm:$0xff] }
0x1c95   : > { %1604 = vmatpush.msrb.mxu2 %v1603_v18  ;;  %1702 = vmatpush.msrb.mxu3 %v1603_v18 }
0x1ce7   : > { %v1380_v19 = vpop.permute.xlu2 %1379 }
0x1ce8   : > { %1382 = vst.msk [vmem:[#allocation3] sm:$0xff] %vm213_vm1, %v1380_v19  ;;  %v1602_v19 = vld [vmem:[%s2733_s1 + $0x70] sm:$0xff] }
0x1ce9   : > { %1605 = vmatpush.msrb.mxu2 %v1602_v19  ;;  %1703 = vmatpush.msrb.mxu3 %v1602_v19 }
0x1cef   : > { %v1449_v22 = vld [vmem:[#allocation3] sm:$0xff] }
0x1d06   : > { %v1370_v20 = vpop.permute.xlu0 %1369 }
0x1d07   : > { %v1372_v21 = vmul.f32 %v1370_v20, %v1347_v9  ;;  %v1601_v20 = vld [vmem:[%s2733_s1 + $0x68] sm:$0xff] }
0x1d08   : > { %1606 = vmatpush.msrb.mxu2 %v1601_v20  ;;  %1704 = vmatpush.msrb.mxu3 %v1601_v20 }
0x1d09   : > { %1374 = vrot.lane.b32.xlu1 %v1372_v21, %s2039_s13  ;;  %v1600_v21 = vld [vmem:[%s2733_s1 + $0x60] sm:$0xff] }
0x1d0a   : > { %1607 = vmatpush.msrb.mxu2 %v1600_v21  ;;  %1705 = vmatpush.msrb.mxu3 %v1600_v21 }
0x1d11   : > { %1451 = vrot.lane.b32.xlu1 %v1449_v22, %s2038_s12  ;;  %v1599_v22 = vld [vmem:[%s2733_s1 + $0x58] sm:$0xff] }
0x1d12   : > { %1608 = vmatpush.msrb.mxu2 %v1599_v22  ;;  %1706 = vmatpush.msrb.mxu3 %v1599_v22 }
0x1d7b   : > { %v1375_v23 = vpop.permute.xlu1 %1374 }
0x1d7c   : > { %1377 = vst.msk [vmem:[#allocation2] sm:$0xff] %vm213_vm1, %v1375_v23 }
0x1d7d   : > { %1899 = vst.msk [vmem:[%s2082_s24 + $0x58] sm:$0xff] %vm213_vm1, %v1375_v23  ;;  %v1598_v23 = vld [vmem:[%s2733_s1 + $0x50] sm:$0xff] }
0x1d7e   : > { %1900 = vst.msk [vmem:[%s2082_s24 + $0x58] sm:$0xff] %vm306_vm6, %v1366_v17  ;;  %1609 = vmatpush.msrb.mxu2 %v1598_v23  ;;  %1707 = vmatpush.msrb.mxu3 %v1598_v23 }
0x1d83   : > { %v1389_v24 = vld [vmem:[#allocation2] sm:$0xff]  ;;  %v1452_v45 = vpop.permute.xlu1 %1451 }
0x1d84   : > { %1390 = vst.msk [vmem:[#allocation4] sm:$0xff] %vm213_vm1, %v1389_v24  ;;  %v1597_v24 = vld [vmem:[%s2733_s1 + $0x48] sm:$0xff] }
0x1d85   : > { %1610 = vmatpush.msrb.mxu2 %v1597_v24  ;;  %1708 = vmatpush.msrb.mxu3 %v1597_v24 }
0x1d8b   : > { %v1391_v26 = vld [vmem:[#allocation4] sm:$0xff] }
0x1d8c   : > { %1424 = vmatmul.f32.vlgmr.msrb.gmra.mxu0 %v1391_v26  ;;  %1486 = vst [vmem:[#allocation4] sm:$0xff] %v1906_v25  ;;  %v1596_v25 = vld [vmem:[%s2733_s1 + $0x40] sm:$0xff] }
0x1d8d   : > { %1611 = vmatpush.msrb.mxu2 %v1596_v25  ;;  %1709 = vmatpush.msrb.mxu3 %v1596_v25 }
0x1e09   : > { %v1425_v27 = vpop.f32.mrf.mxu0 }
0x1e0a   : > { %v1902_v28 = vmul.f32 -1.442695, %v1425_v27 }
0x1e0c   : > { %2006 = vpow2.f32 %v1902_v28 }
0x1e12   : > { %v2007_v29 = vpop.eup %2006 }
0x1e13   : > { %v1431_v30 = vadd.f32 1.0, %v2007_v29  ;;  %v1595_v29 = vld [vmem:[%s2733_s1 + $0x38] sm:$0xff] }
0x1e14   : > { %1612 = vmatpush.msrb.mxu2 %v1595_v29  ;;  %1710 = vmatpush.msrb.mxu3 %v1595_v29 }
0x1e15   : > { %2008 = vrcp.f32 %v1431_v30  ;;  %v1443_v34 = vand.u32 2147483648, %v1431_v30  ;;  %v1441_v36 = vand.u32 2147483647, %v1431_v30  ;;  %vm1437_vm10 = vweird.f32 %v1431_v30 }
0x1e17   : > { %v1444_v38 = vor.u32 1.1754944e-38, %v1443_v34  ;;  %vm1442_vm12 = vcmp.eq.f32.partialorder %v1441_v36, 8.507059e+37  ;;  %v1590_v34 = vld [vmem:[%s2733_s1 + $0x10] sm:$0xff]  ;;  %v1588_v36 = vld [vmem:[%s2733_s1] sm:$0xff] }
0x1e1b   : > { %v2009_v31 = vpop.eup %2008 }
0x1e1c   : > { %v1433_v32 = vmul.f32 %v2009_v31, %v1431_v30  ;;  %vm1438_vm9 = vweird.f32 %v2009_v31  ;;  %v1594_v30 = vld [vmem:[%s2733_s1 + $0x30] sm:$0xff] }
0x1e1d   : > { %vm1439_vm11 = vmor %vm1437_vm10, %vm1438_vm9  ;;  %1613 = vmatpush.msrb.mxu2 %v1594_v30  ;;  %1711 = vmatpush.msrb.mxu3 %v1594_v30 }
0x1e1e   : > { %v1434_v33 = vsub.f32 1.0, %v1433_v32  ;;  %v1592_v32 = vld [vmem:[%s2733_s1 + $0x20] sm:$0xff] }
0x1e20   : > { %v1435_v35 = vmul.f32 %v2009_v31, %v1434_v33  ;;  %v1591_v33 = vld [vmem:[%s2733_s1 + $0x18] sm:$0xff] }
0x1e22   : > { %v1436_v37 = vadd.f32 %v2009_v31, %v1435_v35  ;;  %v1589_v35 = vld [vmem:[%s2733_s1 + $0x8] sm:$0xff] }
0x1e24   : > { %v1440_v39 = vsel %vm1439_vm11, %v2009_v31, %v1436_v37  ;;  %v1593_v31 = vld [vmem:[%s2733_s1 + $0x28] sm:$0xff] }
0x1e25   : > { %v1445_v40 = vsel %vm1442_vm12, %v1444_v38, %v1440_v39  ;;  %1614 = vmatpush.msrb.mxu2 %v1593_v31  ;;  %1712 = vmatpush.msrb.mxu3 %v1593_v31  ;;  %v1916_v39 = vld [vmem:[%s2077_s21 + $0x78] sm:$0xff] }
0x1e26   : > { %v1447_v41 = vmul.f32 2.0, %v1445_v40  ;;  %v1454_v46 = vmul.f32 %v1452_v45, %v1445_v40 }
0x1e27   : > { %1615 = vmatpush.msrb.mxu2 %v1592_v32  ;;  %1713 = vmatpush.msrb.mxu3 %v1592_v32 }
0x1e28   : > { %v1903_v42 = vadd.f32 -1.0, %v1447_v41 }
0x1e29   : > { %1616 = vmatpush.msrb.mxu2 %v1591_v33  ;;  %1714 = vmatpush.msrb.mxu3 %v1591_v33 }
0x1e2a   : > { %1456 = vrot.lane.b32.xlu0 %v1903_v42, %s2038_s12 }
0x1e2b   : > { %1617 = vmatpush.msrb.mxu2 %v1590_v34  ;;  %1715 = vmatpush.msrb.mxu3 %v1590_v34 }
0x1e2d   : > { %1618 = vmatpush.msrb.mxu2 %v1589_v35  ;;  %1716 = vmatpush.msrb.mxu3 %v1589_v35 }
0x1e2f   : > { %1619 = vmatpush.msrb.mxu2 %v1588_v36  ;;  %1717 = vmatpush.msrb.mxu3 %v1588_v36 }
0x1e9c   : > { %v1457_v43 = vpop.permute.xlu0 %1456 }
0x1e9d   : > { %v1459_v44 = vmul.f32 %v1457_v43, %v1445_v40 }
0x1e9f   : > { %1461 = vrot.lane.b32.xlu2 %v1459_v44, %s2038_s12 }
0x1ef9   : > { %v1462_v47 = vpop.permute.xlu2 %1461 }
0x1efa   : > { %v1464_v48 = vadd.f32 %v1462_v47, %v1454_v46 }
0x1efc   : > { %2010 = vtanh.f32 %v1464_v48  ;;  %1477 = vrot.lane.b32.xlu2 %v1464_v48, %s2040_s14 }
0x1f02   : > { %v2011_v49 = vpop.eup %2010 }
0x1f03   : > { %1467 = vrot.lane.b32.xlu0 %v2011_v49, %s2038_s12 }
0x1f56   : > { %v1478_v50 = vpop.permute.xlu2 %1477 }
0x1f57   : > { %1480 = vst.msk [vmem:[#allocation3] sm:$0xff] %vm213_vm1, %v1478_v50 }
0x1f5e   : > { %v1547_v53 = vld [vmem:[#allocation3] sm:$0xff] }
0x1f75   : > { %v1468_v51 = vpop.permute.xlu0 %1467 }
0x1f76   : > { %v1470_v52 = vmul.f32 %v1468_v51, %v1445_v40 }
0x1f78   : > { %1472 = vrot.lane.b32.xlu1 %v1470_v52, %s2039_s13 }
0x1f80   : > { %1549 = vrot.lane.b32.xlu1 %v1547_v53, %s2038_s12 }
0x1fea   : > { %v1473_v54 = vpop.permute.xlu1 %1472 }
0x1feb   : > { %1475 = vst.msk [vmem:[#allocation2] sm:$0xff] %vm213_vm1, %v1473_v54 }
0x1fec   : > { %1904 = vst.msk [vmem:[%s2082_s24 + $0x60] sm:$0xff] %vm213_vm1, %v1473_v54 }
0x1fed   : > { %1905 = vst.msk [vmem:[%s2082_s24 + $0x60] sm:$0xff] %vm306_vm6, %v1464_v48 }
0x1ff2   : > { %v1487_v55 = vld [vmem:[#allocation2] sm:$0xff]  ;;  %v1550_v12 = vpop.permute.xlu1 %1549 }
0x1ff3   : > { %1488 = vst.msk [vmem:[#allocation4] sm:$0xff] %vm213_vm1, %v1487_v55 }
0x1ffa   : > { %v1489_v57 = vld [vmem:[#allocation4] sm:$0xff] }
0x1ffb   : > { %1522 = vmatmul.f32.vlgmr.msrb.gmra.mxu1 %v1489_v57  ;;  %1584 = vst [vmem:[#allocation4] sm:$0xff] %v1911_v56 }
0x2078   : > { %v1523_v58 = vpop.f32.mrf.mxu1 }
0x2079   : > { %v1907_v59 = vmul.f32 -1.442695, %v1523_v58 }
0x207b   : > { %2012 = vpow2.f32 %v1907_v59 }
0x2081   : > { %v2013_v60 = vpop.eup %2012 }
0x2082   : > { %v1529_v61 = vadd.f32 1.0, %v2013_v60 }
0x2084   : > { %2014 = vrcp.f32 %v1529_v61  ;;  %v1541_v1 = vand.u32 2147483648, %v1529_v61  ;;  %v1539_v3 = vand.u32 2147483647, %v1529_v61  ;;  %vm1535_vm14 = vweird.f32 %v1529_v61 }
0x2086   : > { %v1542_v5 = vor.u32 1.1754944e-38, %v1541_v1  ;;  %vm1540_vm0 = vcmp.eq.f32.partialorder %v1539_v3, 8.507059e+37 }
0x208a   : > { %v2015_v62 = vpop.eup %2014 }
0x208b   : > { %v1531_v63 = vmul.f32 %v2015_v62, %v1529_v61  ;;  %vm1536_vm13 = vweird.f32 %v2015_v62 }
0x208c   : > { %vm1537_vm15 = vmor %vm1535_vm14, %vm1536_vm13 }
0x208d   : > { %v1532_v0 = vsub.f32 1.0, %v1531_v63 }
0x208f   : > { %v1533_v2 = vmul.f32 %v2015_v62, %v1532_v0 }
0x2091   : > { %v1534_v4 = vadd.f32 %v2015_v62, %v1533_v2 }
0x2093   : > { %v1538_v6 = vsel %vm1537_vm15, %v2015_v62, %v1534_v4 }
0x2094   : > { %v1543_v7 = vsel %vm1540_vm0, %v1542_v5, %v1538_v6 }
0x2095   : > { %v1545_v8 = vmul.f32 2.0, %v1543_v7  ;;  %v1552_v13 = vmul.f32 %v1550_v12, %v1543_v7 }
0x2097   : > { %v1908_v9 = vadd.f32 -1.0, %v1545_v8 }
0x2099   : > { %1554 = vrot.lane.b32.xlu0 %v1908_v9, %s2038_s12 }
0x210b   : > { %v1555_v10 = vpop.permute.xlu0 %1554 }
0x210c   : > { %v1557_v11 = vmul.f32 %v1555_v10, %v1543_v7 }
0x210e   : > { %1559 = vrot.lane.b32.xlu2 %v1557_v11, %s2038_s12 }
0x2168   : > { %v1560_v14 = vpop.permute.xlu2 %1559 }
0x2169   : > { %v2640_v15 = vadd.f32 %v1560_v14, %v1552_v13 }
0x216b   : > { %2016 = vtanh.f32 %v2640_v15  ;;  %1575 = vrot.lane.b32.xlu2 %v2640_v15, %s2040_s14 }
0x2171   : > { %v2017_v16 = vpop.eup %2016 }
0x2172   : > { %1565 = vrot.lane.b32.xlu0 %v2017_v16, %s2038_s12 }
0x21c5   : > { %v1576_v17 = vpop.permute.xlu2 %1575 }
0x21c6   : > { %1578 = vst.msk [vmem:[#allocation3] sm:$0xff] %vm213_vm1, %v1576_v17 }
0x21cd   : > { %v1645_v28 = vld [vmem:[#allocation3] sm:$0xff] }
0x21e4   : > { %v1566_v26 = vpop.permute.xlu0 %1565 }
0x21e5   : > { %v1568_v27 = vmul.f32 %v1566_v26, %v1543_v7 }
0x21e7   : > { %1570 = vrot.lane.b32.xlu1 %v1568_v27, %s2039_s13 }
0x21ef   : > { %1647 = vrot.lane.b32.xlu1 %v1645_v28, %s2038_s12 }
0x2259   : > { %v1571_v37 = vpop.permute.xlu1 %1570 }
0x225a   : > { %1573 = vst.msk [vmem:[#allocation2] sm:$0xff] %vm213_vm1, %v1571_v37 }
0x225b   : > { %1909 = vst.msk [vmem:[%s2082_s24 + $0x68] sm:$0xff] %vm213_vm1, %v1571_v37 }
0x225c   : > { %1910 = vst.msk [vmem:[%s2082_s24 + $0x68] sm:$0xff] %vm306_vm6, %v2640_v15 }
0x2261   : > { %v1585_v38 = vld [vmem:[#allocation2] sm:$0xff]  ;;  %v1648_v59 = vpop.permute.xlu1 %1647 }
0x2262   : > { %1586 = vst.msk [vmem:[#allocation4] sm:$0xff] %vm213_vm1, %v1585_v38 }
0x2269   : > { %v1587_v40 = vld [vmem:[#allocation4] sm:$0xff] }
0x226a   : > { %1620 = vmatmul.f32.vlgmr.msrb.gmra.mxu2 %v1587_v40  ;;  %1682 = vst [vmem:[#allocation4] sm:$0xff] %v1916_v39 }
0x22ed   : > { %v1621_v41 = vpop.f32.mrf.mxu2 }
0x22ee   : > { %v1912_v42 = vmul.f32 -1.442695, %v1621_v41 }
0x22f0   : > { %2018 = vpow2.f32 %v1912_v42 }
0x22f6   : > { %v2019_v43 = vpop.eup %2018 }
0x22f7   : > { %v1627_v44 = vadd.f32 1.0, %v2019_v43 }
0x22f9   : > { %2020 = vrcp.f32 %v1627_v44  ;;  %v1639_v48 = vand.u32 2147483648, %v1627_v44  ;;  %v1637_v50 = vand.u32 2147483647, %v1627_v44  ;;  %vm1633_vm3 = vweird.f32 %v1627_v44 }
0x22fb   : > { %v1640_v52 = vor.u32 1.1754944e-38, %v1639_v48  ;;  %vm1638_vm5 = vcmp.eq.f32.partialorder %v1637_v50, 8.507059e+37 }
0x22ff   : > { %v2021_v45 = vpop.eup %2020 }
0x2300   : > { %v1629_v46 = vmul.f32 %v2021_v45, %v1627_v44  ;;  %vm1634_vm2 = vweird.f32 %v2021_v45 }
0x2301   : > { %vm1635_vm4 = vmor %vm1633_vm3, %vm1634_vm2 }
0x2302   : > { %v1630_v47 = vsub.f32 1.0, %v1629_v46 }
0x2304   : > { %v1631_v49 = vmul.f32 %v2021_v45, %v1630_v47 }
0x2306   : > { %v1632_v51 = vadd.f32 %v2021_v45, %v1631_v49 }
0x2308   : > { %v1636_v53 = vsel %vm1635_vm4, %v2021_v45, %v1632_v51 }
0x2309   : > { %v1641_v54 = vsel %vm1638_vm5, %v1640_v52, %v1636_v53 }
0x230a   : > { %v1643_v55 = vmul.f32 2.0, %v1641_v54  ;;  %v1650_v60 = vmul.f32 %v1648_v59, %v1641_v54 }
0x230c   : > { %v1913_v56 = vadd.f32 -1.0, %v1643_v55 }
0x230e   : > { %1652 = vrot.lane.b32.xlu0 %v1913_v56, %s2038_s12 }
0x2380   : > { %v1653_v57 = vpop.permute.xlu0 %1652 }
0x2381   : > { %v1655_v58 = vmul.f32 %v1653_v57, %v1641_v54 }
0x2383   : > { %1657 = vrot.lane.b32.xlu2 %v1655_v58, %s2038_s12 }
0x23dd   : > { %v1658_v61 = vpop.permute.xlu2 %1657 }
0x23de   : > { %v1660_v62 = vadd.f32 %v1658_v61, %v1650_v60 }
0x23e0   : > { %2022 = vtanh.f32 %v1660_v62  ;;  %1673 = vrot.lane.b32.xlu2 %v1660_v62, %s2040_s14 }
0x23e6   : > { %v2023_v63 = vpop.eup %2022 }
0x23e7   : > { %1663 = vrot.lane.b32.xlu0 %v2023_v63, %s2038_s12 }
0x243a   : > { %v1674_v0 = vpop.permute.xlu2 %1673 }
0x243b   : > { %1676 = vst.msk [vmem:[#allocation3] sm:$0xff] %vm213_vm1, %v1674_v0 }
0x2442   : > { %v1743_v3 = vld [vmem:[#allocation3] sm:$0xff] }
0x2459   : > { %v1664_v1 = vpop.permute.xlu0 %1663 }
0x245a   : > { %v1666_v2 = vmul.f32 %v1664_v1, %v1641_v54 }
0x245c   : > { %1668 = vrot.lane.b32.xlu1 %v1666_v2, %s2039_s13 }
0x2464   : > { %1745 = vrot.lane.b32.xlu1 %v1743_v3, %s2038_s12 }
0x24ce   : > { %v1669_v4 = vpop.permute.xlu1 %1668 }
0x24cf   : > { %1671 = vst.msk [vmem:[#allocation2] sm:$0xff] %vm213_vm1, %v1669_v4 }
0x24d0   : > { %1914 = vst.msk [vmem:[%s2082_s24 + $0x70] sm:$0xff] %vm213_vm1, %v1669_v4 }
0x24d1   : > { %1915 = vst.msk [vmem:[%s2082_s24 + $0x70] sm:$0xff] %vm306_vm6, %v1660_v62 }
0x24d6   : > { %v1683_v5 = vld [vmem:[#allocation2] sm:$0xff]  ;;  %v1746_v25 = vpop.permute.xlu1 %1745 }
0x24d7   : > { %1684 = vst.msk [vmem:[#allocation4] sm:$0xff] %vm213_vm1, %v1683_v5 }
0x24de   : > { %v1685_v6 = vld [vmem:[#allocation4] sm:$0xff] }
0x24df   : > { %1718 = vmatmul.f32.vlgmr.msrb.gmra.mxu3 %v1685_v6 }
0x2562   : > { %v1719_v7 = vpop.f32.mrf.mxu3 }
0x2563   : > { %v1917_v8 = vmul.f32 -1.442695, %v1719_v7 }
0x2565   : > { %2024 = vpow2.f32 %v1917_v8 }
0x256b   : > { %v2025_v9 = vpop.eup %2024 }
0x256c   : > { %v1725_v10 = vadd.f32 1.0, %v2025_v9 }
0x256e   : > { %2026 = vrcp.f32 %v1725_v10  ;;  %v1737_v14 = vand.u32 2147483648, %v1725_v10  ;;  %v1735_v16 = vand.u32 2147483647, %v1725_v10  ;;  %vm1731_vm8 = vweird.f32 %v1725_v10 }
0x2570   : > { %v1738_v18 = vor.u32 1.1754944e-38, %v1737_v14  ;;  %vm1736_vm10 = vcmp.eq.f32.partialorder %v1735_v16, 8.507059e+37 }
0x2574   : > { %v2027_v11 = vpop.eup %2026 }
0x2575   : > { %v1727_v12 = vmul.f32 %v2027_v11, %v1725_v10  ;;  %vm1732_vm7 = vweird.f32 %v2027_v11 }
0x2576   : > { %vm1733_vm9 = vmor %vm1731_vm8, %vm1732_vm7 }
0x2577   : > { %v1728_v13 = vsub.f32 1.0, %v1727_v12 }
0x2579   : > { %v1729_v15 = vmul.f32 %v2027_v11, %v1728_v13 }
0x257b   : > { %v1730_v17 = vadd.f32 %v2027_v11, %v1729_v15 }
0x257d   : > { %v1734_v19 = vsel %vm1733_vm9, %v2027_v11, %v1730_v17 }
0x257e   : > { %v1739_v20 = vsel %vm1736_vm10, %v1738_v18, %v1734_v19 }
0x257f   : > { %v1741_v21 = vmul.f32 2.0, %v1739_v20  ;;  %v1748_v26 = vmul.f32 %v1746_v25, %v1739_v20 }
0x2581   : > { %v1918_v22 = vadd.f32 -1.0, %v1741_v21 }
0x2583   : > { %1750 = vrot.lane.b32.xlu0 %v1918_v22, %s2038_s12 }
0x25f5   : > { %v1751_v23 = vpop.permute.xlu0 %1750 }
0x25f6   : > { %v1753_v24 = vmul.f32 %v1751_v23, %v1739_v20 }
0x25f8   : > { %1755 = vrot.lane.b32.xlu2 %v1753_v24, %s2038_s12 }
0x2652   : > { %v1756_v27 = vpop.permute.xlu2 %1755 }
0x2653   : > { %v1758_v28 = vadd.f32 %v1756_v27, %v1748_v26 }
0x2655   : > { %2028 = vtanh.f32 %v1758_v28  ;;  %1771 = vrot.lane.b32.xlu2 %v1758_v28, %s2040_s14 }
0x265b   : > { %v2029_v29 = vpop.eup %2028 }
0x265c   : > { %1761 = vrot.lane.b32.xlu0 %v2029_v29, %s2038_s12 }
0x26af   : > { %v1772_v30 = vpop.permute.xlu2 %1771 }
0x26b0   : > { %1774 = vst.msk [vmem:[#allocation3] sm:$0xff] %vm213_vm1, %v1772_v30 }
0x26ce   : > { %v1762_v31 = vpop.permute.xlu0 %1761 }
0x26cf   : > { %v1764_v32 = vmul.f32 %v1762_v31, %v1739_v20 }
0x26d1   : > { %1766 = vrot.lane.b32.xlu1 %v1764_v32, %s2039_s13 }
0x2743   : > { %v1767_v33 = vpop.permute.xlu1 %1766 }
0x2744   : > { %1769 = vst.msk [vmem:[#allocation2] sm:$0xff] %vm213_vm1, %v1767_v33 }
0x2745   : > { %1919 = vst.msk [vmem:[%s2082_s24 + $0x78] sm:$0xff] %vm213_vm1, %v1767_v33 }
0x2746   : > { %1920 = vst.msk [vmem:[%s2082_s24 + $0x78] sm:$0xff] %vm306_vm6, %v1758_v28 }
0x2747 PF: > { %s14_s15 = sadd.s32 1, %s2036_s15  }
0x2748   : > { %p11_p5 = scmp.ge.s32.totalorder %s14_s15, 4  }
0x274a   :  { %13 = sbr.rel (!%p11_p5) target bundleno = 1 (0x1), region = 100 }

</bundles_post_ra>
